<compile_context>
chip_gen: v7x
topology: tpu7x:2x2x1
jax: 0.10.0
libtpu: 0.0.40
codegen_flags: <defaults>
</compile_context>

<pallas_src>
import numpy as np
import jax
import jax.numpy as jnp
from jax.experimental import pallas as pl
from jax.experimental.pallas import tpu as pltpu


def _round_up(x, m):
    return ((x + m - 1) // m) * m


# ------------------------------ fused kernel --------------------------------

def _make_fused_kernel(layer_num, T, B, BP, HP):
    """Builds the fused LSTM(+head) kernel.

    Ref order:
      x_slab[T*BP, DP0] (bf16, time-major, batch+lane zero-padded), act[B,A],
      per layer: w_ih[DinP,4*HP] bf16, w_hh[HP,4*HP] bf16, b[1,4*HP] f32,
      w_h[1,HP] f32, w_a[1,A] f32, b_fc[1,1] f32,
      out[B,1],
      scratch: seq_sc[T*BP, HP] bf16 (inter-layer h), gx_sc[T*BP, 4*HP] f32.
    """

    def sigmoid(x):
        # 1 EUP push (tanh) + 2 VPU ops, instead of exp + reciprocal.
        return 0.5 + 0.5 * jnp.tanh(0.5 * x)

    def kernel(*refs):
        x_ref = refs[0]                            # [T*BP, DP0] bf16
        act_ref = refs[1]                          # [B, A]      f32
        layer_refs = refs[2:2 + 3 * layer_num]
        wh_ref = refs[2 + 3 * layer_num]           # [1, HP] fc2 weight (hidden)
        wa_ref = refs[3 + 3 * layer_num]           # [1, A]  fc2 weight (action)
        bfc_ref = refs[4 + 3 * layer_num]          # [1, 1]
        out_ref = refs[5 + 3 * layer_num]          # [B, 1]
        seq_sc = refs[6 + 3 * layer_num]           # VMEM [T*BP, HP] bf16
        gx_sc = refs[7 + 3 * layer_num]            # VMEM [T*BP, 4*HP] f32

        h = jnp.zeros((BP, HP), jnp.float32)
        for l in range(layer_num):
            wih_ref = layer_refs[3 * l + 0]        # [DinP, 4*HP] bf16
            whh_ref = layer_refs[3 * l + 1]        # [HP, 4*HP]   bf16
            b_ref = layer_refs[3 * l + 2]          # [1, 4*HP]    f32

            # Hoisted input projection: one bf16 MXU matmul (f32 accumulate)
            # for all T timesteps, off the sequential critical path.
            src = x_ref if l == 0 else seq_sc
            gx_sc[...] = (jnp.dot(src[...], wih_ref[...],
                                  preferred_element_type=jnp.float32)
                          + b_ref[...])

            whh = whh_ref[...]                     # kept stationary across t
            h = jnp.zeros((BP, HP), jnp.float32)
            c = jnp.zeros((BP, HP), jnp.float32)

            # Sequential recurrence (fully unrolled): one small bf16 matmul +
            # lane/sublane-aligned gate math per step. All slices start at a
            # static multiple of BP (>= 8 sublanes) -> unmasked vld/vst.
            for t in range(T):
                r0, r1 = t * BP, (t + 1) * BP
                gates = gx_sc[r0:r1, :] + jnp.dot(
                    h.astype(jnp.bfloat16), whh,
                    preferred_element_type=jnp.float32)        # [BP, 4*HP] f32
                i_g = sigmoid(gates[:, 0 * HP:1 * HP])
                f_g = sigmoid(gates[:, 1 * HP:2 * HP])
                g_g = jnp.tanh(gates[:, 2 * HP:3 * HP])
                o_g = sigmoid(gates[:, 3 * HP:4 * HP])
                c = f_g * c + i_g * g_g
                h = o_g * jnp.tanh(c)
                if l + 1 < layer_num:
                    # Next layer's input; skipped for the final layer.
                    seq_sc[r0:r1, :] = h.astype(jnp.bfloat16)

        # fc2 head:  concat(last_h, act) @ W.T + b
        #          = sum(last_h * w_h) + sum(act * w_a) + b   (VPU + lane reduce)
        out_ref[...] = (jnp.sum(h[0:B, :] * wh_ref[...], axis=-1, keepdims=True)
                        + jnp.sum(act_ref[...] * wa_ref[...], axis=-1,
                                  keepdims=True)
                        + bfc_ref[...])

    return kernel


# ------------------------- parameter init & layout ---------------------------

def init_params(key, layer_num, state_dim, act_dim, hidden):
    """Deterministic init matching PyTorch shapes (uniform +-1/sqrt(H))."""
    params = {"lstm": [], "fc2": None}
    k = 1.0 / np.sqrt(hidden)
    for layer in range(layer_num):
        din = state_dim if layer == 0 else hidden
        key, k1, k2, k3, k4 = jax.random.split(key, 5)
        w_ih = jax.random.uniform(k1, (4 * hidden, din), jnp.float32, -k, k)
        w_hh = jax.random.uniform(k2, (4 * hidden, hidden), jnp.float32, -k, k)
        b_ih = jax.random.uniform(k3, (4 * hidden,), jnp.float32, -k, k)
        b_hh = jax.random.uniform(k4, (4 * hidden,), jnp.float32, -k, k)
        params["lstm"].append((w_ih, w_hh, b_ih, b_hh))
    fin = hidden + act_dim
    kf = 1.0 / np.sqrt(fin)
    key, k1, k2 = jax.random.split(key, 3)
    w_fc = jax.random.uniform(k1, (1, fin), jnp.float32, -kf, kf)
    b_fc = jax.random.uniform(k2, (1,), jnp.float32, -kf, kf)
    params["fc2"] = (w_fc, b_fc)
    return params


def prepare_kernel_params(params):
    """One-time conversion: PyTorch layout -> padded, transposed kernel layout.

    Gate weights become [DinP, 4*HP] / [HP, 4*HP] with each gate padded to a
    full 128-lane tile (zeros) so in-kernel gate slices are 128-lane aligned,
    and are stored as bf16 (MXU-native); biases stay f32.
    """
    H = params["lstm"][0][1].shape[1]          # w_hh: [4H, H]
    din0 = params["lstm"][0][0].shape[1]       # w_ih (layer 0): [4H, state_dim]
    hp = _round_up(H, 128)                     # padded hidden width
    dp0 = _round_up(din0, 128)                 # padded layer-0 input width

    lstm_flat = []
    for layer, (w_ih, w_hh, b_ih, b_hh) in enumerate(params["lstm"]):
        din = w_ih.shape[1]
        dinp = dp0 if layer == 0 else hp
        wih = jnp.transpose(w_ih).reshape(din, 4, H)                  # [Din,4,H]
        wih = jnp.pad(wih, ((0, dinp - din), (0, 0), (0, hp - H)))
        lstm_flat.append(wih.reshape(dinp, 4 * hp).astype(jnp.bfloat16))

        whh = jnp.transpose(w_hh).reshape(H, 4, H)
        whh = jnp.pad(whh, ((0, hp - H), (0, 0), (0, hp - H)))
        lstm_flat.append(whh.reshape(hp, 4 * hp).astype(jnp.bfloat16))

        b = (b_ih + b_hh).reshape(4, H)
        b = jnp.pad(b, ((0, 0), (0, hp - H)))
        lstm_flat.append(b.reshape(1, 4 * hp).astype(jnp.float32))

    w_fc, b_fc = params["fc2"]                  # [1, H+A], [1]
    w_h = jnp.pad(w_fc[:, :H], ((0, 0), (0, hp - H))).astype(jnp.float32)
    w_a = w_fc[:, H:].astype(jnp.float32)
    b_f = b_fc.reshape(1, 1).astype(jnp.float32)

    return {"hp": hp, "dp0": dp0, "layer_num": len(params["lstm"]),
            "lstm_flat": lstm_flat, "fc": (w_h, w_a, b_f)}


# ------------------------------ forward wrapper ------------------------------

def recurrent_critic_forward(kparams, obs, act):
    """obs: [B, T, state_dim] float32, act: [B, act_dim] float32 -> [B, 1]."""
    assert obs.ndim == 3
    obs = obs.astype(jnp.float32)
    act = act.astype(jnp.float32)
    B, T, D = obs.shape
    hp, dp0, L = kparams["hp"], kparams["dp0"], kparams["layer_num"]
    bp = max(8, _round_up(B, 8))               # sublane-aligned batch rows

    # Wrapper-side time-major staging: [B,T,D] -> zero-padded [T*BP, DP0] bf16.
    # (Zero pad is load-bearing: padded lanes/rows must be 0, not stale VMEM.)
    x_tm = jnp.transpose(obs, (1, 0, 2))                           # [T, B, D]
    x_tm = jnp.pad(x_tm, ((0, 0), (0, bp - B), (0, dp0 - D)))      # [T, BP, DP0]
    x_slab = x_tm.reshape(T * bp, dp0).astype(jnp.bfloat16)

    w_h, w_a, b_f = kparams["fc"]
    kernel = _make_fused_kernel(L, T, B, bp, hp)
    return pl.pallas_call(
        kernel,
        out_shape=jax.ShapeDtypeStruct((B, 1), jnp.float32),
        scratch_shapes=[
            pltpu.VMEM((T * bp, hp), jnp.bfloat16),      # inter-layer h staging
            pltpu.VMEM((T * bp, 4 * hp), jnp.float32),   # hoisted x-projections
        ],
        # Tiny model (<1 MiB resident with bf16 weights); fits v7x's 64 MiB too.
        compiler_params=pltpu.CompilerParams(vmem_limit_bytes=32 * 1024 * 1024),
    )(x_slab, act, *kparams["lstm_flat"], w_h, w_a, b_f)


# --------------------------- pure-JAX reference -----------------------------

def _reference_forward(params, obs, act):
    x = jnp.transpose(obs.astype(jnp.float32), (1, 0, 2))  # [T, B, D]
    B = obs.shape[0]
    for (w_ih, w_hh, b_ih, b_hh) in params["lstm"]:
        H = w_hh.shape[1]

        def step(carry, x_t):
            h, c = carry
            gates = x_t @ w_ih.T + h @ w_hh.T + b_ih + b_hh
            i = jax.nn.sigmoid(gates[:, 0 * H:1 * H])
            f = jax.nn.sigmoid(gates[:, 1 * H:2 * H])
            g = jnp.tanh(gates[:, 2 * H:3 * H])
            o = jax.nn.sigmoid(gates[:, 3 * H:4 * H])
            c = f * c + i * g
            h = o * jnp.tanh(c)
            return (h, c), h

        init = (jnp.zeros((B, H), jnp.float32), jnp.zeros((B, H), jnp.float32))
        _, x = jax.lax.scan(step, init, x)
    last_h = x[-1]
    feat = jnp.concatenate([last_h, act.astype(jnp.float32)], axis=1)
    w_fc, b_fc = params["fc2"]
    return feat @ w_fc.T + b_fc


# ---------------------------------- main ------------------------------------

if __name__ == "__main__":
    layer_num = 2
    state_dim = 16           # int(np.prod(state_shape)), state_shape=(16,)
    act_dim = 4              # int(np.prod(action_shape)), action_shape=(4,)
    hidden = 32
    B, T = 2, 8

    key = jax.random.PRNGKey(0)
    kp, ko, ka = jax.random.split(key, 3)

    params = init_params(kp, layer_num, state_dim, act_dim, hidden)
    obs = jax.random.normal(ko, (B, T, state_dim), jnp.float32)
    act = jax.random.normal(ka, (B, act_dim), jnp.float32)

    kparams = prepare_kernel_params(params)     # one-time layout/padding prep

    out = recurrent_critic_forward(kparams, obs, act)
    out = jax.block_until_ready(out)

    ref = jax.block_until_ready(_reference_forward(params, obs, act))
    # bf16 matmul operands (f32 accumulation) vs. the f32 reference -> looser tol.
    np.testing.assert_allclose(np.asarray(out), np.asarray(ref),
                               rtol=5e-2, atol=5e-2)
    assert out.shape == (B, 1)
    print("KERNEL_OK")
</pallas_src>

<mosaic_0001>
module attributes {stable_mosaic.version = 11 : i64} {
  func.func @kernel(%arg0: memref<64x128xbf16, #tpu.memory_space<vmem>>, %arg1: memref<2x4xf32, #tpu.memory_space<vmem>>, %arg2: memref<128x512xbf16, #tpu.memory_space<vmem>>, %arg3: memref<128x512xbf16, #tpu.memory_space<vmem>>, %arg4: memref<1x512xf32, #tpu.memory_space<vmem>>, %arg5: memref<128x512xbf16, #tpu.memory_space<vmem>>, %arg6: memref<128x512xbf16, #tpu.memory_space<vmem>>, %arg7: memref<1x512xf32, #tpu.memory_space<vmem>>, %arg8: memref<1x128xf32, #tpu.memory_space<vmem>>, %arg9: memref<1x4xf32, #tpu.memory_space<vmem>>, %arg10: memref<1x1xf32, #tpu.memory_space<vmem>>, %arg11: memref<2x1xf32, #tpu.memory_space<vmem>>, %arg12: memref<64x128xbf16, #tpu.memory_space<vmem>>, %arg13: memref<64x512xf32, #tpu.memory_space<vmem>>) attributes {dimension_semantics = [], scalar_prefetch = 0 : i64, scratch_operands = 2 : i64, tpu.core_type = #tpu.core_type<tc>} {
    %c0 = arith.constant 0 : index
    %c0_0 = arith.constant 0 : index
    %0 = vector.load %arg0[%c0, %c0_0] : memref<64x128xbf16, #tpu.memory_space<vmem>>, vector<64x128xbf16>
    %c0_1 = arith.constant 0 : index
    %c0_2 = arith.constant 0 : index
    %1 = vector.load %arg2[%c0_1, %c0_2] : memref<128x512xbf16, #tpu.memory_space<vmem>>, vector<128x512xbf16>
    %cst = arith.constant dense<0.000000e+00> : vector<64x512xf32>
    %2 = tpu.matmul %0, %1, %cst {dimension_numbers = #tpu.dot_dimension_numbers<[1], [0], [0], [1], [0, 0, 1, 1], [], []>} : vector<64x128xbf16>, vector<128x512xbf16>, vector<64x512xf32> -> vector<64x512xf32>
    %c0_3 = arith.constant 0 : index
    %c0_4 = arith.constant 0 : index
    %3 = vector.load %arg4[%c0_3, %c0_4] : memref<1x512xf32, #tpu.memory_space<vmem>>, vector<1x512xf32>
    %4 = vector.broadcast %3 : vector<1x512xf32> to vector<64x512xf32>
    %5 = arith.addf %2, %4 : vector<64x512xf32>
    %c0_5 = arith.constant 0 : index
    %c0_6 = arith.constant 0 : index
    %6 = vector.load %arg13[%c0_5, %c0_6] : memref<64x512xf32, #tpu.memory_space<vmem>>, vector<64x512xf32>
    tpu.vector_store %arg13[%c0_5, %c0_6], %5 {strides = array<i32>} : memref<64x512xf32, #tpu.memory_space<vmem>>, vector<64x512xf32>,
    %c0_7 = arith.constant 0 : index
    %c0_8 = arith.constant 0 : index
    %7 = vector.load %arg3[%c0_7, %c0_8] : memref<128x512xbf16, #tpu.memory_space<vmem>>, vector<128x512xbf16>
    %cst_9 = arith.constant 0.000000e+00 : f32
    %8 = vector.broadcast %cst_9 : f32 to vector<8x128xf32>
    %cst_10 = arith.constant 0.000000e+00 : f32
    %9 = vector.broadcast %cst_10 : f32 to vector<8x128xf32>
    %c0_11 = arith.constant 0 : index
    %c0_12 = arith.constant 0 : index
    %10 = vector.load %arg13[%c0_11, %c0_12] : memref<64x512xf32, #tpu.memory_space<vmem>>, vector<8x512xf32>
    %11 = arith.truncf %8 : vector<8x128xf32> to vector<8x128xbf16>
    %cst_13 = arith.constant dense<0.000000e+00> : vector<8x512xf32>
    %12 = tpu.matmul %11, %7, %cst_13 {dimension_numbers = #tpu.dot_dimension_numbers<[1], [0], [0], [1], [0, 0, 1, 1], [], []>} : vector<8x128xbf16>, vector<128x512xbf16>, vector<8x512xf32> -> vector<8x512xf32>
    %13 = arith.addf %10, %12 : vector<8x512xf32>
    %14 = vector.extract_strided_slice %13 {offsets = [0, 0], sizes = [8, 128], strides = [1, 1]} : vector<8x512xf32> to vector<8x128xf32>
    %cst_14 = arith.constant 5.000000e-01 : f32
    %15 = vector.broadcast %cst_14 : f32 to vector<8x128xf32>
    %16 = arith.mulf %15, %14 : vector<8x128xf32>
    %17 = math.tanh %16 : vector<8x128xf32>
    %cst_15 = arith.constant 5.000000e-01 : f32
    %18 = vector.broadcast %cst_15 : f32 to vector<8x128xf32>
    %19 = arith.mulf %18, %17 : vector<8x128xf32>
    %cst_16 = arith.constant 5.000000e-01 : f32
    %20 = vector.broadcast %cst_16 : f32 to vector<8x128xf32>
    %21 = arith.addf %20, %19 : vector<8x128xf32>
    %22 = vector.extract_strided_slice %13 {offsets = [0, 128], sizes = [8, 128], strides = [1, 1]} : vector<8x512xf32> to vector<8x128xf32>
    %cst_17 = arith.constant 5.000000e-01 : f32
    %23 = vector.broadcast %cst_17 : f32 to vector<8x128xf32>
    %24 = arith.mulf %23, %22 : vector<8x128xf32>
    %25 = math.tanh %24 : vector<8x128xf32>
    %cst_18 = arith.constant 5.000000e-01 : f32
    %26 = vector.broadcast %cst_18 : f32 to vector<8x128xf32>
    %27 = arith.mulf %26, %25 : vector<8x128xf32>
    %cst_19 = arith.constant 5.000000e-01 : f32
    %28 = vector.broadcast %cst_19 : f32 to vector<8x128xf32>
    %29 = arith.addf %28, %27 : vector<8x128xf32>
    %30 = vector.extract_strided_slice %13 {offsets = [0, 256], sizes = [8, 128], strides = [1, 1]} : vector<8x512xf32> to vector<8x128xf32>
    %31 = math.tanh %30 : vector<8x128xf32>
    %32 = vector.extract_strided_slice %13 {offsets = [0, 384], sizes = [8, 128], strides = [1, 1]} : vector<8x512xf32> to vector<8x128xf32>
    %cst_20 = arith.constant 5.000000e-01 : f32
    %33 = vector.broadcast %cst_20 : f32 to vector<8x128xf32>
    %34 = arith.mulf %33, %32 : vector<8x128xf32>
    %35 = math.tanh %34 : vector<8x128xf32>
    %cst_21 = arith.constant 5.000000e-01 : f32
    %36 = vector.broadcast %cst_21 : f32 to vector<8x128xf32>
    %37 = arith.mulf %36, %35 : vector<8x128xf32>
    %cst_22 = arith.constant 5.000000e-01 : f32
    %38 = vector.broadcast %cst_22 : f32 to vector<8x128xf32>
    %39 = arith.addf %38, %37 : vector<8x128xf32>
    %40 = arith.mulf %29, %9 : vector<8x128xf32>
    %41 = arith.mulf %21, %31 : vector<8x128xf32>
    %42 = arith.addf %40, %41 : vector<8x128xf32>
    %43 = math.tanh %42 : vector<8x128xf32>
    %44 = arith.mulf %39, %43 : vector<8x128xf32>
    %45 = arith.truncf %44 : vector<8x128xf32> to vector<8x128xbf16>
    %c0_23 = arith.constant 0 : index
    %c0_24 = arith.constant 0 : index
    %46 = vector.load %arg12[%c0_23, %c0_24] : memref<64x128xbf16, #tpu.memory_space<vmem>>, vector<8x128xbf16>
    tpu.vector_store %arg12[%c0_23, %c0_24], %45 {strides = array<i32>} : memref<64x128xbf16, #tpu.memory_space<vmem>>, vector<8x128xbf16>,
    %c8 = arith.constant 8 : index
    %c0_25 = arith.constant 0 : index
    %47 = vector.load %arg13[%c8, %c0_25] : memref<64x512xf32, #tpu.memory_space<vmem>>, vector<8x512xf32>
    %48 = arith.truncf %44 : vector<8x128xf32> to vector<8x128xbf16>
    %cst_26 = arith.constant dense<0.000000e+00> : vector<8x512xf32>
    %49 = tpu.matmul %48, %7, %cst_26 {dimension_numbers = #tpu.dot_dimension_numbers<[1], [0], [0], [1], [0, 0, 1, 1], [], []>} : vector<8x128xbf16>, vector<128x512xbf16>, vector<8x512xf32> -> vector<8x512xf32>
    %50 = arith.addf %47, %49 : vector<8x512xf32>
    %51 = vector.extract_strided_slice %50 {offsets = [0, 0], sizes = [8, 128], strides = [1, 1]} : vector<8x512xf32> to vector<8x128xf32>
    %cst_27 = arith.constant 5.000000e-01 : f32
    %52 = vector.broadcast %cst_27 : f32 to vector<8x128xf32>
    %53 = arith.mulf %52, %51 : vector<8x128xf32>
    %54 = math.tanh %53 : vector<8x128xf32>
    %cst_28 = arith.constant 5.000000e-01 : f32
    %55 = vector.broadcast %cst_28 : f32 to vector<8x128xf32>
    %56 = arith.mulf %55, %54 : vector<8x128xf32>
    %cst_29 = arith.constant 5.000000e-01 : f32
    %57 = vector.broadcast %cst_29 : f32 to vector<8x128xf32>
    %58 = arith.addf %57, %56 : vector<8x128xf32>
    %59 = vector.extract_strided_slice %50 {offsets = [0, 128], sizes = [8, 128], strides = [1, 1]} : vector<8x512xf32> to vector<8x128xf32>
    %cst_30 = arith.constant 5.000000e-01 : f32
    %60 = vector.broadcast %cst_30 : f32 to vector<8x128xf32>
    %61 = arith.mulf %60, %59 : vector<8x128xf32>
    %62 = math.tanh %61 : vector<8x128xf32>
    %cst_31 = arith.constant 5.000000e-01 : f32
    %63 = vector.broadcast %cst_31 : f32 to vector<8x128xf32>
    %64 = arith.mulf %63, %62 : vector<8x128xf32>
    %cst_32 = arith.constant 5.000000e-01 : f32
    %65 = vector.broadcast %cst_32 : f32 to vector<8x128xf32>
    %66 = arith.addf %65, %64 : vector<8x128xf32>
    %67 = vector.extract_strided_slice %50 {offsets = [0, 256], sizes = [8, 128], strides = [1, 1]} : vector<8x512xf32> to vector<8x128xf32>
    %68 = math.tanh %67 : vector<8x128xf32>
    %69 = vector.extract_strided_slice %50 {offsets = [0, 384], sizes = [8, 128], strides = [1, 1]} : vector<8x512xf32> to vector<8x128xf32>
    %cst_33 = arith.constant 5.000000e-01 : f32
    %70 = vector.broadcast %cst_33 : f32 to vector<8x128xf32>
    %71 = arith.mulf %70, %69 : vector<8x128xf32>
    %72 = math.tanh %71 : vector<8x128xf32>
    %cst_34 = arith.constant 5.000000e-01 : f32
    %73 = vector.broadcast %cst_34 : f32 to vector<8x128xf32>
    %74 = arith.mulf %73, %72 : vector<8x128xf32>
    %cst_35 = arith.constant 5.000000e-01 : f32
    %75 = vector.broadcast %cst_35 : f32 to vector<8x128xf32>
    %76 = arith.addf %75, %74 : vector<8x128xf32>
    %77 = arith.mulf %66, %42 : vector<8x128xf32>
    %78 = arith.mulf %58, %68 : vector<8x128xf32>
    %79 = arith.addf %77, %78 : vector<8x128xf32>
    %80 = math.tanh %79 : vector<8x128xf32>
    %81 = arith.mulf %76, %80 : vector<8x128xf32>
    %82 = arith.truncf %81 : vector<8x128xf32> to vector<8x128xbf16>
    %c8_36 = arith.constant 8 : index
    %c0_37 = arith.constant 0 : index
    %83 = vector.load %arg12[%c8_36, %c0_37] : memref<64x128xbf16, #tpu.memory_space<vmem>>, vector<8x128xbf16>
    tpu.vector_store %arg12[%c8_36, %c0_37], %82 {strides = array<i32>} : memref<64x128xbf16, #tpu.memory_space<vmem>>, vector<8x128xbf16>,
    %c16 = arith.constant 16 : index
    %c0_38 = arith.constant 0 : index
    %84 = vector.load %arg13[%c16, %c0_38] : memref<64x512xf32, #tpu.memory_space<vmem>>, vector<8x512xf32>
    %85 = arith.truncf %81 : vector<8x128xf32> to vector<8x128xbf16>
    %cst_39 = arith.constant dense<0.000000e+00> : vector<8x512xf32>
    %86 = tpu.matmul %85, %7, %cst_39 {dimension_numbers = #tpu.dot_dimension_numbers<[1], [0], [0], [1], [0, 0, 1, 1], [], []>} : vector<8x128xbf16>, vector<128x512xbf16>, vector<8x512xf32> -> vector<8x512xf32>
    %87 = arith.addf %84, %86 : vector<8x512xf32>
    %88 = vector.extract_strided_slice %87 {offsets = [0, 0], sizes = [8, 128], strides = [1, 1]} : vector<8x512xf32> to vector<8x128xf32>
    %cst_40 = arith.constant 5.000000e-01 : f32
    %89 = vector.broadcast %cst_40 : f32 to vector<8x128xf32>
    %90 = arith.mulf %89, %88 : vector<8x128xf32>
    %91 = math.tanh %90 : vector<8x128xf32>
    %cst_41 = arith.constant 5.000000e-01 : f32
    %92 = vector.broadcast %cst_41 : f32 to vector<8x128xf32>
    %93 = arith.mulf %92, %91 : vector<8x128xf32>
    %cst_42 = arith.constant 5.000000e-01 : f32
    %94 = vector.broadcast %cst_42 : f32 to vector<8x128xf32>
    %95 = arith.addf %94, %93 : vector<8x128xf32>
    %96 = vector.extract_strided_slice %87 {offsets = [0, 128], sizes = [8, 128], strides = [1, 1]} : vector<8x512xf32> to vector<8x128xf32>
    %cst_43 = arith.constant 5.000000e-01 : f32
    %97 = vector.broadcast %cst_43 : f32 to vector<8x128xf32>
    %98 = arith.mulf %97, %96 : vector<8x128xf32>
    %99 = math.tanh %98 : vector<8x128xf32>
    %cst_44 = arith.constant 5.000000e-01 : f32
    %100 = vector.broadcast %cst_44 : f32 to vector<8x128xf32>
    %101 = arith.mulf %100, %99 : vector<8x128xf32>
    %cst_45 = arith.constant 5.000000e-01 : f32
    %102 = vector.broadcast %cst_45 : f32 to vector<8x128xf32>
    %103 = arith.addf %102, %101 : vector<8x128xf32>
    %104 = vector.extract_strided_slice %87 {offsets = [0, 256], sizes = [8, 128], strides = [1, 1]} : vector<8x512xf32> to vector<8x128xf32>
    %105 = math.tanh %104 : vector<8x128xf32>
    %106 = vector.extract_strided_slice %87 {offsets = [0, 384], sizes = [8, 128], strides = [1, 1]} : vector<8x512xf32> to vector<8x128xf32>
    %cst_46 = arith.constant 5.000000e-01 : f32
    %107 = vector.broadcast %cst_46 : f32 to vector<8x128xf32>
    %108 = arith.mulf %107, %106 : vector<8x128xf32>
    %109 = math.tanh %108 : vector<8x128xf32>
    %cst_47 = arith.constant 5.000000e-01 : f32
    %110 = vector.broadcast %cst_47 : f32 to vector<8x128xf32>
    %111 = arith.mulf %110, %109 : vector<8x128xf32>
    %cst_48 = arith.constant 5.000000e-01 : f32
    %112 = vector.broadcast %cst_48 : f32 to vector<8x128xf32>
    %113 = arith.addf %112, %111 : vector<8x128xf32>
    %114 = arith.mulf %103, %79 : vector<8x128xf32>
    %115 = arith.mulf %95, %105 : vector<8x128xf32>
    %116 = arith.addf %114, %115 : vector<8x128xf32>
    %117 = math.tanh %116 : vector<8x128xf32>
    %118 = arith.mulf %113, %117 : vector<8x128xf32>
    %119 = arith.truncf %118 : vector<8x128xf32> to vector<8x128xbf16>
    %c16_49 = arith.constant 16 : index
    %c0_50 = arith.constant 0 : index
    %120 = vector.load %arg12[%c16_49, %c0_50] : memref<64x128xbf16, #tpu.memory_space<vmem>>, vector<8x128xbf16>
    tpu.vector_store %arg12[%c16_49, %c0_50], %119 {strides = array<i32>} : memref<64x128xbf16, #tpu.memory_space<vmem>>, vector<8x128xbf16>,
    %c24 = arith.constant 24 : index
    %c0_51 = arith.constant 0 : index
    %121 = vector.load %arg13[%c24, %c0_51] : memref<64x512xf32, #tpu.memory_space<vmem>>, vector<8x512xf32>
    %122 = arith.truncf %118 : vector<8x128xf32> to vector<8x128xbf16>
    %cst_52 = arith.constant dense<0.000000e+00> : vector<8x512xf32>
    %123 = tpu.matmul %122, %7, %cst_52 {dimension_numbers = #tpu.dot_dimension_numbers<[1], [0], [0], [1], [0, 0, 1, 1], [], []>} : vector<8x128xbf16>, vector<128x512xbf16>, vector<8x512xf32> -> vector<8x512xf32>
    %124 = arith.addf %121, %123 : vector<8x512xf32>
    %125 = vector.extract_strided_slice %124 {offsets = [0, 0], sizes = [8, 128], strides = [1, 1]} : vector<8x512xf32> to vector<8x128xf32>
    %cst_53 = arith.constant 5.000000e-01 : f32
    %126 = vector.broadcast %cst_53 : f32 to vector<8x128xf32>
    %127 = arith.mulf %126, %125 : vector<8x128xf32>
    %128 = math.tanh %127 : vector<8x128xf32>
    %cst_54 = arith.constant 5.000000e-01 : f32
    %129 = vector.broadcast %cst_54 : f32 to vector<8x128xf32>
    %130 = arith.mulf %129, %128 : vector<8x128xf32>
    %cst_55 = arith.constant 5.000000e-01 : f32
    %131 = vector.broadcast %cst_55 : f32 to vector<8x128xf32>
    %132 = arith.addf %131, %130 : vector<8x128xf32>
    %133 = vector.extract_strided_slice %124 {offsets = [0, 128], sizes = [8, 128], strides = [1, 1]} : vector<8x512xf32> to vector<8x128xf32>
    %cst_56 = arith.constant 5.000000e-01 : f32
    %134 = vector.broadcast %cst_56 : f32 to vector<8x128xf32>
    %135 = arith.mulf %134, %133 : vector<8x128xf32>
    %136 = math.tanh %135 : vector<8x128xf32>
    %cst_57 = arith.constant 5.000000e-01 : f32
    %137 = vector.broadcast %cst_57 : f32 to vector<8x128xf32>
    %138 = arith.mulf %137, %136 : vector<8x128xf32>
    %cst_58 = arith.constant 5.000000e-01 : f32
    %139 = vector.broadcast %cst_58 : f32 to vector<8x128xf32>
    %140 = arith.addf %139, %138 : vector<8x128xf32>
    %141 = vector.extract_strided_slice %124 {offsets = [0, 256], sizes = [8, 128], strides = [1, 1]} : vector<8x512xf32> to vector<8x128xf32>
    %142 = math.tanh %141 : vector<8x128xf32>
    %143 = vector.extract_strided_slice %124 {offsets = [0, 384], sizes = [8, 128], strides = [1, 1]} : vector<8x512xf32> to vector<8x128xf32>
    %cst_59 = arith.constant 5.000000e-01 : f32
    %144 = vector.broadcast %cst_59 : f32 to vector<8x128xf32>
    %145 = arith.mulf %144, %143 : vector<8x128xf32>
    %146 = math.tanh %145 : vector<8x128xf32>
    %cst_60 = arith.constant 5.000000e-01 : f32
    %147 = vector.broadcast %cst_60 : f32 to vector<8x128xf32>
    %148 = arith.mulf %147, %146 : vector<8x128xf32>
    %cst_61 = arith.constant 5.000000e-01 : f32
    %149 = vector.broadcast %cst_61 : f32 to vector<8x128xf32>
    %150 = arith.addf %149, %148 : vector<8x128xf32>
    %151 = arith.mulf %140, %116 : vector<8x128xf32>
    %152 = arith.mulf %132, %142 : vector<8x128xf32>
    %153 = arith.addf %151, %152 : vector<8x128xf32>
    %154 = math.tanh %153 : vector<8x128xf32>
    %155 = arith.mulf %150, %154 : vector<8x128xf32>
    %156 = arith.truncf %155 : vector<8x128xf32> to vector<8x128xbf16>
    %c24_62 = arith.constant 24 : index
    %c0_63 = arith.constant 0 : index
    %157 = vector.load %arg12[%c24_62, %c0_63] : memref<64x128xbf16, #tpu.memory_space<vmem>>, vector<8x128xbf16>
    tpu.vector_store %arg12[%c24_62, %c0_63], %156 {strides = array<i32>} : memref<64x128xbf16, #tpu.memory_space<vmem>>, vector<8x128xbf16>,
    %c32 = arith.constant 32 : index
    %c0_64 = arith.constant 0 : index
    %158 = vector.load %arg13[%c32, %c0_64] : memref<64x512xf32, #tpu.memory_space<vmem>>, vector<8x512xf32>
    %159 = arith.truncf %155 : vector<8x128xf32> to vector<8x128xbf16>
    %cst_65 = arith.constant dense<0.000000e+00> : vector<8x512xf32>
    %160 = tpu.matmul %159, %7, %cst_65 {dimension_numbers = #tpu.dot_dimension_numbers<[1], [0], [0], [1], [0, 0, 1, 1], [], []>} : vector<8x128xbf16>, vector<128x512xbf16>, vector<8x512xf32> -> vector<8x512xf32>
    %161 = arith.addf %158, %160 : vector<8x512xf32>
    %162 = vector.extract_strided_slice %161 {offsets = [0, 0], sizes = [8, 128], strides = [1, 1]} : vector<8x512xf32> to vector<8x128xf32>
    %cst_66 = arith.constant 5.000000e-01 : f32
    %163 = vector.broadcast %cst_66 : f32 to vector<8x128xf32>
    %164 = arith.mulf %163, %162 : vector<8x128xf32>
    %165 = math.tanh %164 : vector<8x128xf32>
    %cst_67 = arith.constant 5.000000e-01 : f32
    %166 = vector.broadcast %cst_67 : f32 to vector<8x128xf32>
    %167 = arith.mulf %166, %165 : vector<8x128xf32>
    %cst_68 = arith.constant 5.000000e-01 : f32
    %168 = vector.broadcast %cst_68 : f32 to vector<8x128xf32>
    %169 = arith.addf %168, %167 : vector<8x128xf32>
    %170 = vector.extract_strided_slice %161 {offsets = [0, 128], sizes = [8, 128], strides = [1, 1]} : vector<8x512xf32> to vector<8x128xf32>
    %cst_69 = arith.constant 5.000000e-01 : f32
    %171 = vector.broadcast %cst_69 : f32 to vector<8x128xf32>
    %172 = arith.mulf %171, %170 : vector<8x128xf32>
    %173 = math.tanh %172 : vector<8x128xf32>
    %cst_70 = arith.constant 5.000000e-01 : f32
    %174 = vector.broadcast %cst_70 : f32 to vector<8x128xf32>
    %175 = arith.mulf %174, %173 : vector<8x128xf32>
    %cst_71 = arith.constant 5.000000e-01 : f32
    %176 = vector.broadcast %cst_71 : f32 to vector<8x128xf32>
    %177 = arith.addf %176, %175 : vector<8x128xf32>
    %178 = vector.extract_strided_slice %161 {offsets = [0, 256], sizes = [8, 128], strides = [1, 1]} : vector<8x512xf32> to vector<8x128xf32>
    %179 = math.tanh %178 : vector<8x128xf32>
    %180 = vector.extract_strided_slice %161 {offsets = [0, 384], sizes = [8, 128], strides = [1, 1]} : vector<8x512xf32> to vector<8x128xf32>
    %cst_72 = arith.constant 5.000000e-01 : f32
    %181 = vector.broadcast %cst_72 : f32 to vector<8x128xf32>
    %182 = arith.mulf %181, %180 : vector<8x128xf32>
    %183 = math.tanh %182 : vector<8x128xf32>
    %cst_73 = arith.constant 5.000000e-01 : f32
    %184 = vector.broadcast %cst_73 : f32 to vector<8x128xf32>
    %185 = arith.mulf %184, %183 : vector<8x128xf32>
    %cst_74 = arith.constant 5.000000e-01 : f32
    %186 = vector.broadcast %cst_74 : f32 to vector<8x128xf32>
    %187 = arith.addf %186, %185 : vector<8x128xf32>
    %188 = arith.mulf %177, %153 : vector<8x128xf32>
    %189 = arith.mulf %169, %179 : vector<8x128xf32>
    %190 = arith.addf %188, %189 : vector<8x128xf32>
    %191 = math.tanh %190 : vector<8x128xf32>
    %192 = arith.mulf %187, %191 : vector<8x128xf32>
    %193 = arith.truncf %192 : vector<8x128xf32> to vector<8x128xbf16>
    %c32_75 = arith.constant 32 : index
    %c0_76 = arith.constant 0 : index
    %194 = vector.load %arg12[%c32_75, %c0_76] : memref<64x128xbf16, #tpu.memory_space<vmem>>, vector<8x128xbf16>
    tpu.vector_store %arg12[%c32_75, %c0_76], %193 {strides = array<i32>} : memref<64x128xbf16, #tpu.memory_space<vmem>>, vector<8x128xbf16>,
    %c40 = arith.constant 40 : index
    %c0_77 = arith.constant 0 : index
    %195 = vector.load %arg13[%c40, %c0_77] : memref<64x512xf32, #tpu.memory_space<vmem>>, vector<8x512xf32>
    %196 = arith.truncf %192 : vector<8x128xf32> to vector<8x128xbf16>
    %cst_78 = arith.constant dense<0.000000e+00> : vector<8x512xf32>
    %197 = tpu.matmul %196, %7, %cst_78 {dimension_numbers = #tpu.dot_dimension_numbers<[1], [0], [0], [1], [0, 0, 1, 1], [], []>} : vector<8x128xbf16>, vector<128x512xbf16>, vector<8x512xf32> -> vector<8x512xf32>
    %198 = arith.addf %195, %197 : vector<8x512xf32>
    %199 = vector.extract_strided_slice %198 {offsets = [0, 0], sizes = [8, 128], strides = [1, 1]} : vector<8x512xf32> to vector<8x128xf32>
    %cst_79 = arith.constant 5.000000e-01 : f32
    %200 = vector.broadcast %cst_79 : f32 to vector<8x128xf32>
    %201 = arith.mulf %200, %199 : vector<8x128xf32>
    %202 = math.tanh %201 : vector<8x128xf32>
    %cst_80 = arith.constant 5.000000e-01 : f32
    %203 = vector.broadcast %cst_80 : f32 to vector<8x128xf32>
    %204 = arith.mulf %203, %202 : vector<8x128xf32>
    %cst_81 = arith.constant 5.000000e-01 : f32
    %205 = vector.broadcast %cst_81 : f32 to vector<8x128xf32>
    %206 = arith.addf %205, %204 : vector<8x128xf32>
    %207 = vector.extract_strided_slice %198 {offsets = [0, 128], sizes = [8, 128], strides = [1, 1]} : vector<8x512xf32> to vector<8x128xf32>
    %cst_82 = arith.constant 5.000000e-01 : f32
    %208 = vector.broadcast %cst_82 : f32 to vector<8x128xf32>
    %209 = arith.mulf %208, %207 : vector<8x128xf32>
    %210 = math.tanh %209 : vector<8x128xf32>
    %cst_83 = arith.constant 5.000000e-01 : f32
    %211 = vector.broadcast %cst_83 : f32 to vector<8x128xf32>
    %212 = arith.mulf %211, %210 : vector<8x128xf32>
    %cst_84 = arith.constant 5.000000e-01 : f32
    %213 = vector.broadcast %cst_84 : f32 to vector<8x128xf32>
    %214 = arith.addf %213, %212 : vector<8x128xf32>
    %215 = vector.extract_strided_slice %198 {offsets = [0, 256], sizes = [8, 128], strides = [1, 1]} : vector<8x512xf32> to vector<8x128xf32>
    %216 = math.tanh %215 : vector<8x128xf32>
    %217 = vector.extract_strided_slice %198 {offsets = [0, 384], sizes = [8, 128], strides = [1, 1]} : vector<8x512xf32> to vector<8x128xf32>
    %cst_85 = arith.constant 5.000000e-01 : f32
    %218 = vector.broadcast %cst_85 : f32 to vector<8x128xf32>
    %219 = arith.mulf %218, %217 : vector<8x128xf32>
    %220 = math.tanh %219 : vector<8x128xf32>
    %cst_86 = arith.constant 5.000000e-01 : f32
    %221 = vector.broadcast %cst_86 : f32 to vector<8x128xf32>
    %222 = arith.mulf %221, %220 : vector<8x128xf32>
    %cst_87 = arith.constant 5.000000e-01 : f32
    %223 = vector.broadcast %cst_87 : f32 to vector<8x128xf32>
    %224 = arith.addf %223, %222 : vector<8x128xf32>
    %225 = arith.mulf %214, %190 : vector<8x128xf32>
    %226 = arith.mulf %206, %216 : vector<8x128xf32>
    %227 = arith.addf %225, %226 : vector<8x128xf32>
    %228 = math.tanh %227 : vector<8x128xf32>
    %229 = arith.mulf %224, %228 : vector<8x128xf32>
    %230 = arith.truncf %229 : vector<8x128xf32> to vector<8x128xbf16>
    %c40_88 = arith.constant 40 : index
    %c0_89 = arith.constant 0 : index
    %231 = vector.load %arg12[%c40_88, %c0_89] : memref<64x128xbf16, #tpu.memory_space<vmem>>, vector<8x128xbf16>
    tpu.vector_store %arg12[%c40_88, %c0_89], %230 {strides = array<i32>} : memref<64x128xbf16, #tpu.memory_space<vmem>>, vector<8x128xbf16>,
    %c48 = arith.constant 48 : index
    %c0_90 = arith.constant 0 : index
    %232 = vector.load %arg13[%c48, %c0_90] : memref<64x512xf32, #tpu.memory_space<vmem>>, vector<8x512xf32>
    %233 = arith.truncf %229 : vector<8x128xf32> to vector<8x128xbf16>
    %cst_91 = arith.constant dense<0.000000e+00> : vector<8x512xf32>
    %234 = tpu.matmul %233, %7, %cst_91 {dimension_numbers = #tpu.dot_dimension_numbers<[1], [0], [0], [1], [0, 0, 1, 1], [], []>} : vector<8x128xbf16>, vector<128x512xbf16>, vector<8x512xf32> -> vector<8x512xf32>
    %235 = arith.addf %232, %234 : vector<8x512xf32>
    %236 = vector.extract_strided_slice %235 {offsets = [0, 0], sizes = [8, 128], strides = [1, 1]} : vector<8x512xf32> to vector<8x128xf32>
    %cst_92 = arith.constant 5.000000e-01 : f32
    %237 = vector.broadcast %cst_92 : f32 to vector<8x128xf32>
    %238 = arith.mulf %237, %236 : vector<8x128xf32>
    %239 = math.tanh %238 : vector<8x128xf32>
    %cst_93 = arith.constant 5.000000e-01 : f32
    %240 = vector.broadcast %cst_93 : f32 to vector<8x128xf32>
    %241 = arith.mulf %240, %239 : vector<8x128xf32>
    %cst_94 = arith.constant 5.000000e-01 : f32
    %242 = vector.broadcast %cst_94 : f32 to vector<8x128xf32>
    %243 = arith.addf %242, %241 : vector<8x128xf32>
    %244 = vector.extract_strided_slice %235 {offsets = [0, 128], sizes = [8, 128], strides = [1, 1]} : vector<8x512xf32> to vector<8x128xf32>
    %cst_95 = arith.constant 5.000000e-01 : f32
    %245 = vector.broadcast %cst_95 : f32 to vector<8x128xf32>
    %246 = arith.mulf %245, %244 : vector<8x128xf32>
    %247 = math.tanh %246 : vector<8x128xf32>
    %cst_96 = arith.constant 5.000000e-01 : f32
    %248 = vector.broadcast %cst_96 : f32 to vector<8x128xf32>
    %249 = arith.mulf %248, %247 : vector<8x128xf32>
    %cst_97 = arith.constant 5.000000e-01 : f32
    %250 = vector.broadcast %cst_97 : f32 to vector<8x128xf32>
    %251 = arith.addf %250, %249 : vector<8x128xf32>
    %252 = vector.extract_strided_slice %235 {offsets = [0, 256], sizes = [8, 128], strides = [1, 1]} : vector<8x512xf32> to vector<8x128xf32>
    %253 = math.tanh %252 : vector<8x128xf32>
    %254 = vector.extract_strided_slice %235 {offsets = [0, 384], sizes = [8, 128], strides = [1, 1]} : vector<8x512xf32> to vector<8x128xf32>
    %cst_98 = arith.constant 5.000000e-01 : f32
    %255 = vector.broadcast %cst_98 : f32 to vector<8x128xf32>
    %256 = arith.mulf %255, %254 : vector<8x128xf32>
    %257 = math.tanh %256 : vector<8x128xf32>
    %cst_99 = arith.constant 5.000000e-01 : f32
    %258 = vector.broadcast %cst_99 : f32 to vector<8x128xf32>
    %259 = arith.mulf %258, %257 : vector<8x128xf32>
    %cst_100 = arith.constant 5.000000e-01 : f32
    %260 = vector.broadcast %cst_100 : f32 to vector<8x128xf32>
    %261 = arith.addf %260, %259 : vector<8x128xf32>
    %262 = arith.mulf %251, %227 : vector<8x128xf32>
    %263 = arith.mulf %243, %253 : vector<8x128xf32>
    %264 = arith.addf %262, %263 : vector<8x128xf32>
    %265 = math.tanh %264 : vector<8x128xf32>
    %266 = arith.mulf %261, %265 : vector<8x128xf32>
    %267 = arith.truncf %266 : vector<8x128xf32> to vector<8x128xbf16>
    %c48_101 = arith.constant 48 : index
    %c0_102 = arith.constant 0 : index
    %268 = vector.load %arg12[%c48_101, %c0_102] : memref<64x128xbf16, #tpu.memory_space<vmem>>, vector<8x128xbf16>
    tpu.vector_store %arg12[%c48_101, %c0_102], %267 {strides = array<i32>} : memref<64x128xbf16, #tpu.memory_space<vmem>>, vector<8x128xbf16>,
    %c56 = arith.constant 56 : index
    %c0_103 = arith.constant 0 : index
    %269 = vector.load %arg13[%c56, %c0_103] : memref<64x512xf32, #tpu.memory_space<vmem>>, vector<8x512xf32>
    %270 = arith.truncf %266 : vector<8x128xf32> to vector<8x128xbf16>
    %cst_104 = arith.constant dense<0.000000e+00> : vector<8x512xf32>
    %271 = tpu.matmul %270, %7, %cst_104 {dimension_numbers = #tpu.dot_dimension_numbers<[1], [0], [0], [1], [0, 0, 1, 1], [], []>} : vector<8x128xbf16>, vector<128x512xbf16>, vector<8x512xf32> -> vector<8x512xf32>
    %272 = arith.addf %269, %271 : vector<8x512xf32>
    %273 = vector.extract_strided_slice %272 {offsets = [0, 0], sizes = [8, 128], strides = [1, 1]} : vector<8x512xf32> to vector<8x128xf32>
    %cst_105 = arith.constant 5.000000e-01 : f32
    %274 = vector.broadcast %cst_105 : f32 to vector<8x128xf32>
    %275 = arith.mulf %274, %273 : vector<8x128xf32>
    %276 = math.tanh %275 : vector<8x128xf32>
    %cst_106 = arith.constant 5.000000e-01 : f32
    %277 = vector.broadcast %cst_106 : f32 to vector<8x128xf32>
    %278 = arith.mulf %277, %276 : vector<8x128xf32>
    %cst_107 = arith.constant 5.000000e-01 : f32
    %279 = vector.broadcast %cst_107 : f32 to vector<8x128xf32>
    %280 = arith.addf %279, %278 : vector<8x128xf32>
    %281 = vector.extract_strided_slice %272 {offsets = [0, 128], sizes = [8, 128], strides = [1, 1]} : vector<8x512xf32> to vector<8x128xf32>
    %cst_108 = arith.constant 5.000000e-01 : f32
    %282 = vector.broadcast %cst_108 : f32 to vector<8x128xf32>
    %283 = arith.mulf %282, %281 : vector<8x128xf32>
    %284 = math.tanh %283 : vector<8x128xf32>
    %cst_109 = arith.constant 5.000000e-01 : f32
    %285 = vector.broadcast %cst_109 : f32 to vector<8x128xf32>
    %286 = arith.mulf %285, %284 : vector<8x128xf32>
    %cst_110 = arith.constant 5.000000e-01 : f32
    %287 = vector.broadcast %cst_110 : f32 to vector<8x128xf32>
    %288 = arith.addf %287, %286 : vector<8x128xf32>
    %289 = vector.extract_strided_slice %272 {offsets = [0, 256], sizes = [8, 128], strides = [1, 1]} : vector<8x512xf32> to vector<8x128xf32>
    %290 = math.tanh %289 : vector<8x128xf32>
    %291 = vector.extract_strided_slice %272 {offsets = [0, 384], sizes = [8, 128], strides = [1, 1]} : vector<8x512xf32> to vector<8x128xf32>
    %cst_111 = arith.constant 5.000000e-01 : f32
    %292 = vector.broadcast %cst_111 : f32 to vector<8x128xf32>
    %293 = arith.mulf %292, %291 : vector<8x128xf32>
    %294 = math.tanh %293 : vector<8x128xf32>
    %cst_112 = arith.constant 5.000000e-01 : f32
    %295 = vector.broadcast %cst_112 : f32 to vector<8x128xf32>
    %296 = arith.mulf %295, %294 : vector<8x128xf32>
    %cst_113 = arith.constant 5.000000e-01 : f32
    %297 = vector.broadcast %cst_113 : f32 to vector<8x128xf32>
    %298 = arith.addf %297, %296 : vector<8x128xf32>
    %299 = arith.mulf %288, %264 : vector<8x128xf32>
    %300 = arith.mulf %280, %290 : vector<8x128xf32>
    %301 = arith.addf %299, %300 : vector<8x128xf32>
    %302 = math.tanh %301 : vector<8x128xf32>
    %303 = arith.mulf %298, %302 : vector<8x128xf32>
    %304 = arith.truncf %303 : vector<8x128xf32> to vector<8x128xbf16>
    %c56_114 = arith.constant 56 : index
    %c0_115 = arith.constant 0 : index
    %305 = vector.load %arg12[%c56_114, %c0_115] : memref<64x128xbf16, #tpu.memory_space<vmem>>, vector<8x128xbf16>
    tpu.vector_store %arg12[%c56_114, %c0_115], %304 {strides = array<i32>} : memref<64x128xbf16, #tpu.memory_space<vmem>>, vector<8x128xbf16>,
    %c0_116 = arith.constant 0 : index
    %c0_117 = arith.constant 0 : index
    %306 = vector.load %arg12[%c0_116, %c0_117] : memref<64x128xbf16, #tpu.memory_space<vmem>>, vector<64x128xbf16>
    %c0_118 = arith.constant 0 : index
    %c0_119 = arith.constant 0 : index
    %307 = vector.load %arg5[%c0_118, %c0_119] : memref<128x512xbf16, #tpu.memory_space<vmem>>, vector<128x512xbf16>
    %cst_120 = arith.constant dense<0.000000e+00> : vector<64x512xf32>
    %308 = tpu.matmul %306, %307, %cst_120 {dimension_numbers = #tpu.dot_dimension_numbers<[1], [0], [0], [1], [0, 0, 1, 1], [], []>} : vector<64x128xbf16>, vector<128x512xbf16>, vector<64x512xf32> -> vector<64x512xf32>
    %c0_121 = arith.constant 0 : index
    %c0_122 = arith.constant 0 : index
    %309 = vector.load %arg7[%c0_121, %c0_122] : memref<1x512xf32, #tpu.memory_space<vmem>>, vector<1x512xf32>
    %310 = vector.broadcast %309 : vector<1x512xf32> to vector<64x512xf32>
    %311 = arith.addf %308, %310 : vector<64x512xf32>
    %c0_123 = arith.constant 0 : index
    %c0_124 = arith.constant 0 : index
    %312 = vector.load %arg13[%c0_123, %c0_124] : memref<64x512xf32, #tpu.memory_space<vmem>>, vector<64x512xf32>
    tpu.vector_store %arg13[%c0_123, %c0_124], %311 {strides = array<i32>} : memref<64x512xf32, #tpu.memory_space<vmem>>, vector<64x512xf32>,
    %c0_125 = arith.constant 0 : index
    %c0_126 = arith.constant 0 : index
    %313 = vector.load %arg6[%c0_125, %c0_126] : memref<128x512xbf16, #tpu.memory_space<vmem>>, vector<128x512xbf16>
    %cst_127 = arith.constant 0.000000e+00 : f32
    %314 = vector.broadcast %cst_127 : f32 to vector<8x128xf32>
    %cst_128 = arith.constant 0.000000e+00 : f32
    %315 = vector.broadcast %cst_128 : f32 to vector<8x128xf32>
    %c0_129 = arith.constant 0 : index
    %c0_130 = arith.constant 0 : index
    %316 = vector.load %arg13[%c0_129, %c0_130] : memref<64x512xf32, #tpu.memory_space<vmem>>, vector<8x512xf32>
    %317 = arith.truncf %314 : vector<8x128xf32> to vector<8x128xbf16>
    %cst_131 = arith.constant dense<0.000000e+00> : vector<8x512xf32>
    %318 = tpu.matmul %317, %313, %cst_131 {dimension_numbers = #tpu.dot_dimension_numbers<[1], [0], [0], [1], [0, 0, 1, 1], [], []>} : vector<8x128xbf16>, vector<128x512xbf16>, vector<8x512xf32> -> vector<8x512xf32>
    %319 = arith.addf %316, %318 : vector<8x512xf32>
    %320 = vector.extract_strided_slice %319 {offsets = [0, 0], sizes = [8, 128], strides = [1, 1]} : vector<8x512xf32> to vector<8x128xf32>
    %cst_132 = arith.constant 5.000000e-01 : f32
    %321 = vector.broadcast %cst_132 : f32 to vector<8x128xf32>
    %322 = arith.mulf %321, %320 : vector<8x128xf32>
    %323 = math.tanh %322 : vector<8x128xf32>
    %cst_133 = arith.constant 5.000000e-01 : f32
    %324 = vector.broadcast %cst_133 : f32 to vector<8x128xf32>
    %325 = arith.mulf %324, %323 : vector<8x128xf32>
    %cst_134 = arith.constant 5.000000e-01 : f32
    %326 = vector.broadcast %cst_134 : f32 to vector<8x128xf32>
    %327 = arith.addf %326, %325 : vector<8x128xf32>
    %328 = vector.extract_strided_slice %319 {offsets = [0, 128], sizes = [8, 128], strides = [1, 1]} : vector<8x512xf32> to vector<8x128xf32>
    %cst_135 = arith.constant 5.000000e-01 : f32
    %329 = vector.broadcast %cst_135 : f32 to vector<8x128xf32>
    %330 = arith.mulf %329, %328 : vector<8x128xf32>
    %331 = math.tanh %330 : vector<8x128xf32>
    %cst_136 = arith.constant 5.000000e-01 : f32
    %332 = vector.broadcast %cst_136 : f32 to vector<8x128xf32>
    %333 = arith.mulf %332, %331 : vector<8x128xf32>
    %cst_137 = arith.constant 5.000000e-01 : f32
    %334 = vector.broadcast %cst_137 : f32 to vector<8x128xf32>
    %335 = arith.addf %334, %333 : vector<8x128xf32>
    %336 = vector.extract_strided_slice %319 {offsets = [0, 256], sizes = [8, 128], strides = [1, 1]} : vector<8x512xf32> to vector<8x128xf32>
    %337 = math.tanh %336 : vector<8x128xf32>
    %338 = vector.extract_strided_slice %319 {offsets = [0, 384], sizes = [8, 128], strides = [1, 1]} : vector<8x512xf32> to vector<8x128xf32>
    %cst_138 = arith.constant 5.000000e-01 : f32
    %339 = vector.broadcast %cst_138 : f32 to vector<8x128xf32>
    %340 = arith.mulf %339, %338 : vector<8x128xf32>
    %341 = math.tanh %340 : vector<8x128xf32>
    %cst_139 = arith.constant 5.000000e-01 : f32
    %342 = vector.broadcast %cst_139 : f32 to vector<8x128xf32>
    %343 = arith.mulf %342, %341 : vector<8x128xf32>
    %cst_140 = arith.constant 5.000000e-01 : f32
    %344 = vector.broadcast %cst_140 : f32 to vector<8x128xf32>
    %345 = arith.addf %344, %343 : vector<8x128xf32>
    %346 = arith.mulf %335, %315 : vector<8x128xf32>
    %347 = arith.mulf %327, %337 : vector<8x128xf32>
    %348 = arith.addf %346, %347 : vector<8x128xf32>
    %349 = math.tanh %348 : vector<8x128xf32>
    %350 = arith.mulf %345, %349 : vector<8x128xf32>
    %c8_141 = arith.constant 8 : index
    %c0_142 = arith.constant 0 : index
    %351 = vector.load %arg13[%c8_141, %c0_142] : memref<64x512xf32, #tpu.memory_space<vmem>>, vector<8x512xf32>
    %352 = arith.truncf %350 : vector<8x128xf32> to vector<8x128xbf16>
    %cst_143 = arith.constant dense<0.000000e+00> : vector<8x512xf32>
    %353 = tpu.matmul %352, %313, %cst_143 {dimension_numbers = #tpu.dot_dimension_numbers<[1], [0], [0], [1], [0, 0, 1, 1], [], []>} : vector<8x128xbf16>, vector<128x512xbf16>, vector<8x512xf32> -> vector<8x512xf32>
    %354 = arith.addf %351, %353 : vector<8x512xf32>
    %355 = vector.extract_strided_slice %354 {offsets = [0, 0], sizes = [8, 128], strides = [1, 1]} : vector<8x512xf32> to vector<8x128xf32>
    %cst_144 = arith.constant 5.000000e-01 : f32
    %356 = vector.broadcast %cst_144 : f32 to vector<8x128xf32>
    %357 = arith.mulf %356, %355 : vector<8x128xf32>
    %358 = math.tanh %357 : vector<8x128xf32>
    %cst_145 = arith.constant 5.000000e-01 : f32
    %359 = vector.broadcast %cst_145 : f32 to vector<8x128xf32>
    %360 = arith.mulf %359, %358 : vector<8x128xf32>
    %cst_146 = arith.constant 5.000000e-01 : f32
    %361 = vector.broadcast %cst_146 : f32 to vector<8x128xf32>
    %362 = arith.addf %361, %360 : vector<8x128xf32>
    %363 = vector.extract_strided_slice %354 {offsets = [0, 128], sizes = [8, 128], strides = [1, 1]} : vector<8x512xf32> to vector<8x128xf32>
    %cst_147 = arith.constant 5.000000e-01 : f32
    %364 = vector.broadcast %cst_147 : f32 to vector<8x128xf32>
    %365 = arith.mulf %364, %363 : vector<8x128xf32>
    %366 = math.tanh %365 : vector<8x128xf32>
    %cst_148 = arith.constant 5.000000e-01 : f32
    %367 = vector.broadcast %cst_148 : f32 to vector<8x128xf32>
    %368 = arith.mulf %367, %366 : vector<8x128xf32>
    %cst_149 = arith.constant 5.000000e-01 : f32
    %369 = vector.broadcast %cst_149 : f32 to vector<8x128xf32>
    %370 = arith.addf %369, %368 : vector<8x128xf32>
    %371 = vector.extract_strided_slice %354 {offsets = [0, 256], sizes = [8, 128], strides = [1, 1]} : vector<8x512xf32> to vector<8x128xf32>
    %372 = math.tanh %371 : vector<8x128xf32>
    %373 = vector.extract_strided_slice %354 {offsets = [0, 384], sizes = [8, 128], strides = [1, 1]} : vector<8x512xf32> to vector<8x128xf32>
    %cst_150 = arith.constant 5.000000e-01 : f32
    %374 = vector.broadcast %cst_150 : f32 to vector<8x128xf32>
    %375 = arith.mulf %374, %373 : vector<8x128xf32>
    %376 = math.tanh %375 : vector<8x128xf32>
    %cst_151 = arith.constant 5.000000e-01 : f32
    %377 = vector.broadcast %cst_151 : f32 to vector<8x128xf32>
    %378 = arith.mulf %377, %376 : vector<8x128xf32>
    %cst_152 = arith.constant 5.000000e-01 : f32
    %379 = vector.broadcast %cst_152 : f32 to vector<8x128xf32>
    %380 = arith.addf %379, %378 : vector<8x128xf32>
    %381 = arith.mulf %370, %348 : vector<8x128xf32>
    %382 = arith.mulf %362, %372 : vector<8x128xf32>
    %383 = arith.addf %381, %382 : vector<8x128xf32>
    %384 = math.tanh %383 : vector<8x128xf32>
    %385 = arith.mulf %380, %384 : vector<8x128xf32>
    %c16_153 = arith.constant 16 : index
    %c0_154 = arith.constant 0 : index
    %386 = vector.load %arg13[%c16_153, %c0_154] : memref<64x512xf32, #tpu.memory_space<vmem>>, vector<8x512xf32>
    %387 = arith.truncf %385 : vector<8x128xf32> to vector<8x128xbf16>
    %cst_155 = arith.constant dense<0.000000e+00> : vector<8x512xf32>
    %388 = tpu.matmul %387, %313, %cst_155 {dimension_numbers = #tpu.dot_dimension_numbers<[1], [0], [0], [1], [0, 0, 1, 1], [], []>} : vector<8x128xbf16>, vector<128x512xbf16>, vector<8x512xf32> -> vector<8x512xf32>
    %389 = arith.addf %386, %388 : vector<8x512xf32>
    %390 = vector.extract_strided_slice %389 {offsets = [0, 0], sizes = [8, 128], strides = [1, 1]} : vector<8x512xf32> to vector<8x128xf32>
    %cst_156 = arith.constant 5.000000e-01 : f32
    %391 = vector.broadcast %cst_156 : f32 to vector<8x128xf32>
    %392 = arith.mulf %391, %390 : vector<8x128xf32>
    %393 = math.tanh %392 : vector<8x128xf32>
    %cst_157 = arith.constant 5.000000e-01 : f32
    %394 = vector.broadcast %cst_157 : f32 to vector<8x128xf32>
    %395 = arith.mulf %394, %393 : vector<8x128xf32>
    %cst_158 = arith.constant 5.000000e-01 : f32
    %396 = vector.broadcast %cst_158 : f32 to vector<8x128xf32>
    %397 = arith.addf %396, %395 : vector<8x128xf32>
    %398 = vector.extract_strided_slice %389 {offsets = [0, 128], sizes = [8, 128], strides = [1, 1]} : vector<8x512xf32> to vector<8x128xf32>
    %cst_159 = arith.constant 5.000000e-01 : f32
    %399 = vector.broadcast %cst_159 : f32 to vector<8x128xf32>
    %400 = arith.mulf %399, %398 : vector<8x128xf32>
    %401 = math.tanh %400 : vector<8x128xf32>
    %cst_160 = arith.constant 5.000000e-01 : f32
    %402 = vector.broadcast %cst_160 : f32 to vector<8x128xf32>
    %403 = arith.mulf %402, %401 : vector<8x128xf32>
    %cst_161 = arith.constant 5.000000e-01 : f32
    %404 = vector.broadcast %cst_161 : f32 to vector<8x128xf32>
    %405 = arith.addf %404, %403 : vector<8x128xf32>
    %406 = vector.extract_strided_slice %389 {offsets = [0, 256], sizes = [8, 128], strides = [1, 1]} : vector<8x512xf32> to vector<8x128xf32>
    %407 = math.tanh %406 : vector<8x128xf32>
    %408 = vector.extract_strided_slice %389 {offsets = [0, 384], sizes = [8, 128], strides = [1, 1]} : vector<8x512xf32> to vector<8x128xf32>
    %cst_162 = arith.constant 5.000000e-01 : f32
    %409 = vector.broadcast %cst_162 : f32 to vector<8x128xf32>
    %410 = arith.mulf %409, %408 : vector<8x128xf32>
    %411 = math.tanh %410 : vector<8x128xf32>
    %cst_163 = arith.constant 5.000000e-01 : f32
    %412 = vector.broadcast %cst_163 : f32 to vector<8x128xf32>
    %413 = arith.mulf %412, %411 : vector<8x128xf32>
    %cst_164 = arith.constant 5.000000e-01 : f32
    %414 = vector.broadcast %cst_164 : f32 to vector<8x128xf32>
    %415 = arith.addf %414, %413 : vector<8x128xf32>
    %416 = arith.mulf %405, %383 : vector<8x128xf32>
    %417 = arith.mulf %397, %407 : vector<8x128xf32>
    %418 = arith.addf %416, %417 : vector<8x128xf32>
    %419 = math.tanh %418 : vector<8x128xf32>
    %420 = arith.mulf %415, %419 : vector<8x128xf32>
    %c24_165 = arith.constant 24 : index
    %c0_166 = arith.constant 0 : index
    %421 = vector.load %arg13[%c24_165, %c0_166] : memref<64x512xf32, #tpu.memory_space<vmem>>, vector<8x512xf32>
    %422 = arith.truncf %420 : vector<8x128xf32> to vector<8x128xbf16>
    %cst_167 = arith.constant dense<0.000000e+00> : vector<8x512xf32>
    %423 = tpu.matmul %422, %313, %cst_167 {dimension_numbers = #tpu.dot_dimension_numbers<[1], [0], [0], [1], [0, 0, 1, 1], [], []>} : vector<8x128xbf16>, vector<128x512xbf16>, vector<8x512xf32> -> vector<8x512xf32>
    %424 = arith.addf %421, %423 : vector<8x512xf32>
    %425 = vector.extract_strided_slice %424 {offsets = [0, 0], sizes = [8, 128], strides = [1, 1]} : vector<8x512xf32> to vector<8x128xf32>
    %cst_168 = arith.constant 5.000000e-01 : f32
    %426 = vector.broadcast %cst_168 : f32 to vector<8x128xf32>
    %427 = arith.mulf %426, %425 : vector<8x128xf32>
    %428 = math.tanh %427 : vector<8x128xf32>
    %cst_169 = arith.constant 5.000000e-01 : f32
    %429 = vector.broadcast %cst_169 : f32 to vector<8x128xf32>
    %430 = arith.mulf %429, %428 : vector<8x128xf32>
    %cst_170 = arith.constant 5.000000e-01 : f32
    %431 = vector.broadcast %cst_170 : f32 to vector<8x128xf32>
    %432 = arith.addf %431, %430 : vector<8x128xf32>
    %433 = vector.extract_strided_slice %424 {offsets = [0, 128], sizes = [8, 128], strides = [1, 1]} : vector<8x512xf32> to vector<8x128xf32>
    %cst_171 = arith.constant 5.000000e-01 : f32
    %434 = vector.broadcast %cst_171 : f32 to vector<8x128xf32>
    %435 = arith.mulf %434, %433 : vector<8x128xf32>
    %436 = math.tanh %435 : vector<8x128xf32>
    %cst_172 = arith.constant 5.000000e-01 : f32
    %437 = vector.broadcast %cst_172 : f32 to vector<8x128xf32>
    %438 = arith.mulf %437, %436 : vector<8x128xf32>
    %cst_173 = arith.constant 5.000000e-01 : f32
    %439 = vector.broadcast %cst_173 : f32 to vector<8x128xf32>
    %440 = arith.addf %439, %438 : vector<8x128xf32>
    %441 = vector.extract_strided_slice %424 {offsets = [0, 256], sizes = [8, 128], strides = [1, 1]} : vector<8x512xf32> to vector<8x128xf32>
    %442 = math.tanh %441 : vector<8x128xf32>
    %443 = vector.extract_strided_slice %424 {offsets = [0, 384], sizes = [8, 128], strides = [1, 1]} : vector<8x512xf32> to vector<8x128xf32>
    %cst_174 = arith.constant 5.000000e-01 : f32
    %444 = vector.broadcast %cst_174 : f32 to vector<8x128xf32>
    %445 = arith.mulf %444, %443 : vector<8x128xf32>
    %446 = math.tanh %445 : vector<8x128xf32>
    %cst_175 = arith.constant 5.000000e-01 : f32
    %447 = vector.broadcast %cst_175 : f32 to vector<8x128xf32>
    %448 = arith.mulf %447, %446 : vector<8x128xf32>
    %cst_176 = arith.constant 5.000000e-01 : f32
    %449 = vector.broadcast %cst_176 : f32 to vector<8x128xf32>
    %450 = arith.addf %449, %448 : vector<8x128xf32>
    %451 = arith.mulf %440, %418 : vector<8x128xf32>
    %452 = arith.mulf %432, %442 : vector<8x128xf32>
    %453 = arith.addf %451, %452 : vector<8x128xf32>
    %454 = math.tanh %453 : vector<8x128xf32>
    %455 = arith.mulf %450, %454 : vector<8x128xf32>
    %c32_177 = arith.constant 32 : index
    %c0_178 = arith.constant 0 : index
    %456 = vector.load %arg13[%c32_177, %c0_178] : memref<64x512xf32, #tpu.memory_space<vmem>>, vector<8x512xf32>
    %457 = arith.truncf %455 : vector<8x128xf32> to vector<8x128xbf16>
    %cst_179 = arith.constant dense<0.000000e+00> : vector<8x512xf32>
    %458 = tpu.matmul %457, %313, %cst_179 {dimension_numbers = #tpu.dot_dimension_numbers<[1], [0], [0], [1], [0, 0, 1, 1], [], []>} : vector<8x128xbf16>, vector<128x512xbf16>, vector<8x512xf32> -> vector<8x512xf32>
    %459 = arith.addf %456, %458 : vector<8x512xf32>
    %460 = vector.extract_strided_slice %459 {offsets = [0, 0], sizes = [8, 128], strides = [1, 1]} : vector<8x512xf32> to vector<8x128xf32>
    %cst_180 = arith.constant 5.000000e-01 : f32
    %461 = vector.broadcast %cst_180 : f32 to vector<8x128xf32>
    %462 = arith.mulf %461, %460 : vector<8x128xf32>
    %463 = math.tanh %462 : vector<8x128xf32>
    %cst_181 = arith.constant 5.000000e-01 : f32
    %464 = vector.broadcast %cst_181 : f32 to vector<8x128xf32>
    %465 = arith.mulf %464, %463 : vector<8x128xf32>
    %cst_182 = arith.constant 5.000000e-01 : f32
    %466 = vector.broadcast %cst_182 : f32 to vector<8x128xf32>
    %467 = arith.addf %466, %465 : vector<8x128xf32>
    %468 = vector.extract_strided_slice %459 {offsets = [0, 128], sizes = [8, 128], strides = [1, 1]} : vector<8x512xf32> to vector<8x128xf32>
    %cst_183 = arith.constant 5.000000e-01 : f32
    %469 = vector.broadcast %cst_183 : f32 to vector<8x128xf32>
    %470 = arith.mulf %469, %468 : vector<8x128xf32>
    %471 = math.tanh %470 : vector<8x128xf32>
    %cst_184 = arith.constant 5.000000e-01 : f32
    %472 = vector.broadcast %cst_184 : f32 to vector<8x128xf32>
    %473 = arith.mulf %472, %471 : vector<8x128xf32>
    %cst_185 = arith.constant 5.000000e-01 : f32
    %474 = vector.broadcast %cst_185 : f32 to vector<8x128xf32>
    %475 = arith.addf %474, %473 : vector<8x128xf32>
    %476 = vector.extract_strided_slice %459 {offsets = [0, 256], sizes = [8, 128], strides = [1, 1]} : vector<8x512xf32> to vector<8x128xf32>
    %477 = math.tanh %476 : vector<8x128xf32>
    %478 = vector.extract_strided_slice %459 {offsets = [0, 384], sizes = [8, 128], strides = [1, 1]} : vector<8x512xf32> to vector<8x128xf32>
    %cst_186 = arith.constant 5.000000e-01 : f32
    %479 = vector.broadcast %cst_186 : f32 to vector<8x128xf32>
    %480 = arith.mulf %479, %478 : vector<8x128xf32>
    %481 = math.tanh %480 : vector<8x128xf32>
    %cst_187 = arith.constant 5.000000e-01 : f32
    %482 = vector.broadcast %cst_187 : f32 to vector<8x128xf32>
    %483 = arith.mulf %482, %481 : vector<8x128xf32>
    %cst_188 = arith.constant 5.000000e-01 : f32
    %484 = vector.broadcast %cst_188 : f32 to vector<8x128xf32>
    %485 = arith.addf %484, %483 : vector<8x128xf32>
    %486 = arith.mulf %475, %453 : vector<8x128xf32>
    %487 = arith.mulf %467, %477 : vector<8x128xf32>
    %488 = arith.addf %486, %487 : vector<8x128xf32>
    %489 = math.tanh %488 : vector<8x128xf32>
    %490 = arith.mulf %485, %489 : vector<8x128xf32>
    %c40_189 = arith.constant 40 : index
    %c0_190 = arith.constant 0 : index
    %491 = vector.load %arg13[%c40_189, %c0_190] : memref<64x512xf32, #tpu.memory_space<vmem>>, vector<8x512xf32>
    %492 = arith.truncf %490 : vector<8x128xf32> to vector<8x128xbf16>
    %cst_191 = arith.constant dense<0.000000e+00> : vector<8x512xf32>
    %493 = tpu.matmul %492, %313, %cst_191 {dimension_numbers = #tpu.dot_dimension_numbers<[1], [0], [0], [1], [0, 0, 1, 1], [], []>} : vector<8x128xbf16>, vector<128x512xbf16>, vector<8x512xf32> -> vector<8x512xf32>
    %494 = arith.addf %491, %493 : vector<8x512xf32>
    %495 = vector.extract_strided_slice %494 {offsets = [0, 0], sizes = [8, 128], strides = [1, 1]} : vector<8x512xf32> to vector<8x128xf32>
    %cst_192 = arith.constant 5.000000e-01 : f32
    %496 = vector.broadcast %cst_192 : f32 to vector<8x128xf32>
    %497 = arith.mulf %496, %495 : vector<8x128xf32>
    %498 = math.tanh %497 : vector<8x128xf32>
    %cst_193 = arith.constant 5.000000e-01 : f32
    %499 = vector.broadcast %cst_193 : f32 to vector<8x128xf32>
    %500 = arith.mulf %499, %498 : vector<8x128xf32>
    %cst_194 = arith.constant 5.000000e-01 : f32
    %501 = vector.broadcast %cst_194 : f32 to vector<8x128xf32>
    %502 = arith.addf %501, %500 : vector<8x128xf32>
    %503 = vector.extract_strided_slice %494 {offsets = [0, 128], sizes = [8, 128], strides = [1, 1]} : vector<8x512xf32> to vector<8x128xf32>
    %cst_195 = arith.constant 5.000000e-01 : f32
    %504 = vector.broadcast %cst_195 : f32 to vector<8x128xf32>
    %505 = arith.mulf %504, %503 : vector<8x128xf32>
    %506 = math.tanh %505 : vector<8x128xf32>
    %cst_196 = arith.constant 5.000000e-01 : f32
    %507 = vector.broadcast %cst_196 : f32 to vector<8x128xf32>
    %508 = arith.mulf %507, %506 : vector<8x128xf32>
    %cst_197 = arith.constant 5.000000e-01 : f32
    %509 = vector.broadcast %cst_197 : f32 to vector<8x128xf32>
    %510 = arith.addf %509, %508 : vector<8x128xf32>
    %511 = vector.extract_strided_slice %494 {offsets = [0, 256], sizes = [8, 128], strides = [1, 1]} : vector<8x512xf32> to vector<8x128xf32>
    %512 = math.tanh %511 : vector<8x128xf32>
    %513 = vector.extract_strided_slice %494 {offsets = [0, 384], sizes = [8, 128], strides = [1, 1]} : vector<8x512xf32> to vector<8x128xf32>
    %cst_198 = arith.constant 5.000000e-01 : f32
    %514 = vector.broadcast %cst_198 : f32 to vector<8x128xf32>
    %515 = arith.mulf %514, %513 : vector<8x128xf32>
    %516 = math.tanh %515 : vector<8x128xf32>
    %cst_199 = arith.constant 5.000000e-01 : f32
    %517 = vector.broadcast %cst_199 : f32 to vector<8x128xf32>
    %518 = arith.mulf %517, %516 : vector<8x128xf32>
    %cst_200 = arith.constant 5.000000e-01 : f32
    %519 = vector.broadcast %cst_200 : f32 to vector<8x128xf32>
    %520 = arith.addf %519, %518 : vector<8x128xf32>
    %521 = arith.mulf %510, %488 : vector<8x128xf32>
    %522 = arith.mulf %502, %512 : vector<8x128xf32>
    %523 = arith.addf %521, %522 : vector<8x128xf32>
    %524 = math.tanh %523 : vector<8x128xf32>
    %525 = arith.mulf %520, %524 : vector<8x128xf32>
    %c48_201 = arith.constant 48 : index
    %c0_202 = arith.constant 0 : index
    %526 = vector.load %arg13[%c48_201, %c0_202] : memref<64x512xf32, #tpu.memory_space<vmem>>, vector<8x512xf32>
    %527 = arith.truncf %525 : vector<8x128xf32> to vector<8x128xbf16>
    %cst_203 = arith.constant dense<0.000000e+00> : vector<8x512xf32>
    %528 = tpu.matmul %527, %313, %cst_203 {dimension_numbers = #tpu.dot_dimension_numbers<[1], [0], [0], [1], [0, 0, 1, 1], [], []>} : vector<8x128xbf16>, vector<128x512xbf16>, vector<8x512xf32> -> vector<8x512xf32>
    %529 = arith.addf %526, %528 : vector<8x512xf32>
    %530 = vector.extract_strided_slice %529 {offsets = [0, 0], sizes = [8, 128], strides = [1, 1]} : vector<8x512xf32> to vector<8x128xf32>
    %cst_204 = arith.constant 5.000000e-01 : f32
    %531 = vector.broadcast %cst_204 : f32 to vector<8x128xf32>
    %532 = arith.mulf %531, %530 : vector<8x128xf32>
    %533 = math.tanh %532 : vector<8x128xf32>
    %cst_205 = arith.constant 5.000000e-01 : f32
    %534 = vector.broadcast %cst_205 : f32 to vector<8x128xf32>
    %535 = arith.mulf %534, %533 : vector<8x128xf32>
    %cst_206 = arith.constant 5.000000e-01 : f32
    %536 = vector.broadcast %cst_206 : f32 to vector<8x128xf32>
    %537 = arith.addf %536, %535 : vector<8x128xf32>
    %538 = vector.extract_strided_slice %529 {offsets = [0, 128], sizes = [8, 128], strides = [1, 1]} : vector<8x512xf32> to vector<8x128xf32>
    %cst_207 = arith.constant 5.000000e-01 : f32
    %539 = vector.broadcast %cst_207 : f32 to vector<8x128xf32>
    %540 = arith.mulf %539, %538 : vector<8x128xf32>
    %541 = math.tanh %540 : vector<8x128xf32>
    %cst_208 = arith.constant 5.000000e-01 : f32
    %542 = vector.broadcast %cst_208 : f32 to vector<8x128xf32>
    %543 = arith.mulf %542, %541 : vector<8x128xf32>
    %cst_209 = arith.constant 5.000000e-01 : f32
    %544 = vector.broadcast %cst_209 : f32 to vector<8x128xf32>
    %545 = arith.addf %544, %543 : vector<8x128xf32>
    %546 = vector.extract_strided_slice %529 {offsets = [0, 256], sizes = [8, 128], strides = [1, 1]} : vector<8x512xf32> to vector<8x128xf32>
    %547 = math.tanh %546 : vector<8x128xf32>
    %548 = vector.extract_strided_slice %529 {offsets = [0, 384], sizes = [8, 128], strides = [1, 1]} : vector<8x512xf32> to vector<8x128xf32>
    %cst_210 = arith.constant 5.000000e-01 : f32
    %549 = vector.broadcast %cst_210 : f32 to vector<8x128xf32>
    %550 = arith.mulf %549, %548 : vector<8x128xf32>
    %551 = math.tanh %550 : vector<8x128xf32>
    %cst_211 = arith.constant 5.000000e-01 : f32
    %552 = vector.broadcast %cst_211 : f32 to vector<8x128xf32>
    %553 = arith.mulf %552, %551 : vector<8x128xf32>
    %cst_212 = arith.constant 5.000000e-01 : f32
    %554 = vector.broadcast %cst_212 : f32 to vector<8x128xf32>
    %555 = arith.addf %554, %553 : vector<8x128xf32>
    %556 = arith.mulf %545, %523 : vector<8x128xf32>
    %557 = arith.mulf %537, %547 : vector<8x128xf32>
    %558 = arith.addf %556, %557 : vector<8x128xf32>
    %559 = math.tanh %558 : vector<8x128xf32>
    %560 = arith.mulf %555, %559 : vector<8x128xf32>
    %c56_213 = arith.constant 56 : index
    %c0_214 = arith.constant 0 : index
    %561 = vector.load %arg13[%c56_213, %c0_214] : memref<64x512xf32, #tpu.memory_space<vmem>>, vector<8x512xf32>
    %562 = arith.truncf %560 : vector<8x128xf32> to vector<8x128xbf16>
    %cst_215 = arith.constant dense<0.000000e+00> : vector<8x512xf32>
    %563 = tpu.matmul %562, %313, %cst_215 {dimension_numbers = #tpu.dot_dimension_numbers<[1], [0], [0], [1], [0, 0, 1, 1], [], []>} : vector<8x128xbf16>, vector<128x512xbf16>, vector<8x512xf32> -> vector<8x512xf32>
    %564 = arith.addf %561, %563 : vector<8x512xf32>
    %565 = vector.extract_strided_slice %564 {offsets = [0, 0], sizes = [8, 128], strides = [1, 1]} : vector<8x512xf32> to vector<8x128xf32>
    %cst_216 = arith.constant 5.000000e-01 : f32
    %566 = vector.broadcast %cst_216 : f32 to vector<8x128xf32>
    %567 = arith.mulf %566, %565 : vector<8x128xf32>
    %568 = math.tanh %567 : vector<8x128xf32>
    %cst_217 = arith.constant 5.000000e-01 : f32
    %569 = vector.broadcast %cst_217 : f32 to vector<8x128xf32>
    %570 = arith.mulf %569, %568 : vector<8x128xf32>
    %cst_218 = arith.constant 5.000000e-01 : f32
    %571 = vector.broadcast %cst_218 : f32 to vector<8x128xf32>
    %572 = arith.addf %571, %570 : vector<8x128xf32>
    %573 = vector.extract_strided_slice %564 {offsets = [0, 128], sizes = [8, 128], strides = [1, 1]} : vector<8x512xf32> to vector<8x128xf32>
    %cst_219 = arith.constant 5.000000e-01 : f32
    %574 = vector.broadcast %cst_219 : f32 to vector<8x128xf32>
    %575 = arith.mulf %574, %573 : vector<8x128xf32>
    %576 = math.tanh %575 : vector<8x128xf32>
    %cst_220 = arith.constant 5.000000e-01 : f32
    %577 = vector.broadcast %cst_220 : f32 to vector<8x128xf32>
    %578 = arith.mulf %577, %576 : vector<8x128xf32>
    %cst_221 = arith.constant 5.000000e-01 : f32
    %579 = vector.broadcast %cst_221 : f32 to vector<8x128xf32>
    %580 = arith.addf %579, %578 : vector<8x128xf32>
    %581 = vector.extract_strided_slice %564 {offsets = [0, 256], sizes = [8, 128], strides = [1, 1]} : vector<8x512xf32> to vector<8x128xf32>
    %582 = math.tanh %581 : vector<8x128xf32>
    %583 = vector.extract_strided_slice %564 {offsets = [0, 384], sizes = [8, 128], strides = [1, 1]} : vector<8x512xf32> to vector<8x128xf32>
    %cst_222 = arith.constant 5.000000e-01 : f32
    %584 = vector.broadcast %cst_222 : f32 to vector<8x128xf32>
    %585 = arith.mulf %584, %583 : vector<8x128xf32>
    %586 = math.tanh %585 : vector<8x128xf32>
    %cst_223 = arith.constant 5.000000e-01 : f32
    %587 = vector.broadcast %cst_223 : f32 to vector<8x128xf32>
    %588 = arith.mulf %587, %586 : vector<8x128xf32>
    %cst_224 = arith.constant 5.000000e-01 : f32
    %589 = vector.broadcast %cst_224 : f32 to vector<8x128xf32>
    %590 = arith.addf %589, %588 : vector<8x128xf32>
    %591 = arith.mulf %580, %558 : vector<8x128xf32>
    %592 = arith.mulf %572, %582 : vector<8x128xf32>
    %593 = arith.addf %591, %592 : vector<8x128xf32>
    %594 = math.tanh %593 : vector<8x128xf32>
    %595 = arith.mulf %590, %594 : vector<8x128xf32>
    %596 = vector.extract_strided_slice %595 {offsets = [0, 0], sizes = [2, 128], strides = [1, 1]} : vector<8x128xf32> to vector<2x128xf32>
    %c0_225 = arith.constant 0 : index
    %c0_226 = arith.constant 0 : index
    %597 = vector.load %arg8[%c0_225, %c0_226] : memref<1x128xf32, #tpu.memory_space<vmem>>, vector<1x128xf32>
    %598 = vector.broadcast %597 : vector<1x128xf32> to vector<2x128xf32>
    %599 = arith.mulf %596, %598 : vector<2x128xf32>
    %cst_227 = arith.constant dense<0.000000e+00> : vector<2xf32>
    %600 = vector.multi_reduction <add>, %599, %cst_227 [1] : vector<2x128xf32> to vector<2xf32>
    %601 = vector.shape_cast %600 : vector<2xf32> to vector<2x1xf32>
    %c0_228 = arith.constant 0 : index
    %c0_229 = arith.constant 0 : index
    %602 = vector.load %arg1[%c0_228, %c0_229] : memref<2x4xf32, #tpu.memory_space<vmem>>, vector<2x4xf32>
    %c0_230 = arith.constant 0 : index
    %c0_231 = arith.constant 0 : index
    %603 = vector.load %arg9[%c0_230, %c0_231] : memref<1x4xf32, #tpu.memory_space<vmem>>, vector<1x4xf32>
    %604 = vector.broadcast %603 : vector<1x4xf32> to vector<2x4xf32>
    %605 = arith.mulf %602, %604 : vector<2x4xf32>
    %cst_232 = arith.constant dense<0.000000e+00> : vector<2xf32>
    %606 = vector.multi_reduction <add>, %605, %cst_232 [1] : vector<2x4xf32> to vector<2xf32>
    %607 = vector.shape_cast %606 : vector<2xf32> to vector<2x1xf32>
    %608 = arith.addf %601, %607 : vector<2x1xf32>
    %c0_233 = arith.constant 0 : index
    %c0_234 = arith.constant 0 : index
    %609 = vector.load %arg10[%c0_233, %c0_234] : memref<1x1xf32, #tpu.memory_space<vmem>>, vector<1x1xf32>
    %610 = vector.broadcast %609 : vector<1x1xf32> to vector<2x1xf32>
    %611 = arith.addf %608, %610 : vector<2x1xf32>
    %c0_235 = arith.constant 0 : index
    %c0_236 = arith.constant 0 : index
    %612 = vector.load %arg11[%c0_235, %c0_236] : memref<2x1xf32, #tpu.memory_space<vmem>>, vector<2x1xf32>
    tpu.vector_store %arg11[%c0_235, %c0_236], %611 {strides = array<i32>} : memref<2x1xf32, #tpu.memory_space<vmem>>, vector<2x1xf32>,
    return
  }
}

</mosaic_0001>

<bundles_post_ra>
// kernel: tpu_custom_call.1
= control target key start
LH: loop header
LB: loop body
LE: loop exit
PB: predicated region body
PF: predicated region fallthrough
CT: control target
= control target key end

     0   :  { %s5061_s0 = inlined_call_operand.hbm [shape: bf16[64,128], index: 0, kind: input, shape index: {}]   ;;  %s5062_s1 = inlined_call_operand.vmem [shape: f32[2,4], index: 1, kind: input, shape index: {}]   ;;  %s5063_s2 = inlined_call_operand.hbm [shape: bf16[128,512], index: 2, kind: input, shape index: {}]   ;;  %s5064_s3 = inlined_call_operand.hbm [shape: bf16[128,512], index: 3, kind: input, shape index: {}]   ;;  %s5065_s4 = inlined_call_operand.vmem [shape: f32[1,512], index: 4, kind: input, shape index: {}]   ;;  %s5066_s5 = inlined_call_operand.hbm [shape: bf16[128,512], index: 5, kind: input, shape index: {}]   ;;  %s5067_s6 = inlined_call_operand.hbm [shape: bf16[128,512], index: 6, kind: input, shape index: {}]   ;;  %s5068_s7 = inlined_call_operand.vmem [shape: f32[1,512], index: 7, kind: input, shape index: {}]   ;;  %s5069_s8 = inlined_call_operand.vmem [shape: f32[1,128], index: 8, kind: input, shape index: {}]   ;;  %s5070_s9 = inlined_call_operand.vmem [shape: f32[1,4], index: 9, kind: input, shape index: {}]   ;;  %s5071_s10 = inlined_call_operand.<no memory space> [shape: f32[1,1], index: 10, kind: input, shape index: {}]   ;;  %s5072_s11 = inlined_call_operand.vmem [shape: f32[2,1], index: 11, kind: output, shape index: {}]  }
   0x1   :  { %v16_v0 = vstv %s5071_s10 }
   0x2   :  { %17 = vst [vmem:[#allocation4] sm:$0x1] %v16_v0 }
   0x3   :  { %18 = vsyncpa [#allocation6], 0 }
   0x4   :  { %19 = vsyncpa [#allocation8], 0 }
   0x5   :  { %20 = vsyncpa [#allocation11], 0  ;;  %s3800_s19 = smov [#allocation7]   ;;  %s3684_s23 = scalar_lea.hbm %s5063_s2, 4096 }
   0x6   :  { %s40_s20 = sshll.u32 %s3800_s19, 4  ;;  %p3685_p0 = scmp.ne.s32.totalorder %s5063_s2, %s3684_s23  ;;  %s41_s20 = int_to_ptr.vmem [resolvable:$true] %s40_s20 }
   0x7   :  { %p3688_p1 = scmp.lt.u32.totalorder %s3684_s23, %s5063_s2 }
   0x9   :  { %p3690_p2 = pnand %p3688_p1, %p3685_p0 }
   0xb   :  { %3693 = shalt.err (!%p3690_p2)
}
   0xc   :  { %s3694_s10 = scalar_lea.vmem %s41_s20, 4096  ;;  %p3699_p4 = scmp.lt.s32.totalorder %s41_s20, %s41_s20 }
   0xd   :  { %p3695_p3 = scmp.ne.s32.totalorder %s41_s20, %s3694_s10  ;;  %p3700_p5 = scmp.lt.s32.totalorder %s3694_s10, %s3694_s10 }
   0xf   :  { %p3701_p6 = por %p3700_p5, %p3699_p4 }
  0x11   :  { %p3702_p7 = pnand %p3701_p6, %p3695_p3 }
  0x13   :  { %3705 = shalt.err (!%p3702_p7)
}
  0x14   :  { %s3801_s28 = smov 256   ;;  %s3802_s29 = smov 16  }
  0x15   :  { %46 = dma.hbm_to_vmem [thread:$0]  %s5063_s2, 4096, %s41_s20, [#allocation8], %s3801_s28, %s3801_s28, %s3802_s29  }
  0x16   :  { %s3803_s13 = smov [#allocation10]   ;;  %s3804_s15 = smov [#allocation5]  }
  0x17   :  { %s66_s14 = sshll.u32 %s3803_s13, 4  ;;  %s26_s16 = sshll.u32 %s3804_s15, 4  ;;  %s67_s14 = int_to_ptr.vmem [resolvable:$true] %s66_s14  ;;  %s27_s16 = int_to_ptr.vmem [resolvable:$true] %s26_s16 }
  0x18   :  { %s3706_s19 = scalar_lea.hbm %s5066_s5, 4096 }
  0x19   :  { %p3707_p8 = scmp.ne.s32.totalorder %s5066_s5, %s3706_s19  ;;  %p3710_p9 = scmp.lt.u32.totalorder %s3706_s19, %s5066_s5 }
  0x1b   :  { %p3712_p10 = pnand %p3710_p9, %p3707_p8 }
  0x1d   :  { %3715 = shalt.err (!%p3712_p10)
}
  0x1e   :  { %s3716_s2 = scalar_lea.vmem %s67_s14, 4096  ;;  %p3721_p12 = scmp.lt.s32.totalorder %s67_s14, %s67_s14 }
  0x1f   :  { %p3717_p11 = scmp.ne.s32.totalorder %s67_s14, %s3716_s2  ;;  %p3722_p13 = scmp.lt.s32.totalorder %s3716_s2, %s3716_s2 }
  0x21   :  { %p3723_p0 = por %p3722_p13, %p3721_p12 }
  0x23   :  { %p3724_p1 = pnand %p3723_p0, %p3717_p11 }
  0x25   :  { %3727 = shalt.err (!%p3724_p1)
}
  0x26   :  { %72 = dma.hbm_to_vmem [thread:$0]  %s5066_s5, 4096, %s67_s14, [#allocation11], %s3801_s28, %s3801_s28, %s3802_s29  }
  0x27   :  { %s3728_s10 = scalar_lea.hbm %s5061_s0, 512 }
  0x28   :  { %p3729_p2 = scmp.ne.s32.totalorder %s5061_s0, %s3728_s10  ;;  %p3732_p3 = scmp.lt.u32.totalorder %s3728_s10, %s5061_s0 }
  0x2a   :  { %p3734_p4 = pnand %p3732_p3, %p3729_p2 }
  0x2c   :  { %3737 = shalt.err (!%p3734_p4)
}
  0x2d   :  { %s3738_s17 = scalar_lea.vmem %s27_s16, 512  ;;  %p3743_p6 = scmp.lt.s32.totalorder %s27_s16, %s27_s16 }
  0x2e   :  { %p3739_p5 = scmp.ne.s32.totalorder %s27_s16, %s3738_s17  ;;  %p3744_p7 = scmp.lt.s32.totalorder %s3738_s17, %s3738_s17 }
  0x30   :  { %p3745_p8 = por %p3744_p7, %p3743_p6 }
  0x32   :  { %p3746_p9 = pnand %p3745_p8, %p3739_p5 }
  0x34   :  { %3749 = shalt.err (!%p3746_p9)
}
  0x35   :  { %s3805_s5 = smov 64   ;;  %s3806_s14 = smov 4  }
  0x36   :  { %32 = dma.hbm_to_vmem [thread:$0]  %s5061_s0, 512, %s27_s16, [#allocation6], %s3805_s5, %s3805_s5, %s3806_s14  }
  0x37   :  { %s3807_s21 = smov [#allocation9]   ;;  %s3808_s23 = smov [#allocation12]  }
  0x38   :  { %s52_s22 = sshll.u32 %s3807_s21, 4  ;;  %s78_s24 = sshll.u32 %s3808_s23, 4  ;;  %s53_s22 = int_to_ptr.vmem [resolvable:$true] %s52_s22  ;;  %s79_s24 = int_to_ptr.vmem [resolvable:$true] %s78_s24 }
  0x39   :  { %s3750_s25 = scalar_lea.hbm %s5064_s3, 4096 }
  0x3a   :  { %p3751_p10 = scmp.ne.s32.totalorder %s5064_s3, %s3750_s25  ;;  %p3754_p11 = scmp.lt.u32.totalorder %s3750_s25, %s5064_s3 }
  0x3c   :  { %p3756_p12 = pnand %p3754_p11, %p3751_p10 }
  0x3e   :  { %3759 = shalt.err (!%p3756_p12)
}
  0x3f   :  { %s3760_s0 = scalar_lea.vmem %s53_s22, 4096  ;;  %p3765_p0 = scmp.lt.s32.totalorder %s53_s22, %s53_s22 }
  0x40   :  { %p3761_p13 = scmp.ne.s32.totalorder %s53_s22, %s3760_s0  ;;  %p3766_p1 = scmp.lt.s32.totalorder %s3760_s0, %s3760_s0 }
  0x42   :  { %p3767_p2 = por %p3766_p1, %p3765_p0 }
  0x44   :  { %p3768_p3 = pnand %p3767_p2, %p3761_p13 }
  0x46   :  { %3771 = shalt.err (!%p3768_p3)
}
  0x47   :  { %58 = dma.hbm_to_vmem [thread:$0]  %s5064_s3, 4096, %s53_s22, [#allocation8], %s3801_s28, %s3801_s28, %s3802_s29  }
  0x48   :  { %s3772_s17 = scalar_lea.hbm %s5067_s6, 4096 }
  0x49   :  { %p3773_p4 = scmp.ne.s32.totalorder %s5067_s6, %s3772_s17  ;;  %p3776_p5 = scmp.lt.u32.totalorder %s3772_s17, %s5067_s6 }
  0x4b   :  { %p3778_p6 = pnand %p3776_p5, %p3773_p4 }
  0x4d   :  { %3781 = shalt.err (!%p3778_p6)
}
  0x4e   :  { %s3782_s21 = scalar_lea.vmem %s79_s24, 4096  ;;  %p3787_p8 = scmp.lt.s32.totalorder %s79_s24, %s79_s24 }
  0x4f   :  { %p3783_p7 = scmp.ne.s32.totalorder %s79_s24, %s3782_s21  ;;  %p3788_p9 = scmp.lt.s32.totalorder %s3782_s21, %s3782_s21 }
  0x51   :  { %p3789_p10 = por %p3788_p9, %p3787_p8 }
  0x53   :  { %p3790_p11 = pnand %p3789_p10, %p3783_p7 }
  0x55   :  { %3793 = shalt.err (!%p3790_p11)
}
  0x56   :  { %84 = dma.hbm_to_vmem [thread:$0]  %s5067_s6, 4096, %s79_s24, [#allocation11], %s3801_s28, %s3801_s28, %s3802_s29  }
  0x57   :  { %3794 = dma.done.wait [#allocation6], 512  }
  0x58   :  { %3795 = vsyncadd [#allocation6], 4294966784 }
  0x59   :  { %3796 = dma.done.wait [#allocation8], 8192  }
  0x5a   :  { %3797 = vsyncadd [#allocation8], 4294959104 }
  0x5b   :  { %3798 = dma.done.wait [#allocation11], 8192  }
  0x5c   :  { %3799 = vsyncadd [#allocation11], 4294959104  ;;  %v5077_v1 = vmov 0   ;;  %v3264_v2 = vld [vmem:[#allocation7 + $0x4] ss:$16 sps:$4 sm:$0xff]   ;;  %v3325_v45 = vld [vmem:[#allocation5 + $0x8] sm:$0xff]  }
  0x5d   :  { %387 = vmatprep.mubr.bf16.mxu0 %v5077_v1  ;;  %460 = vmatprep.mubr.bf16.mxu1 %v5077_v1  ;;  %v3266_v3 = vld [vmem:[#allocation7 + $0xc] ss:$16 sps:$4 sm:$0xff]   ;;  %v3268_v4 = vld [vmem:[#allocation7] ss:$16 sps:$4 sm:$0xff]   ;;  %v3269_v5 = vld [vmem:[#allocation7 + $0x8] ss:$16 sps:$4 sm:$0xff]  }
  0x5e   :  { %355 = vmatprep.subr.bf16.mxu0 %v3264_v2  ;;  %428 = vmatprep.subr.bf16.mxu1 %v3266_v3  ;;  %v3270_v6 = vld [vmem:[#allocation7 + $0x24] ss:$16 sps:$4 sm:$0xff]   ;;  %v3272_v7 = vld [vmem:[#allocation7 + $0x2c] ss:$16 sps:$4 sm:$0xff]   ;;  %v3274_v8 = vld [vmem:[#allocation7 + $0x20] ss:$16 sps:$4 sm:$0xff]  }
  0x5f   :  { %356 = vmatpush1.bf16.msra.mxu0 %v3268_v4  ;;  %429 = vmatpush1.bf16.msra.mxu1 %v3269_v5  ;;  %v3275_v9 = vld [vmem:[#allocation7 + $0x28] ss:$16 sps:$4 sm:$0xff]   ;;  %v3276_v10 = vld [vmem:[#allocation7 + $0x44] ss:$16 sps:$4 sm:$0xff]   ;;  %v3278_v11 = vld [vmem:[#allocation7 + $0x4c] ss:$16 sps:$4 sm:$0xff]  }
  0x60   :  { %357 = vmatprep.subr.bf16.mxu0 %v3270_v6  ;;  %430 = vmatprep.subr.bf16.mxu1 %v3272_v7  ;;  %v3280_v12 = vld [vmem:[#allocation7 + $0x40] ss:$16 sps:$4 sm:$0xff]   ;;  %v3281_v13 = vld [vmem:[#allocation7 + $0x48] ss:$16 sps:$4 sm:$0xff]   ;;  %v3282_v14 = vld [vmem:[#allocation7 + $0x64] ss:$16 sps:$4 sm:$0xff]   ;;  %v151_v7 = vlaneseq }
  0x61   :  { %v3284_v15 = vld [vmem:[#allocation7 + $0x6c] ss:$16 sps:$4 sm:$0xff]   ;;  %v3286_v16 = vld [vmem:[#allocation7 + $0x60] ss:$16 sps:$4 sm:$0xff]   ;;  %v3287_v17 = vld [vmem:[#allocation7 + $0x68] ss:$16 sps:$4 sm:$0xff]  }
  0x62   :  { %v3288_v18 = vld [vmem:[#allocation7 + $0x84] ss:$16 sps:$4 sm:$0xff]   ;;  %v3290_v19 = vld [vmem:[#allocation7 + $0x8c] ss:$16 sps:$4 sm:$0xff]   ;;  %v3292_v20 = vld [vmem:[#allocation7 + $0x80] ss:$16 sps:$4 sm:$0xff]  }
  0x63   :  { %358 = vmatpush1.bf16.msra.mxu0 %v3274_v8  ;;  %431 = vmatpush1.bf16.msra.mxu1 %v3275_v9  ;;  %v3293_v21 = vld [vmem:[#allocation7 + $0x88] ss:$16 sps:$4 sm:$0xff]   ;;  %v3294_v22 = vld [vmem:[#allocation7 + $0xa4] ss:$16 sps:$4 sm:$0xff]   ;;  %v3296_v23 = vld [vmem:[#allocation7 + $0xac] ss:$16 sps:$4 sm:$0xff]  }
  0x64   :  { %359 = vmatprep.subr.bf16.mxu0 %v3276_v10  ;;  %432 = vmatprep.subr.bf16.mxu1 %v3278_v11  ;;  %v3298_v24 = vld [vmem:[#allocation7 + $0xa0] ss:$16 sps:$4 sm:$0xff]   ;;  %v3299_v25 = vld [vmem:[#allocation7 + $0xa8] ss:$16 sps:$4 sm:$0xff]   ;;  %v3300_v26 = vld [vmem:[#allocation7 + $0xc4] ss:$16 sps:$4 sm:$0xff]  }
  0x65   :  { %v3302_v27 = vld [vmem:[#allocation7 + $0xcc] ss:$16 sps:$4 sm:$0xff]   ;;  %v3304_v28 = vld [vmem:[#allocation7 + $0xc0] ss:$16 sps:$4 sm:$0xff]   ;;  %v3305_v29 = vld [vmem:[#allocation7 + $0xc8] ss:$16 sps:$4 sm:$0xff]  }
  0x66   :  { %v3306_v30 = vld [vmem:[#allocation7 + $0xe4] ss:$16 sps:$4 sm:$0xff]   ;;  %v3308_v31 = vld [vmem:[#allocation7 + $0xec] ss:$16 sps:$4 sm:$0xff]   ;;  %v3310_v32 = vld [vmem:[#allocation7 + $0xe0] ss:$16 sps:$4 sm:$0xff]  }
  0x67   :  { %360 = vmatpush1.bf16.msra.mxu0 %v3280_v12  ;;  %433 = vmatpush1.bf16.msra.mxu1 %v3281_v13  ;;  %v3311_v33 = vld [vmem:[#allocation7 + $0xe8] ss:$16 sps:$4 sm:$0xff]   ;;  %v3947_v34 = vld [vmem:[#allocation9 + $0x4] ss:$16 sps:$4 sm:$0xff]   ;;  %v3949_v35 = vld [vmem:[#allocation9 + $0xc] ss:$16 sps:$4 sm:$0xff]  }
  0x68   :  { %361 = vmatprep.subr.bf16.mxu0 %v3282_v14  ;;  %434 = vmatprep.subr.bf16.mxu1 %v3284_v15  ;;  %v3312_v36 = vld [vmem:[#allocation5] sm:$0xff]   ;;  %v3953_v38 = vld [vmem:[#allocation9 + $0x8] ss:$16 sps:$4 sm:$0xff]   ;;  %v3959_v40 = vld [vmem:[#allocation9 + $0x2c] ss:$16 sps:$4 sm:$0xff]   ;;  %v4089_v8 = vshrl.u32 %v151_v7, 7 }
  0x69   :  { %v3951_v37 = vld [vmem:[#allocation9] ss:$16 sps:$4 sm:$0xff]   ;;  %v3957_v39 = vld [vmem:[#allocation9 + $0x24] ss:$16 sps:$4 sm:$0xff]   ;;  %v3965_v42 = vld [vmem:[#allocation9 + $0x28] ss:$16 sps:$4 sm:$0xff]  }
  0x6a   :  { %v3961_v41 = vld [vmem:[#allocation9 + $0x20] ss:$16 sps:$4 sm:$0xff]   ;;  %v3969_v43 = vld [vmem:[#allocation9 + $0x44] ss:$16 sps:$4 sm:$0xff]   ;;  %v3971_v44 = vld [vmem:[#allocation9 + $0x4c] ss:$16 sps:$4 sm:$0xff]  }
  0x6b   :  { %362 = vmatpush1.bf16.msra.mxu0 %v3286_v16  ;;  %435 = vmatpush1.bf16.msra.mxu1 %v3287_v17  ;;  %v3975_v46 = vld [vmem:[#allocation9 + $0x40] ss:$16 sps:$4 sm:$0xff]   ;;  %v3977_v47 = vld [vmem:[#allocation9 + $0x48] ss:$16 sps:$4 sm:$0xff]   ;;  %v3981_v48 = vld [vmem:[#allocation9 + $0x64] ss:$16 sps:$4 sm:$0xff]  }
  0x6c   :  { %363 = vmatprep.subr.bf16.mxu0 %v3288_v18  ;;  %436 = vmatprep.subr.bf16.mxu1 %v3290_v19  ;;  %v3985_v49 = vld [vmem:[#allocation9 + $0x6c] ss:$16 sps:$4 sm:$0xff]   ;;  %v3987_v50 = vld [vmem:[#allocation9 + $0x60] ss:$16 sps:$4 sm:$0xff]   ;;  %v3989_v51 = vld [vmem:[#allocation9 + $0x68] ss:$16 sps:$4 sm:$0xff]  }
  0x6d   :  { %v3993_v52 = vld [vmem:[#allocation9 + $0x84] ss:$16 sps:$4 sm:$0xff]   ;;  %v3997_v53 = vld [vmem:[#allocation9 + $0x8c] ss:$16 sps:$4 sm:$0xff]   ;;  %v4001_v55 = vld [vmem:[#allocation9 + $0x80] ss:$16 sps:$4 sm:$0xff]  }
  0x6e   :  { %v3338_v54 = vld [vmem:[#allocation5 + $0x10] sm:$0xff]   ;;  %v4003_v56 = vld [vmem:[#allocation9 + $0x88] ss:$16 sps:$4 sm:$0xff]   ;;  %v4007_v58 = vld [vmem:[#allocation9 + $0xac] ss:$16 sps:$4 sm:$0xff]   ;;  %5081 = vst [vmem:[#allocation16_spill] sm:$0xff] %v4089_v8 }
  0x6f   :  { %364 = vmatpush1.bf16.msra.mxu0 %v3292_v20  ;;  %437 = vmatpush1.bf16.msra.mxu1 %v3293_v21  ;;  %v4005_v57 = vld [vmem:[#allocation9 + $0xa4] ss:$16 sps:$4 sm:$0xff]   ;;  %v4013_v59 = vld [vmem:[#allocation9 + $0xa0] ss:$16 sps:$4 sm:$0xff]   ;;  %v4015_v60 = vld [vmem:[#allocation9 + $0xa8] ss:$16 sps:$4 sm:$0xff]  }
  0x70   :  { %365 = vmatprep.subr.bf16.mxu0 %v3294_v22  ;;  %438 = vmatprep.subr.bf16.mxu1 %v3296_v23  ;;  %v4017_v61 = vld [vmem:[#allocation9 + $0xc4] ss:$16 sps:$4 sm:$0xff]   ;;  %v4019_v62 = vld [vmem:[#allocation9 + $0xcc] ss:$16 sps:$4 sm:$0xff]   ;;  %v4027_v0 = vld [vmem:[#allocation9 + $0xc0] ss:$16 sps:$4 sm:$0xff]  }
  0x71   :  { %v3351_v63 = vld [vmem:[#allocation5 + $0x18] sm:$0xff]   ;;  %v4031_v3 = vld [vmem:[#allocation9 + $0xe4] ss:$16 sps:$4 sm:$0xff]   ;;  %v4039_v5 = vld [vmem:[#allocation9 + $0xe0] ss:$16 sps:$4 sm:$0xff]   ;;  %v5075_v9 = vsub.s32 2, %v4089_v8 }
  0x72   :  { %v4029_v2 = vld [vmem:[#allocation9 + $0xc8] ss:$16 sps:$4 sm:$0xff]   ;;  %v4033_v4 = vld [vmem:[#allocation9 + $0xec] ss:$16 sps:$4 sm:$0xff]   ;;  %v5073_v10 = vsub.s32 3, %v4089_v8  ;;  %v5076_v11 = vsub.s32 0, %v4089_v8 }
  0x73   :  { %366 = vmatpush1.bf16.msra.mxu0 %v3298_v24  ;;  %439 = vmatpush1.bf16.msra.mxu1 %v3299_v25  ;;  %v4041_v6 = vld [vmem:[#allocation9 + $0xe8] ss:$16 sps:$4 sm:$0xff]   ;;  %v149_v12 = vld [vmem:[%s5065_s4] sm:$0xf]  ;;  %v5074_v13 = vsub.s32 1, %v4089_v8  ;;  %vm3084_vm0 = vcmask 1041408  }
  0x74   :  { %367 = vmatprep.subr.bf16.mxu0 %v3300_v26  ;;  %440 = vmatprep.subr.bf16.mxu1 %v3302_v27  ;;  %v4100_v14 = vrot.slane %v149_v12, %v5075_v9  ;;  %v4108_v17 = vrot.slane %v149_v12, %v5073_v10  ;;  %v154_v18 = vrot.slane %v149_v12, %v5076_v11  ;;  %vm3097_vm1 = vcmask 25600  }
  0x75   :  { %v158_v21 = vrot.slane %v149_v12, %v5074_v13  ;;  %vm3110_vm2 = vcmask 1024  }
  0x77   :  { %368 = vmatpush1.bf16.msra.mxu0 %v3304_v28  ;;  %441 = vmatpush1.bf16.msra.mxu1 %v3305_v29 }
  0x78   :  { %369 = vmatprep.subr.bf16.mxu0 %v3306_v30  ;;  %442 = vmatprep.subr.bf16.mxu1 %v3308_v31 }
  0x7b   :  { %370 = vmatpush1.bf16.msra.mxu0 %v3310_v32  ;;  %443 = vmatpush1.bf16.msra.mxu1 %v3311_v33 }
  0x7c   :  { %729 = vmatprep.subr.bf16.mxu0 %v3947_v34  ;;  %770 = vmatprep.subr.bf16.mxu1 %v3949_v35 }
  0x7e   :  { %388 = vmatmul.mubr.bf16.vlgmr.msra.gmra.mrb[0].mxu0 %v3312_v36  ;;  %461 = vmatmul.mubr.bf16.vlgmr.msra.gmra.mrb[0].mxu1 %v3312_v36 }
  0x7f   :  { %730 = vmatpush1.bf16.msra.mxu0 %v3951_v37  ;;  %771 = vmatpush1.bf16.msra.mxu1 %v3953_v38 }
  0x80   :  { %731 = vmatprep.subr.bf16.mxu0 %v3957_v39  ;;  %772 = vmatprep.subr.bf16.mxu1 %v3959_v40 }
  0x81   :  { %397 = vmatprep.mubr.bf16.mxu0 %v5077_v1  ;;  %470 = vmatprep.mubr.bf16.mxu1 %v5077_v1 }
  0x83   :  { %732 = vmatpush1.bf16.msra.mxu0 %v3961_v41  ;;  %773 = vmatpush1.bf16.msra.mxu1 %v3965_v42 }
  0x84   :  { %733 = vmatprep.subr.bf16.mxu0 %v3969_v43  ;;  %774 = vmatprep.subr.bf16.mxu1 %v3971_v44 }
  0x86   :  { %398 = vmatmul.mubr.bf16.gmra.mrb[4].mxu0 %v3325_v45  ;;  %471 = vmatmul.mubr.bf16.gmra.mrb[4].mxu1 %v3325_v45 }
  0x87   :  { %734 = vmatpush1.bf16.msra.mxu0 %v3975_v46  ;;  %775 = vmatpush1.bf16.msra.mxu1 %v3977_v47 }
  0x88   :  { %735 = vmatprep.subr.bf16.mxu0 %v3981_v48  ;;  %776 = vmatprep.subr.bf16.mxu1 %v3985_v49 }
  0x89   :  { %407 = vmatprep.mubr.bf16.mxu0 %v5077_v1  ;;  %480 = vmatprep.mubr.bf16.mxu1 %v5077_v1 }
  0x8b   :  { %736 = vmatpush1.bf16.msra.mxu0 %v3987_v50  ;;  %777 = vmatpush1.bf16.msra.mxu1 %v3989_v51 }
  0x8c   :  { %737 = vmatprep.subr.bf16.mxu0 %v3993_v52  ;;  %778 = vmatprep.subr.bf16.mxu1 %v3997_v53 }
  0x8e   :  { %408 = vmatmul.mubr.bf16.gmra.mrb[8].mxu0 %v3338_v54  ;;  %481 = vmatmul.mubr.bf16.gmra.mrb[8].mxu1 %v3338_v54 }
  0x8f   :  { %738 = vmatpush1.bf16.msra.mxu0 %v4001_v55  ;;  %779 = vmatpush1.bf16.msra.mxu1 %v4003_v56 }
  0x90   :  { %739 = vmatprep.subr.bf16.mxu0 %v4005_v57  ;;  %780 = vmatprep.subr.bf16.mxu1 %v4007_v58 }
  0x91   :  { %417 = vmatprep.mubr.bf16.mxu0 %v5077_v1  ;;  %490 = vmatprep.mubr.bf16.mxu1 %v5077_v1 }
  0x93   :  { %740 = vmatpush1.bf16.msra.mxu0 %v4013_v59  ;;  %781 = vmatpush1.bf16.msra.mxu1 %v4015_v60 }
  0x94   :  { %741 = vmatprep.subr.bf16.mxu0 %v4017_v61  ;;  %782 = vmatprep.subr.bf16.mxu1 %v4019_v62 }
  0x96   :  { %418 = vmatmul.mubr.bf16.gmra.mrb[12].mxu0 %v3351_v63  ;;  %491 = vmatmul.mubr.bf16.gmra.mrb[12].mxu1 %v3351_v63 }
  0x97   :  { %742 = vmatpush1.bf16.msra.mxu0 %v4027_v0  ;;  %783 = vmatpush1.bf16.msra.mxu1 %v4029_v2 }
  0x98   :  { %743 = vmatprep.subr.bf16.mxu0 %v4031_v3  ;;  %784 = vmatprep.subr.bf16.mxu1 %v4033_v4 }
  0x99   :  { %761 = vmatprep.mubr.bf16.mxu0 %v5077_v1  ;;  %802 = vmatprep.mubr.bf16.mxu1 %v5077_v1 }
  0x9b   :  { %744 = vmatpush1.bf16.msra.mxu0 %v4039_v5  ;;  %785 = vmatpush1.bf16.msra.mxu1 %v4041_v6 }
  0x9c   :  { %839 = vmatprep.subr.bf16.mxu0 %v3947_v34  ;;  %880 = vmatprep.subr.bf16.mxu1 %v3949_v35 }
  0x9e   :  { %762 = vmatmul.mubr.bf16.vlgmr.msra.gmra.mrb[16].mxu0 %v5077_v1  ;;  %803 = vmatmul.mubr.bf16.vlgmr.msra.gmra.mrb[16].mxu1 %v5077_v1 }
  0x9f   :  { %840 = vmatpush1.bf16.msra.mxu0 %v3951_v37  ;;  %881 = vmatpush1.bf16.msra.mxu1 %v3953_v38 }
  0xa0   :  { %841 = vmatprep.subr.bf16.mxu0 %v3957_v39  ;;  %882 = vmatprep.subr.bf16.mxu1 %v3959_v40 }
  0xa1   :  { %871 = vmatprep.mubr.bf16.mxu0 %v5077_v1  ;;  %912 = vmatprep.mubr.bf16.mxu1 %v5077_v1 }
  0xa3   :  { %842 = vmatpush1.bf16.msra.mxu0 %v3961_v41  ;;  %883 = vmatpush1.bf16.msra.mxu1 %v3965_v42 }
  0xa4   :  { %843 = vmatprep.subr.bf16.mxu0 %v3969_v43  ;;  %884 = vmatprep.subr.bf16.mxu1 %v3971_v44 }
  0xa7   :  { %844 = vmatpush1.bf16.msra.mxu0 %v3975_v46  ;;  %885 = vmatpush1.bf16.msra.mxu1 %v3977_v47 }
  0xa8   :  { %845 = vmatprep.subr.bf16.mxu0 %v3981_v48  ;;  %886 = vmatprep.subr.bf16.mxu1 %v3985_v49 }
  0xab   :  { %846 = vmatpush1.bf16.msra.mxu0 %v3987_v50  ;;  %887 = vmatpush1.bf16.msra.mxu1 %v3989_v51 }
  0xac   :  { %847 = vmatprep.subr.bf16.mxu0 %v3993_v52  ;;  %888 = vmatprep.subr.bf16.mxu1 %v3997_v53 }
  0xaf   :  { %848 = vmatpush1.bf16.msra.mxu0 %v4001_v55  ;;  %889 = vmatpush1.bf16.msra.mxu1 %v4003_v56 }
  0xb0   :  { %849 = vmatprep.subr.bf16.mxu0 %v4005_v57  ;;  %890 = vmatprep.subr.bf16.mxu1 %v4007_v58 }
  0xb3   :  { %850 = vmatpush1.bf16.msra.mxu0 %v4013_v59  ;;  %891 = vmatpush1.bf16.msra.mxu1 %v4015_v60 }
  0xb4   :  { %851 = vmatprep.subr.bf16.mxu0 %v4017_v61  ;;  %892 = vmatprep.subr.bf16.mxu1 %v4019_v62 }
  0xb7   :  { %852 = vmatpush1.bf16.msra.mxu0 %v4027_v0  ;;  %893 = vmatpush1.bf16.msra.mxu1 %v4029_v2 }
  0xb8   :  { %853 = vmatprep.subr.bf16.mxu0 %v4031_v3  ;;  %894 = vmatprep.subr.bf16.mxu1 %v4033_v4 }
  0xbb   :  { %854 = vmatpush1.bf16.msra.mxu0 %v4039_v5  ;;  %895 = vmatpush1.bf16.msra.mxu1 %v4041_v6 }
  0xbc   :  { %952 = vmatprep.subr.bf16.mxu0 %v3947_v34  ;;  %993 = vmatprep.subr.bf16.mxu1 %v3949_v35 }
 0x151   :  { %v4102_v15 = vpop.f32.mrb[0].mxu0  ;;  %v4104_v16 = vpop.f32.mrb[0].mxu1 }
 0x152   :  { %v391_v19 = vpop.f32.mrb[1].mxu0  ;;  %v464_v20 = vpop.f32.mrb[1].mxu1 }
 0x153   :  { %v393_v22 = vpop.f32.mrb[2].mxu0  ;;  %v466_v23 = vpop.f32.mrb[2].mxu1 }
 0x154   :  { %v4114_v24 = vadd.f32 %v393_v22, %v154_v18  ;;  %v395_v25 = vpop.f32.mrb[3].mxu0  ;;  %v4117_v26 = vadd.f32 %v466_v23, %v4100_v14  ;;  %v468_v27 = vpop.f32.mrb[3].mxu1 }
 0x155   :  { %v4119_v28 = vadd.f32 %v395_v25, %v158_v21  ;;  %v4122_v29 = vadd.f32 %v468_v27, %v4108_v17 }
 0x159   :  { %v399_v30 = vpop.f32.mrb[4].mxu0  ;;  %v472_v31 = vpop.f32.mrb[4].mxu1 }
 0x15a   :  { %v4124_v32 = vadd.f32 %v399_v30, %v154_v18  ;;  %v401_v33 = vpop.f32.mrb[5].mxu0  ;;  %v4127_v36 = vadd.f32 %v472_v31, %v4100_v14  ;;  %v474_v45 = vpop.f32.mrb[5].mxu1 }
 0x15b   :  { %v4129_v54 = vadd.f32 %v401_v33, %v158_v21  ;;  %v403_v63 = vpop.f32.mrb[6].mxu0  ;;  %v4132_v7 = vadd.f32 %v474_v45, %v4108_v17  ;;  %v476_v12 = vpop.f32.mrb[6].mxu1 }
 0x15c   :  { %v4134_v22 = vadd.f32 %v403_v63, %v154_v18  ;;  %v405_v23 = vpop.f32.mrb[7].mxu0  ;;  %v4137_v25 = vadd.f32 %v476_v12, %v4100_v14  ;;  %v478_v27 = vpop.f32.mrb[7].mxu1 }
 0x15d   :  { %5082 = vst [vmem:[#allocation17_spill] sm:$0xff] %v4132_v7  ;;  %v4139_v30 = vadd.f32 %v405_v23, %v158_v21  ;;  %v4142_v31 = vadd.f32 %v478_v27, %v4108_v17 }
 0x15e   :  { %5083 = vst [vmem:[#allocation18_spill] sm:$0xff] %v4134_v22  ;;  %5084 = vst [vmem:[#allocation19_spill] sm:$0xff] %v4137_v25 }
 0x15f   :  { %5085 = vst [vmem:[#allocation20_spill] sm:$0xff] %v4139_v30  ;;  %5086 = vst [vmem:[#allocation21_spill] sm:$0xff] %v4142_v31 }
 0x161   :  { %v409_v10 = vpop.f32.mrb[8].mxu0  ;;  %v482_v33 = vpop.f32.mrb[8].mxu1 }
 0x162   :  { %v4144_v13 = vadd.f32 %v409_v10, %v154_v18  ;;  %v411_v9 = vpop.f32.mrb[9].mxu0  ;;  %v4147_v45 = vadd.f32 %v482_v33, %v4100_v14  ;;  %v484_v63 = vpop.f32.mrb[9].mxu1 }
 0x163   :  { %v4149_v11 = vadd.f32 %v411_v9, %v158_v21  ;;  %v413_v1 = vpop.f32.mrb[10].mxu0  ;;  %v4152_v12 = vadd.f32 %v484_v63, %v4108_v17  ;;  %v486_v23 = vpop.f32.mrb[10].mxu1 }
 0x164   :  { %5087 = vst [vmem:[#allocation22_spill] sm:$0xff] %v4144_v13  ;;  %5088 = vst [vmem:[#allocation23_spill] sm:$0xff] %v4147_v45  ;;  %v4154_v8 = vadd.f32 %v413_v1, %v154_v18  ;;  %v415_v27 = vpop.f32.mrb[11].mxu0  ;;  %v4157_v31 = vadd.f32 %v486_v23, %v4100_v14  ;;  %v488_v10 = vpop.f32.mrb[11].mxu1 }
 0x165   :  { %5089 = vst [vmem:[#allocation24_spill] sm:$0xff] %v4149_v11  ;;  %5090 = vst [vmem:[#allocation25_spill] sm:$0xff] %v4152_v12  ;;  %v4159_v13 = vadd.f32 %v415_v27, %v158_v21  ;;  %v4162_v33 = vadd.f32 %v488_v10, %v4108_v17 }
 0x166   :  { %5091 = vst [vmem:[#allocation26_spill] sm:$0xff] %v4154_v8  ;;  %5092 = vst [vmem:[#allocation27_spill] sm:$0xff] %v4157_v31 }
 0x167   :  { %5093 = vst [vmem:[#allocation28_spill] sm:$0xff] %v4159_v13  ;;  %5094 = vst [vmem:[#allocation29_spill] sm:$0xff] %v4162_v33 }
 0x169   :  { %v419_v45 = vpop.f32.mrb[12].mxu0  ;;  %v492_v9 = vpop.f32.mrb[12].mxu1 }
 0x16a   :  { %v4164_v11 = vadd.f32 %v419_v45, %v154_v18  ;;  %v421_v30 = vpop.f32.mrb[13].mxu0  ;;  %v4167_v63 = vadd.f32 %v492_v9, %v4100_v14  ;;  %v494_v1 = vpop.f32.mrb[13].mxu1 }
 0x16b   :  { %v4169_v8 = vadd.f32 %v421_v30, %v158_v21  ;;  %v423_v12 = vpop.f32.mrb[14].mxu0  ;;  %v4172_v23 = vadd.f32 %v494_v1, %v4108_v17  ;;  %v496_v27 = vpop.f32.mrb[14].mxu1  ;;  %v390_v30 = vadd.f32 %v4102_v15, %v154_v18  ;;  %v392_v1 = vadd.f32 %v391_v19, %v158_v21 }
 0x16c   :  { %5095 = vst [vmem:[#allocation30_spill] sm:$0xff] %v4164_v11  ;;  %5096 = vst [vmem:[#allocation31_spill] sm:$0xff] %v4167_v63  ;;  %v4174_v13 = vadd.f32 %v423_v12, %v154_v18  ;;  %v425_v10 = vpop.f32.mrb[15].mxu0  ;;  %v4177_v33 = vadd.f32 %v496_v27, %v4100_v14  ;;  %v498_v45 = vpop.f32.mrb[15].mxu1 }
 0x16d   :  { %5097 = vst [vmem:[#allocation32_spill] sm:$0xff] %v4169_v8  ;;  %5098 = vst [vmem:[#allocation33_spill] sm:$0xff] %v4172_v23  ;;  %v4179_v11 = vadd.f32 %v425_v10, %v158_v21  ;;  %v4182_v9 = vadd.f32 %v498_v45, %v4108_v17  ;;  %v463_v8 = vadd.f32 %v4104_v16, %v4100_v14 }
 0x16e   :  { %5099 = vst [vmem:[#allocation34_spill] sm:$0xff] %v4174_v13  ;;  %5100 = vst [vmem:[#allocation35_spill] sm:$0xff] %v4177_v33  ;;  %v465_v23 = vadd.f32 %v464_v20, %v4108_v17 }
 0x16f   :  { %5101 = vst [vmem:[#allocation36_spill] sm:$0xff] %v4179_v11  ;;  %5102 = vst [vmem:[#allocation37_spill] sm:$0xff] %v4182_v9 }
 0x171   :  { %v763_v12 = vpop.f32.mrb[16].mxu0  ;;  %v804_v13 = vpop.f32.mrb[16].mxu1 }
 0x172   :  { %v811_v63 = vadd.f32 %v763_v12, %v390_v30  ;;  %v813_v31 = vadd.f32 %v804_v13, %v463_v8  ;;  %v765_v27 = vpop.f32.mrb[17].mxu0  ;;  %v806_v33 = vpop.f32.mrb[17].mxu1 }
 0x173   :  { %v812_v25 = vadd.f32 %v765_v27, %v392_v1  ;;  %v814_v10 = vadd.f32 %v806_v33, %v465_v23  ;;  %v767_v11 = vpop.f32.mrb[18].mxu0  ;;  %v808_v22 = vpop.f32.mrb[18].mxu1 }
 0x174   :  { %v815_v45 = vmul.f32 0.5, %v811_v63  ;;  %v768_v9 = vpop.f32.mrb[19].mxu0  ;;  %v809_v7 = vpop.f32.mrb[19].mxu1 }
 0x175   :  { %v819_v15 = vmul.f32 0.5, %v812_v25  ;;  %v824_v14 = vmul.f32 0.5, %v814_v10  ;;  %v5103_v9 = vmov 0  }
 0x176   :  { %3460 = vtanh.f32 %v815_v45 }
 0x177   :  { %3462 = vtanh.f32 %v819_v15 }
 0x178   :  { %3464 = vtanh.f32 %v813_v31 }
 0x179   :  { %3466 = vtanh.f32 %v824_v14 }
 0x180   :  { %v3461_v16 = vpop.eup %3460 }
 0x181   :  { %v3463_v17 = vpop.eup %3462  ;;  %v817_v18 = vmul.f32 0.5, %v3461_v16 }
 0x182   :  { %v821_v19 = vmul.f32 0.5, %v3463_v17  ;;  %v3465_v13 = vpop.eup %3464 }
 0x183   :  { %v818_v8 = vadd.f32 0.5, %v817_v18  ;;  %v3467_v7 = vpop.eup %3466 }
 0x184   :  { %v822_v20 = vadd.f32 0.5, %v821_v19  ;;  %v826_v22 = vmul.f32 0.5, %v3467_v7 }
 0x185   :  { %v829_v21 = vmul.f32 %v3465_v13, %v818_v8 }
 0x186   :  { %v828_v33 = vmul.f32 0.0, %v822_v20  ;;  %v827_v25 = vadd.f32 0.5, %v826_v22 }
 0x188   :  { %v4188_v11 = vadd.f32 %v829_v21, %v828_v33 }
 0x18a   :  { %3468 = vtanh.f32 %v4188_v11 }
 0x194   :  { %v3469_v63 = vpop.eup %3468 }
 0x195   :  { %v832_v31 = vmul.f32 %v3469_v63, %v827_v25 }
 0x197   :  { %v833_v23 = vpack.c.bf16 %v832_v31, %v832_v31 }
 0x199   :  { %834 = vst [vmem:[#allocation2] sm:$0xf] %v833_v23  ;;  %872 = vmatmul.mubr.bf16.vlgmr.msra.gmra.mrb[20].mxu0 %v833_v23  ;;  %913 = vmatmul.mubr.bf16.vlgmr.msra.gmra.mrb[20].mxu1 %v833_v23 }
 0x19a   :  { %953 = vmatpush1.bf16.msra.mxu0 %v3951_v37  ;;  %994 = vmatpush1.bf16.msra.mxu1 %v3953_v38 }
 0x19b   :  { %954 = vmatprep.subr.bf16.mxu0 %v3957_v39  ;;  %995 = vmatprep.subr.bf16.mxu1 %v3959_v40 }
 0x19c   :  { %984 = vmatprep.mubr.bf16.mxu0 %v5103_v9  ;;  %1025 = vmatprep.mubr.bf16.mxu1 %v5103_v9 }
 0x19e   :  { %955 = vmatpush1.bf16.msra.mxu0 %v3961_v41  ;;  %996 = vmatpush1.bf16.msra.mxu1 %v3965_v42 }
 0x19f   :  { %956 = vmatprep.subr.bf16.mxu0 %v3969_v43  ;;  %997 = vmatprep.subr.bf16.mxu1 %v3971_v44 }
 0x1a2   :  { %957 = vmatpush1.bf16.msra.mxu0 %v3975_v46  ;;  %998 = vmatpush1.bf16.msra.mxu1 %v3977_v47 }
 0x1a3   :  { %958 = vmatprep.subr.bf16.mxu0 %v3981_v48  ;;  %999 = vmatprep.subr.bf16.mxu1 %v3985_v49 }
 0x1a6   :  { %959 = vmatpush1.bf16.msra.mxu0 %v3987_v50  ;;  %1000 = vmatpush1.bf16.msra.mxu1 %v3989_v51 }
 0x1a7   :  { %960 = vmatprep.subr.bf16.mxu0 %v3993_v52  ;;  %1001 = vmatprep.subr.bf16.mxu1 %v3997_v53 }
 0x1aa   :  { %961 = vmatpush1.bf16.msra.mxu0 %v4001_v55  ;;  %1002 = vmatpush1.bf16.msra.mxu1 %v4003_v56 }
 0x1ab   :  { %962 = vmatprep.subr.bf16.mxu0 %v4005_v57  ;;  %1003 = vmatprep.subr.bf16.mxu1 %v4007_v58 }
 0x1ae   :  { %963 = vmatpush1.bf16.msra.mxu0 %v4013_v59  ;;  %1004 = vmatpush1.bf16.msra.mxu1 %v4015_v60 }
 0x1af   :  { %964 = vmatprep.subr.bf16.mxu0 %v4017_v61  ;;  %1005 = vmatprep.subr.bf16.mxu1 %v4019_v62 }
 0x1b2   :  { %965 = vmatpush1.bf16.msra.mxu0 %v4027_v0  ;;  %1006 = vmatpush1.bf16.msra.mxu1 %v4029_v2 }
 0x1b3   :  { %966 = vmatprep.subr.bf16.mxu0 %v4031_v3  ;;  %1007 = vmatprep.subr.bf16.mxu1 %v4033_v4 }
 0x1b6   :  { %967 = vmatpush1.bf16.msra.mxu0 %v4039_v5  ;;  %1008 = vmatpush1.bf16.msra.mxu1 %v4041_v6 }
 0x1b7   :  { %1062 = vmatprep.subr.bf16.mxu0 %v3947_v34  ;;  %1103 = vmatprep.subr.bf16.mxu1 %v3949_v35 }
 0x26c   :  { %v873_v30 = vpop.f32.mrb[20].mxu0  ;;  %v914_v1 = vpop.f32.mrb[20].mxu1 }
 0x26d   :  { %v921_v12 = vadd.f32 %v873_v30, %v4114_v24  ;;  %v923_v27 = vadd.f32 %v914_v1, %v4117_v26  ;;  %v875_v10 = vpop.f32.mrb[21].mxu0  ;;  %v916_v45 = vpop.f32.mrb[21].mxu1 }
 0x26e   :  { %v922_v15 = vadd.f32 %v875_v10, %v4119_v28  ;;  %v924_v14 = vadd.f32 %v916_v45, %v4122_v29  ;;  %v877_v16 = vpop.f32.mrb[22].mxu0  ;;  %v918_v17 = vpop.f32.mrb[22].mxu1 }
 0x26f   :  { %v925_v18 = vmul.f32 0.5, %v921_v12  ;;  %v878_v19 = vpop.f32.mrb[23].mxu0  ;;  %v919_v8 = vpop.f32.mrb[23].mxu1 }
 0x270   :  { %v929_v13 = vmul.f32 0.5, %v922_v15  ;;  %v934_v20 = vmul.f32 0.5, %v924_v14  ;;  %v5104_v19 = vld [vmem:[#allocation17_spill] sm:$0xff] }
 0x271   :  { %3470 = vtanh.f32 %v925_v18 }
 0x272   :  { %3472 = vtanh.f32 %v929_v13 }
 0x273   :  { %3474 = vtanh.f32 %v923_v27 }
 0x274   :  { %3476 = vtanh.f32 %v934_v20 }
 0x27b   :  { %v3471_v21 = vpop.eup %3470 }
 0x27c   :  { %v3473_v24 = vpop.eup %3472  ;;  %v927_v33 = vmul.f32 0.5, %v3471_v21 }
 0x27d   :  { %v931_v26 = vmul.f32 0.5, %v3473_v24  ;;  %v3475_v22 = vpop.eup %3474 }
 0x27e   :  { %v928_v7 = vadd.f32 0.5, %v927_v33  ;;  %v3477_v31 = vpop.eup %3476 }
 0x27f   :  { %v932_v28 = vadd.f32 0.5, %v931_v26  ;;  %v936_v23 = vmul.f32 0.5, %v3477_v31 }
 0x280   :  { %v939_v25 = vmul.f32 %v3475_v22, %v928_v7 }
 0x281   :  { %v938_v29 = vmul.f32 %v932_v28, %v4188_v11  ;;  %v937_v30 = vadd.f32 0.5, %v936_v23 }
 0x283   :  { %v4230_v63 = vadd.f32 %v939_v25, %v938_v29 }
 0x285   :  { %3478 = vtanh.f32 %v4230_v63 }
 0x28f   :  { %v3479_v1 = vpop.eup %3478 }
 0x290   :  { %v942_v12 = vmul.f32 %v3479_v1, %v937_v30 }
 0x292   :  { %v943_v27 = vpack.c.bf16 %v942_v12, %v942_v12 }
 0x294   :  { %v945_v10 = vrot.slane %v943_v27, 4  ;;  %985 = vmatmul.mubr.bf16.vlgmr.msra.gmra.mrb[24].mxu0 %v943_v27  ;;  %1026 = vmatmul.mubr.bf16.vlgmr.msra.gmra.mrb[24].mxu1 %v943_v27 }
 0x295   :  { %1063 = vmatpush1.bf16.msra.mxu0 %v3951_v37  ;;  %1104 = vmatpush1.bf16.msra.mxu1 %v3953_v38 }
 0x296   :  { %947 = vst [vmem:[#allocation2] sm:$0xf0] %v945_v10  ;;  %1064 = vmatprep.subr.bf16.mxu0 %v3957_v39  ;;  %1105 = vmatprep.subr.bf16.mxu1 %v3959_v40 }
 0x297   :  { %1094 = vmatprep.mubr.bf16.mxu0 %v5103_v9  ;;  %1135 = vmatprep.mubr.bf16.mxu1 %v5103_v9 }
 0x299   :  { %1065 = vmatpush1.bf16.msra.mxu0 %v3961_v41  ;;  %1106 = vmatpush1.bf16.msra.mxu1 %v3965_v42 }
 0x29a   :  { %1066 = vmatprep.subr.bf16.mxu0 %v3969_v43  ;;  %1107 = vmatprep.subr.bf16.mxu1 %v3971_v44 }
 0x29d   :  { %1067 = vmatpush1.bf16.msra.mxu0 %v3975_v46  ;;  %1108 = vmatpush1.bf16.msra.mxu1 %v3977_v47 }
 0x29e   :  { %1068 = vmatprep.subr.bf16.mxu0 %v3981_v48  ;;  %1109 = vmatprep.subr.bf16.mxu1 %v3985_v49 }
 0x2a1   :  { %1069 = vmatpush1.bf16.msra.mxu0 %v3987_v50  ;;  %1110 = vmatpush1.bf16.msra.mxu1 %v3989_v51 }
 0x2a2   :  { %1070 = vmatprep.subr.bf16.mxu0 %v3993_v52  ;;  %1111 = vmatprep.subr.bf16.mxu1 %v3997_v53 }
 0x2a5   :  { %1071 = vmatpush1.bf16.msra.mxu0 %v4001_v55  ;;  %1112 = vmatpush1.bf16.msra.mxu1 %v4003_v56 }
 0x2a6   :  { %1072 = vmatprep.subr.bf16.mxu0 %v4005_v57  ;;  %1113 = vmatprep.subr.bf16.mxu1 %v4007_v58 }
 0x2a9   :  { %1073 = vmatpush1.bf16.msra.mxu0 %v4013_v59  ;;  %1114 = vmatpush1.bf16.msra.mxu1 %v4015_v60 }
 0x2aa   :  { %1074 = vmatprep.subr.bf16.mxu0 %v4017_v61  ;;  %1115 = vmatprep.subr.bf16.mxu1 %v4019_v62 }
 0x2ad   :  { %1075 = vmatpush1.bf16.msra.mxu0 %v4027_v0  ;;  %1116 = vmatpush1.bf16.msra.mxu1 %v4029_v2 }
 0x2ae   :  { %1076 = vmatprep.subr.bf16.mxu0 %v4031_v3  ;;  %1117 = vmatprep.subr.bf16.mxu1 %v4033_v4 }
 0x2b1   :  { %1077 = vmatpush1.bf16.msra.mxu0 %v4039_v5  ;;  %1118 = vmatpush1.bf16.msra.mxu1 %v4041_v6 }
 0x2b2   :  { %1175 = vmatprep.subr.bf16.mxu0 %v3947_v34  ;;  %1216 = vmatprep.subr.bf16.mxu1 %v3949_v35 }
 0x367   :  { %v986_v11 = vpop.f32.mrb[24].mxu0  ;;  %v1027_v45 = vpop.f32.mrb[24].mxu1 }
 0x368   :  { %v1034_v15 = vadd.f32 %v986_v11, %v4124_v32  ;;  %v1036_v14 = vadd.f32 %v1027_v45, %v4127_v36  ;;  %v988_v16 = vpop.f32.mrb[25].mxu0  ;;  %v1029_v17 = vpop.f32.mrb[25].mxu1 }
 0x369   :  { %v1035_v18 = vadd.f32 %v988_v16, %v4129_v54  ;;  %v1037_v8 = vadd.f32 %v1029_v17, %v5104_v19  ;;  %v990_v13 = vpop.f32.mrb[26].mxu0  ;;  %v1031_v20 = vpop.f32.mrb[26].mxu1 }
 0x36a   :  { %v1038_v21 = vmul.f32 0.5, %v1034_v15  ;;  %v991_v24 = vpop.f32.mrb[27].mxu0  ;;  %v1032_v33 = vpop.f32.mrb[27].mxu1 }
 0x36b   :  { %v1042_v34 = vmul.f32 0.5, %v1035_v18  ;;  %v1047_v26 = vmul.f32 0.5, %v1037_v8 }
 0x36c   :  { %3480 = vtanh.f32 %v1038_v21 }
 0x36d   :  { %3482 = vtanh.f32 %v1042_v34 }
 0x36e   :  { %3484 = vtanh.f32 %v1036_v14 }
 0x36f   :  { %3486 = vtanh.f32 %v1047_v26 }
 0x376   :  { %v3481_v7 = vpop.eup %3480 }
 0x377   :  { %v3483_v32 = vpop.eup %3482  ;;  %v1040_v22 = vmul.f32 0.5, %v3481_v7 }
 0x378   :  { %v1044_v36 = vmul.f32 0.5, %v3483_v32  ;;  %v3485_v25 = vpop.eup %3484 }
 0x379   :  { %v1041_v28 = vadd.f32 0.5, %v1040_v22  ;;  %v3487_v30 = vpop.eup %3486 }
 0x37a   :  { %v1045_v54 = vadd.f32 0.5, %v1044_v36  ;;  %v1049_v1 = vmul.f32 0.5, %v3487_v30  ;;  %v4322_v30 = vld [vmem:[#allocation9 + $0x8] ss:$16 sps:$4 sm:$0xff]  }
 0x37b   :  { %v1052_v29 = vmul.f32 %v3485_v25, %v1041_v28 }
 0x37c   :  { %v1051_v31 = vmul.f32 %v1045_v54, %v4230_v63  ;;  %v1050_v12 = vadd.f32 0.5, %v1049_v1  ;;  %v4328_v1 = vld [vmem:[#allocation9 + $0x2c] ss:$16 sps:$4 sm:$0xff]  }
 0x37e   :  { %v4272_v23 = vadd.f32 %v1052_v29, %v1051_v31  ;;  %v4319_v31 = vld [vmem:[#allocation9] ss:$16 sps:$4 sm:$0xff]  }
 0x380   :  { %3488 = vtanh.f32 %v4272_v23 }
 0x38a   :  { %v3489_v27 = vpop.eup %3488 }
 0x38b   :  { %v1055_v10 = vmul.f32 %v3489_v27, %v1050_v12  ;;  %v4333_v12 = vld [vmem:[#allocation9 + $0x20] ss:$16 sps:$4 sm:$0xff]   ;;  %v4336_v27 = vld [vmem:[#allocation9 + $0x28] ss:$16 sps:$4 sm:$0xff]  }
 0x38d   :  { %v1056_v11 = vpack.c.bf16 %v1055_v10, %v1055_v10  ;;  %v4339_v10 = vld [vmem:[#allocation9 + $0x44] ss:$16 sps:$4 sm:$0xff]  }
 0x38f   :  { %1057 = vst [vmem:[#allocation2 + $0x8] sm:$0xf] %v1056_v11  ;;  %1095 = vmatmul.mubr.bf16.vlgmr.msra.gmra.mrb[28].mxu0 %v1056_v11  ;;  %1136 = vmatmul.mubr.bf16.vlgmr.msra.gmra.mrb[28].mxu1 %v1056_v11  ;;  %v4342_v11 = vld [vmem:[#allocation9 + $0x4c] ss:$16 sps:$4 sm:$0xff]  }
 0x390   :  { %1176 = vmatpush1.bf16.msra.mxu0 %v3951_v37  ;;  %1217 = vmatpush1.bf16.msra.mxu1 %v3953_v38  ;;  %v4307_v37 = vld [vmem:[#allocation9 + $0x4] ss:$16 sps:$4 sm:$0xff]  }
 0x391   :  { %1177 = vmatprep.subr.bf16.mxu0 %v3957_v39  ;;  %1218 = vmatprep.subr.bf16.mxu1 %v3959_v40  ;;  %v5105_v40 = vld [vmem:[#allocation18_spill] sm:$0xff] }
 0x392   :  { %1207 = vmatprep.mubr.bf16.mxu0 %v5103_v9  ;;  %1248 = vmatprep.mubr.bf16.mxu1 %v5103_v9 }
 0x394   :  { %1178 = vmatpush1.bf16.msra.mxu0 %v3961_v41  ;;  %1219 = vmatpush1.bf16.msra.mxu1 %v3965_v42  ;;  %v5106_v42 = vld [vmem:[#allocation19_spill] sm:$0xff] }
 0x395   :  { %1179 = vmatprep.subr.bf16.mxu0 %v3969_v43  ;;  %1220 = vmatprep.subr.bf16.mxu1 %v3971_v44 }
 0x398   :  { %1180 = vmatpush1.bf16.msra.mxu0 %v3975_v46  ;;  %1221 = vmatpush1.bf16.msra.mxu1 %v3977_v47  ;;  %v5107_v47 = vld [vmem:[#allocation20_spill] sm:$0xff] }
 0x399   :  { %1181 = vmatprep.subr.bf16.mxu0 %v3981_v48  ;;  %1222 = vmatprep.subr.bf16.mxu1 %v3985_v49  ;;  %v5108_v49 = vld [vmem:[#allocation21_spill] sm:$0xff] }
 0x39c   :  { %1182 = vmatpush1.bf16.msra.mxu0 %v3987_v50  ;;  %1223 = vmatpush1.bf16.msra.mxu1 %v3989_v51 }
 0x39d   :  { %1183 = vmatprep.subr.bf16.mxu0 %v3993_v52  ;;  %1224 = vmatprep.subr.bf16.mxu1 %v3997_v53 }
 0x3a0   :  { %1184 = vmatpush1.bf16.msra.mxu0 %v4001_v55  ;;  %1225 = vmatpush1.bf16.msra.mxu1 %v4003_v56 }
 0x3a1   :  { %1185 = vmatprep.subr.bf16.mxu0 %v4005_v57  ;;  %1226 = vmatprep.subr.bf16.mxu1 %v4007_v58 }
 0x3a4   :  { %1186 = vmatpush1.bf16.msra.mxu0 %v4013_v59  ;;  %1227 = vmatpush1.bf16.msra.mxu1 %v4015_v60 }
 0x3a5   :  { %1187 = vmatprep.subr.bf16.mxu0 %v4017_v61  ;;  %1228 = vmatprep.subr.bf16.mxu1 %v4019_v62 }
 0x3a8   :  { %1188 = vmatpush1.bf16.msra.mxu0 %v4027_v0  ;;  %1229 = vmatpush1.bf16.msra.mxu1 %v4029_v2 }
 0x3a9   :  { %1189 = vmatprep.subr.bf16.mxu0 %v4031_v3  ;;  %1230 = vmatprep.subr.bf16.mxu1 %v4033_v4 }
 0x3ac   :  { %1190 = vmatpush1.bf16.msra.mxu0 %v4039_v5  ;;  %1231 = vmatpush1.bf16.msra.mxu1 %v4041_v6 }
 0x3ad   :  { %1285 = vmatprep.subr.bf16.mxu0 %v4307_v37  ;;  %1326 = vmatprep.subr.bf16.mxu1 %v3949_v35 }
 0x462   :  { %v1096_v38 = vpop.f32.mrb[28].mxu0  ;;  %v1137_v39 = vpop.f32.mrb[28].mxu1 }
 0x463   :  { %v1144_v41 = vadd.f32 %v1096_v38, %v5105_v40  ;;  %v1146_v43 = vadd.f32 %v1137_v39, %v5106_v42  ;;  %v1098_v44 = vpop.f32.mrb[29].mxu0  ;;  %v1139_v46 = vpop.f32.mrb[29].mxu1  ;;  %v4345_v38 = vld [vmem:[#allocation9 + $0x40] ss:$16 sps:$4 sm:$0xff]   ;;  %v4348_v39 = vld [vmem:[#allocation9 + $0x48] ss:$16 sps:$4 sm:$0xff]  }
 0x464   :  { %v1145_v48 = vadd.f32 %v1098_v44, %v5107_v47  ;;  %v1147_v63 = vadd.f32 %v1139_v46, %v5108_v49  ;;  %v1100_v45 = vpop.f32.mrb[30].mxu0  ;;  %v1141_v15 = vpop.f32.mrb[30].mxu1  ;;  %v4351_v40 = vld [vmem:[#allocation9 + $0x64] ss:$16 sps:$4 sm:$0xff]  }
 0x465   :  { %v1148_v14 = vmul.f32 0.5, %v1144_v41  ;;  %v1101_v16 = vpop.f32.mrb[31].mxu0  ;;  %v1142_v17 = vpop.f32.mrb[31].mxu1  ;;  %v4354_v41 = vld [vmem:[#allocation9 + $0x6c] ss:$16 sps:$4 sm:$0xff]  }
 0x466   :  { %v1152_v18 = vmul.f32 0.5, %v1145_v48  ;;  %v1157_v35 = vmul.f32 0.5, %v1147_v63 }
 0x467   :  { %3490 = vtanh.f32 %v1148_v14 }
 0x468   :  { %3492 = vtanh.f32 %v1152_v18 }
 0x469   :  { %3494 = vtanh.f32 %v1146_v43 }
 0x46a   :  { %3496 = vtanh.f32 %v1157_v35 }
 0x471   :  { %v3491_v19 = vpop.eup %3490 }
 0x472   :  { %v3493_v8 = vpop.eup %3492  ;;  %v1150_v13 = vmul.f32 0.5, %v3491_v19 }
 0x473   :  { %v1154_v20 = vmul.f32 0.5, %v3493_v8  ;;  %v3495_v24 = vpop.eup %3494 }
 0x474   :  { %v1151_v21 = vadd.f32 0.5, %v1150_v13  ;;  %v3497_v32 = vpop.eup %3496 }
 0x475   :  { %v1155_v33 = vadd.f32 0.5, %v1154_v20  ;;  %v1159_v22 = vmul.f32 0.5, %v3497_v32  ;;  %v4401_v20 = vld [vmem:[#allocation9 + $0x60] ss:$16 sps:$4 sm:$0xff]   ;;  %v4422_v32 = vld [vmem:[#allocation9 + $0xac] ss:$16 sps:$4 sm:$0xff]  }
 0x476   :  { %v1162_v34 = vmul.f32 %v3495_v24, %v1151_v21  ;;  %v4404_v21 = vld [vmem:[#allocation9 + $0x68] ss:$16 sps:$4 sm:$0xff]   ;;  %v4407_v24 = vld [vmem:[#allocation9 + $0x84] ss:$16 sps:$4 sm:$0xff]  }
 0x477   :  { %v1161_v26 = vmul.f32 %v1155_v33, %v4272_v23  ;;  %v1160_v36 = vadd.f32 0.5, %v1159_v22  ;;  %v4325_v23 = vld [vmem:[#allocation9 + $0x24] ss:$16 sps:$4 sm:$0xff]   ;;  %v4410_v33 = vld [vmem:[#allocation9 + $0x8c] ss:$16 sps:$4 sm:$0xff]  }
 0x478   :  { %v4425_v22 = vld [vmem:[#allocation9 + $0xa0] ss:$16 sps:$4 sm:$0xff]  }
 0x479   :  { %v4316_v7 = vadd.f32 %v1162_v34, %v1161_v26  ;;  %v4413_v34 = vld [vmem:[#allocation9 + $0x80] ss:$16 sps:$4 sm:$0xff]   ;;  %v4416_v26 = vld [vmem:[#allocation9 + $0x88] ss:$16 sps:$4 sm:$0xff]  }
 0x47b   :  { %3498 = vtanh.f32 %v4316_v7 }
 0x485   :  { %v3499_v28 = vpop.eup %3498 }
 0x486   :  { %v1165_v25 = vmul.f32 %v3499_v28, %v1160_v36  ;;  %v4428_v36 = vld [vmem:[#allocation9 + $0xa8] ss:$16 sps:$4 sm:$0xff]   ;;  %v4431_v28 = vld [vmem:[#allocation9 + $0xc4] ss:$16 sps:$4 sm:$0xff]  }
 0x488   :  { %v1166_v54 = vpack.c.bf16 %v1165_v25, %v1165_v25  ;;  %v4434_v25 = vld [vmem:[#allocation9 + $0xcc] ss:$16 sps:$4 sm:$0xff]  }
 0x48a   :  { %v1168_v29 = vrot.slane %v1166_v54, 4  ;;  %1208 = vmatmul.mubr.bf16.vlgmr.msra.gmra.mrb[32].mxu0 %v1166_v54  ;;  %1249 = vmatmul.mubr.bf16.vlgmr.msra.gmra.mrb[32].mxu1 %v1166_v54  ;;  %v4437_v54 = vld [vmem:[#allocation9 + $0xc0] ss:$16 sps:$4 sm:$0xff]  }
 0x48b   :  { %1286 = vmatpush1.bf16.msra.mxu0 %v4319_v31  ;;  %1327 = vmatpush1.bf16.msra.mxu1 %v4322_v30 }
 0x48c   :  { %1170 = vst [vmem:[#allocation2 + $0x8] sm:$0xf0] %v1168_v29  ;;  %1287 = vmatprep.subr.bf16.mxu0 %v4325_v23  ;;  %1328 = vmatprep.subr.bf16.mxu1 %v4328_v1  ;;  %v4440_v29 = vld [vmem:[#allocation9 + $0xc8] ss:$16 sps:$4 sm:$0xff]  }
 0x48d   :  { %1317 = vmatprep.mubr.bf16.mxu0 %v5103_v9  ;;  %1358 = vmatprep.mubr.bf16.mxu1 %v5103_v9 }
 0x48f   :  { %1288 = vmatpush1.bf16.msra.mxu0 %v4333_v12  ;;  %1329 = vmatpush1.bf16.msra.mxu1 %v4336_v27 }
 0x490   :  { %1289 = vmatprep.subr.bf16.mxu0 %v4339_v10  ;;  %1330 = vmatprep.subr.bf16.mxu1 %v4342_v11 }
 0x493   :  { %1290 = vmatpush1.bf16.msra.mxu0 %v4345_v38  ;;  %1331 = vmatpush1.bf16.msra.mxu1 %v4348_v39 }
 0x494   :  { %1291 = vmatprep.subr.bf16.mxu0 %v4351_v40  ;;  %1332 = vmatprep.subr.bf16.mxu1 %v4354_v41 }
 0x497   :  { %1292 = vmatpush1.bf16.msra.mxu0 %v3987_v50  ;;  %1333 = vmatpush1.bf16.msra.mxu1 %v3989_v51  ;;  %v4376_v50 = vld [vmem:[#allocation9 + $0xc] ss:$16 sps:$4 sm:$0xff]  }
 0x498   :  { %1293 = vmatprep.subr.bf16.mxu0 %v3993_v52  ;;  %1334 = vmatprep.subr.bf16.mxu1 %v3997_v53  ;;  %v5109_v53 = vld [vmem:[#allocation22_spill] sm:$0xff] }
 0x49b   :  { %1294 = vmatpush1.bf16.msra.mxu0 %v4001_v55  ;;  %1335 = vmatpush1.bf16.msra.mxu1 %v4003_v56  ;;  %v5110_v56 = vld [vmem:[#allocation23_spill] sm:$0xff] }
 0x49c   :  { %1295 = vmatprep.subr.bf16.mxu0 %v4005_v57  ;;  %1336 = vmatprep.subr.bf16.mxu1 %v4007_v58 }
 0x49f   :  { %1296 = vmatpush1.bf16.msra.mxu0 %v4013_v59  ;;  %1337 = vmatpush1.bf16.msra.mxu1 %v4015_v60  ;;  %v5111_v60 = vld [vmem:[#allocation24_spill] sm:$0xff] }
 0x4a0   :  { %1297 = vmatprep.subr.bf16.mxu0 %v4017_v61  ;;  %1338 = vmatprep.subr.bf16.mxu1 %v4019_v62  ;;  %v5112_v62 = vld [vmem:[#allocation25_spill] sm:$0xff] }
 0x4a3   :  { %1298 = vmatpush1.bf16.msra.mxu0 %v4027_v0  ;;  %1339 = vmatpush1.bf16.msra.mxu1 %v4029_v2 }
 0x4a4   :  { %1299 = vmatprep.subr.bf16.mxu0 %v4031_v3  ;;  %1340 = vmatprep.subr.bf16.mxu1 %v4033_v4 }
 0x4a7   :  { %1300 = vmatpush1.bf16.msra.mxu0 %v4039_v5  ;;  %1341 = vmatpush1.bf16.msra.mxu1 %v4041_v6 }
 0x4a8   :  { %1398 = vmatprep.subr.bf16.mxu0 %v4307_v37  ;;  %1439 = vmatprep.subr.bf16.mxu1 %v4376_v50 }
 0x55d   :  { %v1209_v51 = vpop.f32.mrb[32].mxu0  ;;  %v1250_v52 = vpop.f32.mrb[32].mxu1 }
 0x55e   :  { %v1257_v55 = vadd.f32 %v1209_v51, %v5109_v53  ;;  %v1259_v57 = vadd.f32 %v1250_v52, %v5110_v56  ;;  %v1211_v58 = vpop.f32.mrb[33].mxu0  ;;  %v1252_v59 = vpop.f32.mrb[33].mxu1  ;;  %v4443_v51 = vld [vmem:[#allocation9 + $0xe4] ss:$16 sps:$4 sm:$0xff]   ;;  %v4446_v52 = vld [vmem:[#allocation9 + $0xec] ss:$16 sps:$4 sm:$0xff]  }
 0x55f   :  { %v1258_v61 = vadd.f32 %v1211_v58, %v5111_v60  ;;  %v1260_v0 = vadd.f32 %v1252_v59, %v5112_v62  ;;  %v1213_v2 = vpop.f32.mrb[34].mxu0  ;;  %v1254_v3 = vpop.f32.mrb[34].mxu1  ;;  %v4449_v53 = vld [vmem:[#allocation9 + $0xe0] ss:$16 sps:$4 sm:$0xff]   ;;  %v5114_v60 = vld [vmem:[#allocation27_spill] sm:$0xff] }
 0x560   :  { %v1261_v4 = vmul.f32 0.5, %v1257_v55  ;;  %v1214_v5 = vpop.f32.mrb[35].mxu0  ;;  %v1255_v6 = vpop.f32.mrb[35].mxu1  ;;  %v4452_v55 = vld [vmem:[#allocation9 + $0xe8] ss:$16 sps:$4 sm:$0xff]   ;;  %v5113_v58 = vld [vmem:[#allocation26_spill] sm:$0xff] }
 0x561   :  { %v1265_v42 = vmul.f32 0.5, %v1258_v61  ;;  %v1270_v43 = vmul.f32 0.5, %v1260_v0  ;;  %v5115_v2 = vld [vmem:[#allocation28_spill] sm:$0xff] }
 0x562   :  { %3500 = vtanh.f32 %v1261_v4  ;;  %v5116_v4 = vld [vmem:[#allocation29_spill] sm:$0xff] }
 0x563   :  { %3502 = vtanh.f32 %v1265_v42 }
 0x564   :  { %3504 = vtanh.f32 %v1259_v57 }
 0x565   :  { %3506 = vtanh.f32 %v1270_v43 }
 0x56c   :  { %v3501_v44 = vpop.eup %3500 }
 0x56d   :  { %v3503_v46 = vpop.eup %3502  ;;  %v1263_v47 = vmul.f32 0.5, %v3501_v44 }
 0x56e   :  { %v1267_v48 = vmul.f32 0.5, %v3503_v46  ;;  %v3505_v63 = vpop.eup %3504 }
 0x56f   :  { %v1264_v49 = vadd.f32 0.5, %v1263_v47  ;;  %v3507_v17 = vpop.eup %3506 }
 0x570   :  { %v1268_v45 = vadd.f32 0.5, %v1267_v48  ;;  %v1272_v18 = vmul.f32 0.5, %v3507_v17 }
 0x571   :  { %v1275_v15 = vmul.f32 %v3505_v63, %v1264_v49 }
 0x572   :  { %v1274_v14 = vmul.f32 %v1268_v45, %v4316_v7  ;;  %v1273_v35 = vadd.f32 0.5, %v1272_v18  ;;  %v4419_v7 = vld [vmem:[#allocation9 + $0xa4] ss:$16 sps:$4 sm:$0xff]  }
 0x574   :  { %v4384_v16 = vadd.f32 %v1275_v15, %v1274_v14 }
 0x576   :  { %3508 = vtanh.f32 %v4384_v16 }
 0x580   :  { %v3509_v19 = vpop.eup %3508 }
 0x581   :  { %v1278_v8 = vmul.f32 %v3509_v19, %v1273_v35 }
 0x583   :  { %v1279_v13 = vpack.c.bf16 %v1278_v8, %v1278_v8 }
 0x585   :  { %1280 = vst [vmem:[#allocation2 + $0x10] sm:$0xf] %v1279_v13  ;;  %1318 = vmatmul.mubr.bf16.vlgmr.msra.gmra.mrb[36].mxu0 %v1279_v13  ;;  %1359 = vmatmul.mubr.bf16.vlgmr.msra.gmra.mrb[36].mxu1 %v1279_v13 }
 0x586   :  { %1399 = vmatpush1.bf16.msra.mxu0 %v4319_v31  ;;  %1440 = vmatpush1.bf16.msra.mxu1 %v4322_v30 }
 0x587   :  { %1400 = vmatprep.subr.bf16.mxu0 %v4325_v23  ;;  %1441 = vmatprep.subr.bf16.mxu1 %v4328_v1 }
 0x588   :  { %1430 = vmatprep.mubr.bf16.mxu0 %v5103_v9  ;;  %1471 = vmatprep.mubr.bf16.mxu1 %v5103_v9 }
 0x58a   :  { %1401 = vmatpush1.bf16.msra.mxu0 %v4333_v12  ;;  %1442 = vmatpush1.bf16.msra.mxu1 %v4336_v27 }
 0x58b   :  { %1402 = vmatprep.subr.bf16.mxu0 %v4339_v10  ;;  %1443 = vmatprep.subr.bf16.mxu1 %v4342_v11 }
 0x58e   :  { %1403 = vmatpush1.bf16.msra.mxu0 %v4345_v38  ;;  %1444 = vmatpush1.bf16.msra.mxu1 %v4348_v39 }
 0x58f   :  { %1404 = vmatprep.subr.bf16.mxu0 %v4351_v40  ;;  %1445 = vmatprep.subr.bf16.mxu1 %v4354_v41 }
 0x592   :  { %1405 = vmatpush1.bf16.msra.mxu0 %v4401_v20  ;;  %1446 = vmatpush1.bf16.msra.mxu1 %v4404_v21 }
 0x593   :  { %1406 = vmatprep.subr.bf16.mxu0 %v4407_v24  ;;  %1447 = vmatprep.subr.bf16.mxu1 %v4410_v33 }
 0x596   :  { %1407 = vmatpush1.bf16.msra.mxu0 %v4413_v34  ;;  %1448 = vmatpush1.bf16.msra.mxu1 %v4416_v26 }
 0x597   :  { %1408 = vmatprep.subr.bf16.mxu0 %v4419_v7  ;;  %1449 = vmatprep.subr.bf16.mxu1 %v4422_v32 }
 0x59a   :  { %1409 = vmatpush1.bf16.msra.mxu0 %v4425_v22  ;;  %1450 = vmatpush1.bf16.msra.mxu1 %v4428_v36 }
 0x59b   :  { %1410 = vmatprep.subr.bf16.mxu0 %v4431_v28  ;;  %1451 = vmatprep.subr.bf16.mxu1 %v4434_v25 }
 0x59e   :  { %1411 = vmatpush1.bf16.msra.mxu0 %v4437_v54  ;;  %1452 = vmatpush1.bf16.msra.mxu1 %v4440_v29 }
 0x59f   :  { %1412 = vmatprep.subr.bf16.mxu0 %v4443_v51  ;;  %1453 = vmatprep.subr.bf16.mxu1 %v4446_v52 }
 0x5a2   :  { %1413 = vmatpush1.bf16.msra.mxu0 %v4449_v53  ;;  %1454 = vmatpush1.bf16.msra.mxu1 %v4452_v55 }
 0x5a3   :  { %1508 = vmatprep.subr.bf16.mxu0 %v4307_v37  ;;  %1549 = vmatprep.subr.bf16.mxu1 %v4376_v50 }
 0x658   :  { %v1319_v56 = vpop.f32.mrb[36].mxu0  ;;  %v1360_v57 = vpop.f32.mrb[36].mxu1 }
 0x659   :  { %v1367_v59 = vadd.f32 %v1319_v56, %v5113_v58  ;;  %v1369_v61 = vadd.f32 %v1360_v57, %v5114_v60  ;;  %v1321_v62 = vpop.f32.mrb[37].mxu0  ;;  %v1362_v0 = vpop.f32.mrb[37].mxu1 }
 0x65a   :  { %v1368_v3 = vadd.f32 %v1321_v62, %v5115_v2  ;;  %v1370_v5 = vadd.f32 %v1362_v0, %v5116_v4  ;;  %v1323_v6 = vpop.f32.mrb[38].mxu0  ;;  %v1364_v42 = vpop.f32.mrb[38].mxu1  ;;  %v3367_v4 = vld [vmem:[#allocation10 + $0x8] ss:$16 sps:$4 sm:$0xff]  }
 0x65b   :  { %v1371_v43 = vmul.f32 0.5, %v1367_v59  ;;  %v1324_v44 = vpop.f32.mrb[39].mxu0  ;;  %v1365_v46 = vpop.f32.mrb[39].mxu1  ;;  %v3372_v6 = vld [vmem:[#allocation10 + $0x24] ss:$16 sps:$4 sm:$0xff]  }
 0x65c   :  { %v1375_v37 = vmul.f32 0.5, %v1368_v3  ;;  %v1380_v50 = vmul.f32 0.5, %v1370_v5  ;;  %v3364_v3 = vld [vmem:[#allocation10] ss:$16 sps:$4 sm:$0xff]   ;;  %v3375_v42 = vld [vmem:[#allocation10 + $0x2c] ss:$16 sps:$4 sm:$0xff]  }
 0x65d   :  { %3510 = vtanh.f32 %v1371_v43  ;;  %v3370_v43 = vld [vmem:[#allocation10 + $0x20] ss:$16 sps:$4 sm:$0xff]   ;;  %v3373_v44 = vld [vmem:[#allocation10 + $0x28] ss:$16 sps:$4 sm:$0xff]   ;;  %v3378_v46 = vld [vmem:[#allocation10 + $0x44] ss:$16 sps:$4 sm:$0xff]  }
 0x65e   :  { %3512 = vtanh.f32 %v1375_v37  ;;  %v3381_v37 = vld [vmem:[#allocation10 + $0x4c] ss:$16 sps:$4 sm:$0xff]  }
 0x65f   :  { %3514 = vtanh.f32 %v1369_v61 }
 0x660   :  { %3516 = vtanh.f32 %v1380_v50  ;;  %v3376_v50 = vld [vmem:[#allocation10 + $0x40] ss:$16 sps:$4 sm:$0xff]  }
 0x667   :  { %v3511_v47 = vpop.eup %3510 }
 0x668   :  { %v3513_v48 = vpop.eup %3512  ;;  %v1373_v49 = vmul.f32 0.5, %v3511_v47  ;;  %v3379_v47 = vld [vmem:[#allocation10 + $0x48] ss:$16 sps:$4 sm:$0xff]  }
 0x669   :  { %v1377_v63 = vmul.f32 0.5, %v3513_v48  ;;  %v3515_v15 = vpop.eup %3514  ;;  %v3384_v48 = vld [vmem:[#allocation10 + $0x64] ss:$16 sps:$4 sm:$0xff]  }
 0x66a   :  { %v1374_v45 = vadd.f32 0.5, %v1373_v49  ;;  %v3517_v19 = vpop.eup %3516  ;;  %v3387_v49 = vld [vmem:[#allocation10 + $0x6c] ss:$16 sps:$4 sm:$0xff]  }
 0x66b   :  { %v1378_v14 = vadd.f32 0.5, %v1377_v63  ;;  %v1382_v8 = vmul.f32 0.5, %v3517_v19  ;;  %v3382_v63 = vld [vmem:[#allocation10 + $0x60] ss:$16 sps:$4 sm:$0xff]   ;;  %v3399_v19 = vld [vmem:[#allocation10 + $0xac] ss:$16 sps:$4 sm:$0xff]  }
 0x66c   :  { %v1385_v17 = vmul.f32 %v3515_v15, %v1374_v45  ;;  %v3385_v45 = vld [vmem:[#allocation10 + $0x68] ss:$16 sps:$4 sm:$0xff]   ;;  %v3390_v15 = vld [vmem:[#allocation10 + $0x84] ss:$16 sps:$4 sm:$0xff]  }
 0x66d   :  { %v1384_v18 = vmul.f32 %v1378_v14, %v4384_v16  ;;  %v1383_v13 = vadd.f32 0.5, %v1382_v8  ;;  %v5120_v16 = vld [vmem:[#allocation33_spill] sm:$0xff]  ;;  %v3394_v8 = vld [vmem:[#allocation10 + $0xa0] ss:$16 sps:$4 sm:$0xff]  }
 0x66e   :  { %v3393_v14 = vld [vmem:[#allocation10 + $0x8c] ss:$16 sps:$4 sm:$0xff]  }
 0x66f   :  { %v4462_v35 = vadd.f32 %v1385_v17, %v1384_v18  ;;  %v3388_v17 = vld [vmem:[#allocation10 + $0x80] ss:$16 sps:$4 sm:$0xff]   ;;  %v3391_v18 = vld [vmem:[#allocation10 + $0x88] ss:$16 sps:$4 sm:$0xff]  }
 0x671   :  { %3518 = vtanh.f32 %v4462_v35 }
 0x67b   :  { %v3519_v56 = vpop.eup %3518 }
 0x67c   :  { %v1388_v57 = vmul.f32 %v3519_v56, %v1383_v13  ;;  %v3397_v13 = vld [vmem:[#allocation10 + $0xa8] ss:$16 sps:$4 sm:$0xff]   ;;  %v3402_v56 = vld [vmem:[#allocation10 + $0xc4] ss:$16 sps:$4 sm:$0xff]  }
 0x67e   :  { %v1389_v58 = vpack.c.bf16 %v1388_v57, %v1388_v57  ;;  %v3405_v57 = vld [vmem:[#allocation10 + $0xcc] ss:$16 sps:$4 sm:$0xff]  }
 0x680   :  { %v1391_v59 = vrot.slane %v1389_v58, 4  ;;  %1431 = vmatmul.mubr.bf16.vlgmr.msra.gmra.mrb[40].mxu0 %v1389_v58  ;;  %1472 = vmatmul.mubr.bf16.vlgmr.msra.gmra.mrb[40].mxu1 %v1389_v58  ;;  %v3400_v58 = vld [vmem:[#allocation10 + $0xc0] ss:$16 sps:$4 sm:$0xff]  }
 0x681   :  { %1509 = vmatpush1.bf16.msra.mxu0 %v4319_v31  ;;  %1550 = vmatpush1.bf16.msra.mxu1 %v4322_v30  ;;  %v3366_v31 = vld [vmem:[#allocation10 + $0x4] ss:$16 sps:$4 sm:$0xff]   ;;  %v3369_v30 = vld [vmem:[#allocation10 + $0xc] ss:$16 sps:$4 sm:$0xff]  }
 0x682   :  { %1393 = vst [vmem:[#allocation2 + $0x10] sm:$0xf0] %v1391_v59  ;;  %1510 = vmatprep.subr.bf16.mxu0 %v4325_v23  ;;  %1551 = vmatprep.subr.bf16.mxu1 %v4328_v1  ;;  %v3403_v59 = vld [vmem:[#allocation10 + $0xc8] ss:$16 sps:$4 sm:$0xff]  }
 0x683   :  { %1540 = vmatprep.mubr.bf16.mxu0 %v5103_v9  ;;  %1581 = vmatprep.mubr.bf16.mxu1 %v5103_v9 }
 0x685   :  { %1511 = vmatpush1.bf16.msra.mxu0 %v4333_v12  ;;  %1552 = vmatpush1.bf16.msra.mxu1 %v4336_v27  ;;  %v5117_v12 = vld [vmem:[#allocation30_spill] sm:$0xff] }
 0x686   :  { %1512 = vmatprep.subr.bf16.mxu0 %v4339_v10  ;;  %1553 = vmatprep.subr.bf16.mxu1 %v4342_v11  ;;  %v5118_v10 = vld [vmem:[#allocation31_spill] sm:$0xff] }
 0x689   :  { %1513 = vmatpush1.bf16.msra.mxu0 %v4345_v38  ;;  %1554 = vmatpush1.bf16.msra.mxu1 %v4348_v39 }
 0x68a   :  { %1514 = vmatprep.subr.bf16.mxu0 %v4351_v40  ;;  %1555 = vmatprep.subr.bf16.mxu1 %v4354_v41  ;;  %v5119_v40 = vld [vmem:[#allocation32_spill] sm:$0xff] }
 0x68d   :  { %1515 = vmatpush1.bf16.msra.mxu0 %v4401_v20  ;;  %1556 = vmatpush1.bf16.msra.mxu1 %v4404_v21 }
 0x68e   :  { %1516 = vmatprep.subr.bf16.mxu0 %v4407_v24  ;;  %1557 = vmatprep.subr.bf16.mxu1 %v4410_v33 }
 0x691   :  { %1517 = vmatpush1.bf16.msra.mxu0 %v4413_v34  ;;  %1558 = vmatpush1.bf16.msra.mxu1 %v4416_v26 }
 0x692   :  { %1518 = vmatprep.subr.bf16.mxu0 %v4419_v7  ;;  %1559 = vmatprep.subr.bf16.mxu1 %v4422_v32 }
 0x695   :  { %1519 = vmatpush1.bf16.msra.mxu0 %v4425_v22  ;;  %1560 = vmatpush1.bf16.msra.mxu1 %v4428_v36 }
 0x696   :  { %1520 = vmatprep.subr.bf16.mxu0 %v4431_v28  ;;  %1561 = vmatprep.subr.bf16.mxu1 %v4434_v25 }
 0x699   :  { %1521 = vmatpush1.bf16.msra.mxu0 %v4437_v54  ;;  %1562 = vmatpush1.bf16.msra.mxu1 %v4440_v29 }
 0x69a   :  { %1522 = vmatprep.subr.bf16.mxu0 %v4443_v51  ;;  %1563 = vmatprep.subr.bf16.mxu1 %v4446_v52 }
 0x69d   :  { %1523 = vmatpush1.bf16.msra.mxu0 %v4449_v53  ;;  %1564 = vmatpush1.bf16.msra.mxu1 %v4452_v55 }
 0x69e   :  { %1835 = vmatprep.subr.bf16.mxu0 %v3366_v31  ;;  %1908 = vmatprep.subr.bf16.mxu1 %v3369_v30  ;;  %v3408_v31 = vld [vmem:[#allocation10 + $0xe4] ss:$16 sps:$4 sm:$0xff]   ;;  %v3411_v30 = vld [vmem:[#allocation10 + $0xec] ss:$16 sps:$4 sm:$0xff]  }
 0x753   :  { %v1432_v23 = vpop.f32.mrb[40].mxu0  ;;  %v1473_v1 = vpop.f32.mrb[40].mxu1 }
 0x754   :  { %v1480_v27 = vadd.f32 %v1432_v23, %v5117_v12  ;;  %v1482_v11 = vadd.f32 %v1473_v1, %v5118_v10  ;;  %v1434_v38 = vpop.f32.mrb[41].mxu0  ;;  %v1475_v39 = vpop.f32.mrb[41].mxu1  ;;  %v3406_v23 = vld [vmem:[#allocation10 + $0xe0] ss:$16 sps:$4 sm:$0xff]   ;;  %v3409_v1 = vld [vmem:[#allocation10 + $0xe8] ss:$16 sps:$4 sm:$0xff]  }
 0x755   :  { %v1481_v41 = vadd.f32 %v1434_v38, %v5119_v40  ;;  %v1483_v20 = vadd.f32 %v1475_v39, %v5120_v16  ;;  %v1436_v21 = vpop.f32.mrb[42].mxu0  ;;  %v1477_v24 = vpop.f32.mrb[42].mxu1  ;;  %v1617_v12 = vld [vmem:[#allocation2] sm:$0xff]  ;;  %v1619_v10 = vld [vmem:[#allocation2 + $0x10] sm:$0xff]  ;;  %v4519_v40 = vld [vmem:[#allocation12 + $0x8] ss:$16 sps:$4 sm:$0xff]  }
 0x756   :  { %v1484_v33 = vmul.f32 0.5, %v1480_v27  ;;  %v1437_v34 = vpop.f32.mrb[43].mxu0  ;;  %v1478_v26 = vpop.f32.mrb[43].mxu1  ;;  %v1618_v27 = vld [vmem:[#allocation2 + $0x8] sm:$0xff]  ;;  %v4517_v39 = vld [vmem:[#allocation12] ss:$16 sps:$4 sm:$0xff]  }
 0x757   :  { %v1488_v7 = vmul.f32 0.5, %v1481_v41  ;;  %v1493_v32 = vmul.f32 0.5, %v1483_v20  ;;  %v4515_v38 = vld [vmem:[#allocation12 + $0xc] ss:$16 sps:$4 sm:$0xff]   ;;  %v4525_v41 = vld [vmem:[#allocation12 + $0x24] ss:$16 sps:$4 sm:$0xff]  }
 0x758   :  { %3520 = vtanh.f32 %v1484_v33  ;;  %v4527_v16 = vld [vmem:[#allocation12 + $0x2c] ss:$16 sps:$4 sm:$0xff]   ;;  %v4529_v20 = vld [vmem:[#allocation12 + $0x20] ss:$16 sps:$4 sm:$0xff]   ;;  %v4531_v21 = vld [vmem:[#allocation12 + $0x28] ss:$16 sps:$4 sm:$0xff]  }
 0x759   :  { %3522 = vtanh.f32 %v1488_v7  ;;  %v4537_v24 = vld [vmem:[#allocation12 + $0x44] ss:$16 sps:$4 sm:$0xff]   ;;  %v4539_v33 = vld [vmem:[#allocation12 + $0x4c] ss:$16 sps:$4 sm:$0xff]   ;;  %v4541_v34 = vld [vmem:[#allocation12 + $0x40] ss:$16 sps:$4 sm:$0xff]  }
 0x75a   :  { %3524 = vtanh.f32 %v1482_v11  ;;  %v4513_v11 = vld [vmem:[#allocation12 + $0x4] ss:$16 sps:$4 sm:$0xff]   ;;  %v4543_v26 = vld [vmem:[#allocation12 + $0x48] ss:$16 sps:$4 sm:$0xff]  }
 0x75b   :  { %3526 = vtanh.f32 %v1493_v32  ;;  %v4549_v7 = vld [vmem:[#allocation12 + $0x64] ss:$16 sps:$4 sm:$0xff]   ;;  %v4551_v32 = vld [vmem:[#allocation12 + $0x6c] ss:$16 sps:$4 sm:$0xff]  }
 0x762   :  { %v3521_v22 = vpop.eup %3520 }
 0x763   :  { %v3523_v36 = vpop.eup %3522  ;;  %v1486_v28 = vmul.f32 0.5, %v3521_v22  ;;  %v4553_v22 = vld [vmem:[#allocation12 + $0x60] ss:$16 sps:$4 sm:$0xff]  }
 0x764   :  { %v1490_v25 = vmul.f32 0.5, %v3523_v36  ;;  %v3525_v29 = vpop.eup %3524  ;;  %v4555_v36 = vld [vmem:[#allocation12 + $0x68] ss:$16 sps:$4 sm:$0xff]  }
 0x765   :  { %v1487_v54 = vadd.f32 0.5, %v1486_v28  ;;  %v3527_v60 = vpop.eup %3526  ;;  %v4561_v28 = vld [vmem:[#allocation12 + $0x84] ss:$16 sps:$4 sm:$0xff]  }
 0x766   :  { %v1491_v51 = vadd.f32 0.5, %v1490_v25  ;;  %v1495_v61 = vmul.f32 0.5, %v3527_v60  ;;  %v4563_v25 = vld [vmem:[#allocation12 + $0x8c] ss:$16 sps:$4 sm:$0xff]   ;;  %v4581_v60 = vld [vmem:[#allocation12 + $0xa8] ss:$16 sps:$4 sm:$0xff]  }
 0x767   :  { %v1498_v52 = vmul.f32 %v3525_v29, %v1487_v54  ;;  %v4565_v54 = vld [vmem:[#allocation12 + $0x80] ss:$16 sps:$4 sm:$0xff]   ;;  %v4567_v29 = vld [vmem:[#allocation12 + $0x88] ss:$16 sps:$4 sm:$0xff]  }
 0x768   :  { %v1497_v53 = vmul.f32 %v1491_v51, %v4462_v35  ;;  %v1496_v62 = vadd.f32 0.5, %v1495_v61  ;;  %v3396_v35 = vld [vmem:[#allocation10 + $0xa4] ss:$16 sps:$4 sm:$0xff]  }
 0x769   :  { %v4573_v51 = vld [vmem:[#allocation12 + $0xa4] ss:$16 sps:$4 sm:$0xff]  }
 0x76a   :  { %v4502_v55 = vadd.f32 %v1498_v52, %v1497_v53  ;;  %v4575_v52 = vld [vmem:[#allocation12 + $0xac] ss:$16 sps:$4 sm:$0xff]   ;;  %v4579_v53 = vld [vmem:[#allocation12 + $0xa0] ss:$16 sps:$4 sm:$0xff]   ;;  %v4585_v61 = vld [vmem:[#allocation12 + $0xc4] ss:$16 sps:$4 sm:$0xff]  }
 0x76c   :  { %3528 = vtanh.f32 %v4502_v55 }
 0x776   :  { %v3529_v0 = vpop.eup %3528 }
 0x777   :  { %v1501_v2 = vmul.f32 %v3529_v0, %v1496_v62  ;;  %v4587_v62 = vld [vmem:[#allocation12 + $0xcc] ss:$16 sps:$4 sm:$0xff]   ;;  %v4589_v0 = vld [vmem:[#allocation12 + $0xc0] ss:$16 sps:$4 sm:$0xff]  }
 0x779   :  { %v1502_v5 = vpack.c.bf16 %v1501_v2, %v1501_v2  ;;  %v4591_v2 = vld [vmem:[#allocation12 + $0xc8] ss:$16 sps:$4 sm:$0xff]  }
 0x77b   :  { %1503 = vst [vmem:[#allocation2 + $0x18] sm:$0xf] %v1502_v5  ;;  %1541 = vmatmul.mubr.bf16.vlgmr.msra.gmra.mrb[44].mxu0 %v1502_v5  ;;  %1582 = vmatmul.mubr.bf16.vlgmr.msra.gmra.mrb[44].mxu1 %v1502_v5  ;;  %v4601_v5 = vld [vmem:[#allocation12 + $0xe0] ss:$16 sps:$4 sm:$0xff]  }
 0x77c   :  { %1836 = vmatpush1.bf16.msra.mxu0 %v3364_v3  ;;  %1909 = vmatpush1.bf16.msra.mxu1 %v3367_v4  ;;  %v4597_v3 = vld [vmem:[#allocation12 + $0xe4] ss:$16 sps:$4 sm:$0xff]   ;;  %v4599_v4 = vld [vmem:[#allocation12 + $0xec] ss:$16 sps:$4 sm:$0xff]  }
 0x77d   :  { %1837 = vmatprep.subr.bf16.mxu0 %v3372_v6  ;;  %1910 = vmatprep.subr.bf16.mxu1 %v3375_v42  ;;  %v4603_v6 = vld [vmem:[#allocation12 + $0xe8] ss:$16 sps:$4 sm:$0xff]  }
 0x77e   :  { %1867 = vmatprep.mubr.bf16.mxu0 %v5103_v9  ;;  %1940 = vmatprep.mubr.bf16.mxu1 %v5103_v9 }
 0x780   :  { %1838 = vmatpush1.bf16.msra.mxu0 %v3370_v43  ;;  %1911 = vmatpush1.bf16.msra.mxu1 %v3373_v44  ;;  %v5121_v44 = vld [vmem:[#allocation34_spill] sm:$0xff] }
 0x781   :  { %1839 = vmatprep.subr.bf16.mxu0 %v3378_v46  ;;  %1912 = vmatprep.subr.bf16.mxu1 %v3381_v37  ;;  %v5122_v37 = vld [vmem:[#allocation35_spill] sm:$0xff] }
 0x784   :  { %1840 = vmatpush1.bf16.msra.mxu0 %v3376_v50  ;;  %1913 = vmatpush1.bf16.msra.mxu1 %v3379_v47 }
 0x785   :  { %1841 = vmatprep.subr.bf16.mxu0 %v3384_v48  ;;  %1914 = vmatprep.subr.bf16.mxu1 %v3387_v49  ;;  %v5123_v49 = vld [vmem:[#allocation36_spill] sm:$0xff] }
 0x788   :  { %1842 = vmatpush1.bf16.msra.mxu0 %v3382_v63  ;;  %1915 = vmatpush1.bf16.msra.mxu1 %v3385_v45  ;;  %v5124_v45 = vld [vmem:[#allocation37_spill] sm:$0xff] }
 0x789   :  { %1843 = vmatprep.subr.bf16.mxu0 %v3390_v15  ;;  %1916 = vmatprep.subr.bf16.mxu1 %v3393_v14 }
 0x78c   :  { %1844 = vmatpush1.bf16.msra.mxu0 %v3388_v17  ;;  %1917 = vmatpush1.bf16.msra.mxu1 %v3391_v18 }
 0x78d   :  { %1845 = vmatprep.subr.bf16.mxu0 %v3396_v35  ;;  %1918 = vmatprep.subr.bf16.mxu1 %v3399_v19 }
 0x790   :  { %1846 = vmatpush1.bf16.msra.mxu0 %v3394_v8  ;;  %1919 = vmatpush1.bf16.msra.mxu1 %v3397_v13 }
 0x791   :  { %1847 = vmatprep.subr.bf16.mxu0 %v3402_v56  ;;  %1920 = vmatprep.subr.bf16.mxu1 %v3405_v57 }
 0x794   :  { %1848 = vmatpush1.bf16.msra.mxu0 %v3400_v58  ;;  %1921 = vmatpush1.bf16.msra.mxu1 %v3403_v59 }
 0x795   :  { %1849 = vmatprep.subr.bf16.mxu0 %v3408_v31  ;;  %1922 = vmatprep.subr.bf16.mxu1 %v3411_v30 }
 0x798   :  { %1850 = vmatpush1.bf16.msra.mxu0 %v3406_v23  ;;  %1923 = vmatpush1.bf16.msra.mxu1 %v3409_v1 }
 0x799   :  { %2209 = vmatprep.subr.bf16.mxu0 %v4513_v11  ;;  %2250 = vmatprep.subr.bf16.mxu1 %v4515_v38 }
 0x79b   :  { %1868 = vmatmul.mubr.bf16.vlgmr.msra.gmra.mrb[48].mxu0 %v1617_v12  ;;  %1941 = vmatmul.mubr.bf16.vlgmr.msra.gmra.mrb[48].mxu1 %v1617_v12 }
 0x79c   :  { %1877 = vmatprep.mubr.bf16.mxu0 %v5103_v9  ;;  %1950 = vmatprep.mubr.bf16.mxu1 %v5103_v9 }
 0x79d   :  { %2210 = vmatpush1.bf16.msra.mxu0 %v4517_v39  ;;  %2251 = vmatpush1.bf16.msra.mxu1 %v4519_v40 }
 0x79e   :  { %2211 = vmatprep.subr.bf16.mxu0 %v4525_v41  ;;  %2252 = vmatprep.subr.bf16.mxu1 %v4527_v16 }
 0x7a1   :  { %2212 = vmatpush1.bf16.msra.mxu0 %v4529_v20  ;;  %2253 = vmatpush1.bf16.msra.mxu1 %v4531_v21 }
 0x7a2   :  { %2213 = vmatprep.subr.bf16.mxu0 %v4537_v24  ;;  %2254 = vmatprep.subr.bf16.mxu1 %v4539_v33 }
 0x7a3   :  { %1878 = vmatmul.mubr.bf16.gmra.mrb[52].mxu0 %v1618_v27  ;;  %1951 = vmatmul.mubr.bf16.gmra.mrb[52].mxu1 %v1618_v27 }
 0x7a4   :  { %1887 = vmatprep.mubr.bf16.mxu0 %v5103_v9  ;;  %1960 = vmatprep.mubr.bf16.mxu1 %v5103_v9 }
 0x7a5   :  { %2214 = vmatpush1.bf16.msra.mxu0 %v4541_v34  ;;  %2255 = vmatpush1.bf16.msra.mxu1 %v4543_v26 }
 0x7a6   :  { %2215 = vmatprep.subr.bf16.mxu0 %v4549_v7  ;;  %2256 = vmatprep.subr.bf16.mxu1 %v4551_v32 }
 0x7a9   :  { %2216 = vmatpush1.bf16.msra.mxu0 %v4553_v22  ;;  %2257 = vmatpush1.bf16.msra.mxu1 %v4555_v36 }
 0x7aa   :  { %2217 = vmatprep.subr.bf16.mxu0 %v4561_v28  ;;  %2258 = vmatprep.subr.bf16.mxu1 %v4563_v25 }
 0x7ab   :  { %1888 = vmatmul.mubr.bf16.gmra.mrb[56].mxu0 %v1619_v10  ;;  %1961 = vmatmul.mubr.bf16.gmra.mrb[56].mxu1 %v1619_v10 }
 0x7ac   :  { %1897 = vmatprep.mubr.bf16.mxu0 %v5103_v9  ;;  %1970 = vmatprep.mubr.bf16.mxu1 %v5103_v9 }
 0x7ad   :  { %2218 = vmatpush1.bf16.msra.mxu0 %v4565_v54  ;;  %2259 = vmatpush1.bf16.msra.mxu1 %v4567_v29 }
 0x7ae   :  { %2219 = vmatprep.subr.bf16.mxu0 %v4573_v51  ;;  %2260 = vmatprep.subr.bf16.mxu1 %v4575_v52 }
 0x7b1   :  { %2220 = vmatpush1.bf16.msra.mxu0 %v4579_v53  ;;  %2261 = vmatpush1.bf16.msra.mxu1 %v4581_v60 }
 0x7b2   :  { %2221 = vmatprep.subr.bf16.mxu0 %v4585_v61  ;;  %2262 = vmatprep.subr.bf16.mxu1 %v4587_v62 }
 0x7b5   :  { %2222 = vmatpush1.bf16.msra.mxu0 %v4589_v0  ;;  %2263 = vmatpush1.bf16.msra.mxu1 %v4591_v2 }
 0x7b6   :  { %2223 = vmatprep.subr.bf16.mxu0 %v4597_v3  ;;  %2264 = vmatprep.subr.bf16.mxu1 %v4599_v4 }
 0x7b9   :  { %2224 = vmatpush1.bf16.msra.mxu0 %v4601_v5  ;;  %2265 = vmatpush1.bf16.msra.mxu1 %v4603_v6 }
 0x7ba   :  { %2318 = vmatprep.subr.bf16.mxu0 %v4513_v11  ;;  %2359 = vmatprep.subr.bf16.mxu1 %v4515_v38 }
 0x84e   :  { %v1542_v42 = vpop.f32.mrb[44].mxu0  ;;  %v1583_v43 = vpop.f32.mrb[44].mxu1 }
 0x84f   :  { %v1590_v46 = vadd.f32 %v1542_v42, %v5121_v44  ;;  %v1592_v50 = vadd.f32 %v1583_v43, %v5122_v37  ;;  %v1544_v47 = vpop.f32.mrb[45].mxu0  ;;  %v1585_v48 = vpop.f32.mrb[45].mxu1 }
 0x850   :  { %v1591_v63 = vadd.f32 %v1544_v47, %v5123_v49  ;;  %v1593_v15 = vadd.f32 %v1585_v48, %v5124_v45  ;;  %v1546_v14 = vpop.f32.mrb[46].mxu0  ;;  %v1587_v17 = vpop.f32.mrb[46].mxu1 }
 0x851   :  { %v1594_v18 = vmul.f32 0.5, %v1590_v46  ;;  %v1547_v35 = vpop.f32.mrb[47].mxu0  ;;  %v1588_v19 = vpop.f32.mrb[47].mxu1 }
 0x852   :  { %v1598_v8 = vmul.f32 0.5, %v1591_v63  ;;  %v1603_v13 = vmul.f32 0.5, %v1593_v15 }
 0x853   :  { %3530 = vtanh.f32 %v1594_v18 }
 0x854   :  { %3532 = vtanh.f32 %v1598_v8 }
 0x855   :  { %3534 = vtanh.f32 %v1592_v50 }
 0x856   :  { %3536 = vtanh.f32 %v1603_v13 }
 0x85d   :  { %v3531_v56 = vpop.eup %3530 }
 0x85e   :  { %v3533_v57 = vpop.eup %3532  ;;  %v1596_v58 = vmul.f32 0.5, %v3531_v56 }
 0x85f   :  { %v1600_v59 = vmul.f32 0.5, %v3533_v57  ;;  %v3535_v30 = vpop.eup %3534 }
 0x860   :  { %v1597_v31 = vadd.f32 0.5, %v1596_v58  ;;  %v3537_v10 = vpop.eup %3536 }
 0x861   :  { %v1601_v23 = vadd.f32 0.5, %v1600_v59  ;;  %v1605_v42 = vmul.f32 0.5, %v3537_v10 }
 0x862   :  { %v1608_v1 = vmul.f32 %v3535_v30, %v1597_v31 }
 0x863   :  { %v1607_v12 = vmul.f32 %v1601_v23, %v4502_v55  ;;  %v1606_v50 = vadd.f32 0.5, %v1605_v42  ;;  %v1653_v42 = vld [vmem:[%s5068_s7] sm:$0xf] }
 0x865   :  { %v1609_v27 = vadd.f32 %v1608_v1, %v1607_v12 }
 0x867   :  { %3538 = vtanh.f32 %v1609_v27 }
 0x86e   :  { %v4616_v43 = vpop.f32.mrb[48].mxu0  ;;  %v4618_v44 = vpop.f32.mrb[48].mxu1 }
 0x86f   :  { %v4620_v46 = vpop.f32.mrb[49].mxu0  ;;  %v4622_v37 = vpop.f32.mrb[49].mxu1 }
 0x870   :  { %v4624_v47 = vpop.f32.mrb[50].mxu0  ;;  %v4626_v48 = vpop.f32.mrb[50].mxu1 }
 0x871   :  { %v3539_v49 = vpop.eup %3538  ;;  %v4628_v63 = vpop.f32.mrb[51].mxu0 }
 0x872   :  { %v4630_v55 = vpop.f32.mrb[51].mxu1  ;;  %v1611_v45 = vmul.f32 %v3539_v49, %v1606_v50 }
 0x874   :  { %v1612_v15 = vpack.c.bf16 %v1611_v45, %v1611_v45 }
 0x876   :  { %v1614_v14 = vrot.slane %v1612_v15, 4  ;;  %v4632_v17 = vpop.f32.mrb[52].mxu0  ;;  %v4634_v18 = vpop.f32.mrb[52].mxu1 }
 0x877   :  { %5125 = vst [vmem:[#allocation17_spill] sm:$0xff] %v4632_v17  ;;  %5126 = vst [vmem:[#allocation18_spill] sm:$0xff] %v4634_v18  ;;  %v4636_v35 = vpop.f32.mrb[53].mxu0  ;;  %v4638_v19 = vpop.f32.mrb[53].mxu1 }
 0x878   :  { %5127 = vst [vmem:[#allocation19_spill] sm:$0xff] %v4636_v35  ;;  %5128 = vst [vmem:[#allocation20_spill] sm:$0xff] %v4638_v19  ;;  %v4640_v8 = vpop.f32.mrb[54].mxu0  ;;  %v4642_v13 = vpop.f32.mrb[54].mxu1 }
 0x879   :  { %1616 = vst [vmem:[#allocation2 + $0x18] sm:$0xf0] %v1614_v14  ;;  %5129 = vst [vmem:[#allocation21_spill] sm:$0xff] %v4640_v8  ;;  %v4644_v56 = vpop.f32.mrb[55].mxu0  ;;  %v4646_v57 = vpop.f32.mrb[55].mxu1 }
 0x87a   :  { %5130 = vst [vmem:[#allocation22_spill] sm:$0xff] %v4642_v13  ;;  %5131 = vst [vmem:[#allocation23_spill] sm:$0xff] %v4644_v56 }
 0x87b   :  { %5132 = vst [vmem:[#allocation24_spill] sm:$0xff] %v4646_v57 }
 0x87e   :  { %v4648_v58 = vpop.f32.mrb[56].mxu0  ;;  %v4650_v59 = vpop.f32.mrb[56].mxu1 }
 0x87f   :  { %5133 = vst [vmem:[#allocation25_spill] sm:$0xff] %v4648_v58  ;;  %5134 = vst [vmem:[#allocation26_spill] sm:$0xff] %v4650_v59  ;;  %v4652_v31 = vpop.f32.mrb[57].mxu0  ;;  %v4654_v30 = vpop.f32.mrb[57].mxu1 }
 0x880   :  { %5135 = vst [vmem:[#allocation27_spill] sm:$0xff] %v4652_v31  ;;  %5136 = vst [vmem:[#allocation28_spill] sm:$0xff] %v4654_v30  ;;  %v1620_v23 = vld [vmem:[#allocation2 + $0x18] sm:$0xff]  ;;  %v4656_v1 = vpop.f32.mrb[58].mxu0  ;;  %v4658_v12 = vpop.f32.mrb[58].mxu1 }
 0x881   :  { %5137 = vst [vmem:[#allocation29_spill] sm:$0xff] %v4656_v1  ;;  %5138 = vst [vmem:[#allocation30_spill] sm:$0xff] %v4658_v12  ;;  %1898 = vmatmul.mubr.bf16.gmra.mrb[60].mxu0 %v1620_v23  ;;  %1971 = vmatmul.mubr.bf16.gmra.mrb[60].mxu1 %v1620_v23  ;;  %v4660_v27 = vpop.f32.mrb[59].mxu0  ;;  %v4662_v10 = vpop.f32.mrb[59].mxu1 }
 0x882   :  { %5139 = vst [vmem:[#allocation31_spill] sm:$0xff] %v4660_v27  ;;  %5140 = vst [vmem:[#allocation32_spill] sm:$0xff] %v4662_v10  ;;  %2241 = vmatprep.mubr.bf16.mxu0 %v5103_v9  ;;  %2282 = vmatprep.mubr.bf16.mxu1 %v5103_v9  ;;  %v5147_v10 = vld [vmem:[#allocation16_spill] sm:$0xff] }
 0x883   :  { %v5148_v27 = vsub.s32 0, %v5147_v10  ;;  %v5149_v1 = vsub.s32 2, %v5147_v10 }
 0x885   :  { %v4719_v12 = vrot.slane %v1653_v42, %v5148_v27  ;;  %v4723_v30 = vrot.slane %v1653_v42, %v5149_v1 }
 0x887   :  { %v1870_v27 = vadd.f32 %v4616_v43, %v4719_v12 }
 0x889   :  { %2242 = vmatmul.mubr.bf16.vlgmr.msra.gmra.mrb[64].mxu0 %v5103_v9  ;;  %2283 = vmatmul.mubr.bf16.vlgmr.msra.gmra.mrb[64].mxu1 %v5103_v9 }
 0x88a   :  { %2319 = vmatpush1.bf16.msra.mxu0 %v4517_v39  ;;  %2360 = vmatpush1.bf16.msra.mxu1 %v4519_v40 }
 0x88b   :  { %2320 = vmatprep.subr.bf16.mxu0 %v4525_v41  ;;  %2361 = vmatprep.subr.bf16.mxu1 %v4527_v16 }
 0x88c   :  { %2350 = vmatprep.mubr.bf16.mxu0 %v5103_v9  ;;  %2391 = vmatprep.mubr.bf16.mxu1 %v5103_v9 }
 0x88e   :  { %2321 = vmatpush1.bf16.msra.mxu0 %v4529_v20  ;;  %2362 = vmatpush1.bf16.msra.mxu1 %v4531_v21 }
 0x88f   :  { %2322 = vmatprep.subr.bf16.mxu0 %v4537_v24  ;;  %2363 = vmatprep.subr.bf16.mxu1 %v4539_v33 }
 0x892   :  { %2323 = vmatpush1.bf16.msra.mxu0 %v4541_v34  ;;  %2364 = vmatpush1.bf16.msra.mxu1 %v4543_v26 }
 0x893   :  { %2324 = vmatprep.subr.bf16.mxu0 %v4549_v7  ;;  %2365 = vmatprep.subr.bf16.mxu1 %v4551_v32 }
 0x896   :  { %2325 = vmatpush1.bf16.msra.mxu0 %v4553_v22  ;;  %2366 = vmatpush1.bf16.msra.mxu1 %v4555_v36 }
 0x897   :  { %2326 = vmatprep.subr.bf16.mxu0 %v4561_v28  ;;  %2367 = vmatprep.subr.bf16.mxu1 %v4563_v25 }
 0x89a   :  { %2327 = vmatpush1.bf16.msra.mxu0 %v4565_v54  ;;  %2368 = vmatpush1.bf16.msra.mxu1 %v4567_v29 }
 0x89b   :  { %2328 = vmatprep.subr.bf16.mxu0 %v4573_v51  ;;  %2369 = vmatprep.subr.bf16.mxu1 %v4575_v52 }
 0x89e   :  { %2329 = vmatpush1.bf16.msra.mxu0 %v4579_v53  ;;  %2370 = vmatpush1.bf16.msra.mxu1 %v4581_v60 }
 0x89f   :  { %2330 = vmatprep.subr.bf16.mxu0 %v4585_v61  ;;  %2371 = vmatprep.subr.bf16.mxu1 %v4587_v62 }
 0x8a2   :  { %2331 = vmatpush1.bf16.msra.mxu0 %v4589_v0  ;;  %2372 = vmatpush1.bf16.msra.mxu1 %v4591_v2 }
 0x8a3   :  { %2332 = vmatprep.subr.bf16.mxu0 %v4597_v3  ;;  %2373 = vmatprep.subr.bf16.mxu1 %v4599_v4 }
 0x8a6   :  { %2333 = vmatpush1.bf16.msra.mxu0 %v4601_v5  ;;  %2374 = vmatpush1.bf16.msra.mxu1 %v4603_v6 }
 0x8a7   :  { %2427 = vmatprep.subr.bf16.mxu0 %v4513_v11  ;;  %2468 = vmatprep.subr.bf16.mxu1 %v4515_v38 }
 0x954   :  { %v4705_v50 = vpop.f32.mrb[60].mxu0  ;;  %v4707_v49 = vpop.f32.mrb[60].mxu1 }
 0x955   :  { %5141 = vst [vmem:[#allocation33_spill] sm:$0xff] %v4705_v50  ;;  %5142 = vst [vmem:[#allocation34_spill] sm:$0xff] %v4707_v49  ;;  %v4709_v45 = vpop.f32.mrb[61].mxu0  ;;  %v4711_v15 = vpop.f32.mrb[61].mxu1 }
 0x956   :  { %5143 = vst [vmem:[#allocation35_spill] sm:$0xff] %v4709_v45  ;;  %5144 = vst [vmem:[#allocation36_spill] sm:$0xff] %v4711_v15  ;;  %v4713_v14 = vpop.f32.mrb[62].mxu0  ;;  %v4715_v23 = vpop.f32.mrb[62].mxu1  ;;  %v5152_v45 = vsub.s32 1, %v5147_v10 }
 0x957   :  { %5145 = vst [vmem:[#allocation37_spill] sm:$0xff] %v4713_v14  ;;  %5146 = vst [vmem:[#allocation38_spill] sm:$0xff] %v4715_v23  ;;  %v4725_v31 = vpop.f32.mrb[63].mxu0  ;;  %v4727_v50 = vpop.f32.mrb[63].mxu1  ;;  %v5153_v14 = vsub.s32 3, %v5147_v10  ;;  %v1943_v23 = vadd.f32 %v4618_v44, %v4723_v30 }
 0x958   :  { %5150 = vst [vmem:[#allocation16_spill] sm:$0xff] %v4725_v31  ;;  %5151 = vst [vmem:[#allocation39_spill] sm:$0xff] %v4727_v50  ;;  %v4731_v49 = vrot.slane %v1653_v42, %v5152_v45 }
 0x959   :  { %v4735_v15 = vrot.slane %v1653_v42, %v5153_v14 }
 0x95a   :  { %v1872_v1 = vadd.f32 %v4620_v46, %v4731_v49 }
 0x95b   :  { %v1945_v50 = vadd.f32 %v4622_v37, %v4735_v15 }
 0x95c   :  { %v2243_v31 = vpop.f32.mrb[64].mxu0  ;;  %v2284_v59 = vpop.f32.mrb[64].mxu1 }
 0x95d   :  { %v2291_v45 = vadd.f32 %v2243_v31, %v1870_v27  ;;  %v2293_v58 = vadd.f32 %v2284_v59, %v1943_v23  ;;  %v2245_v57 = vpop.f32.mrb[65].mxu0  ;;  %v2286_v10 = vpop.f32.mrb[65].mxu1 }
 0x95e   :  { %v2292_v42 = vadd.f32 %v2245_v57, %v1872_v1  ;;  %v2294_v14 = vadd.f32 %v2286_v10, %v1945_v50  ;;  %v2247_v56 = vpop.f32.mrb[66].mxu0  ;;  %v2288_v13 = vpop.f32.mrb[66].mxu1 }
 0x95f   :  { %v2295_v43 = vmul.f32 0.5, %v2291_v45  ;;  %v2248_v8 = vpop.f32.mrb[67].mxu0  ;;  %v2289_v19 = vpop.f32.mrb[67].mxu1  ;;  %v1949_v45 = vadd.f32 %v4630_v55, %v4735_v15 }
 0x960   :  { %v2299_v44 = vmul.f32 0.5, %v2292_v42  ;;  %v2304_v46 = vmul.f32 0.5, %v2294_v14 }
 0x961   :  { %3540 = vtanh.f32 %v2295_v43 }
 0x962   :  { %3542 = vtanh.f32 %v2299_v44 }
 0x963   :  { %3544 = vtanh.f32 %v2293_v58 }
 0x964   :  { %3546 = vtanh.f32 %v2304_v46 }
 0x96b   :  { %v3541_v35 = vpop.eup %3540 }
 0x96c   :  { %v3543_v37 = vpop.eup %3542  ;;  %v2297_v18 = vmul.f32 0.5, %v3541_v35  ;;  %v1876_v35 = vadd.f32 %v4628_v63, %v4731_v49 }
 0x96d   :  { %v2301_v17 = vmul.f32 0.5, %v3543_v37  ;;  %v3545_v31 = vpop.eup %3544 }
 0x96e   :  { %v2298_v59 = vadd.f32 0.5, %v2297_v18  ;;  %v3547_v19 = vpop.eup %3546  ;;  %v1947_v18 = vadd.f32 %v4626_v48, %v4723_v30 }
 0x96f   :  { %v2302_v23 = vadd.f32 0.5, %v2301_v17  ;;  %v2306_v8 = vmul.f32 0.5, %v3547_v19  ;;  %v1874_v17 = vadd.f32 %v4624_v47, %v4719_v12 }
 0x970   :  { %v2309_v57 = vmul.f32 %v3545_v31, %v2298_v59 }
 0x971   :  { %v2308_v50 = vmul.f32 0.0, %v2302_v23  ;;  %v2307_v13 = vadd.f32 0.5, %v2306_v8 }
 0x973   :  { %v4745_v56 = vadd.f32 %v2309_v57, %v2308_v50 }
 0x975   :  { %3548 = vtanh.f32 %v4745_v56 }
 0x97f   :  { %v3549_v27 = vpop.eup %3548 }
 0x980   :  { %v2312_v58 = vmul.f32 %v3549_v27, %v2307_v13 }
 0x982   :  { %v2317_v1 = vpack.c.bf16 %v2312_v58, %v2312_v58 }
 0x984   :  { %2351 = vmatmul.mubr.bf16.vlgmr.msra.gmra.mrb[68].mxu0 %v2317_v1  ;;  %2392 = vmatmul.mubr.bf16.vlgmr.msra.gmra.mrb[68].mxu1 %v2317_v1 }
 0x985   :  { %2428 = vmatpush1.bf16.msra.mxu0 %v4517_v39  ;;  %2469 = vmatpush1.bf16.msra.mxu1 %v4519_v40 }
 0x986   :  { %2429 = vmatprep.subr.bf16.mxu0 %v4525_v41  ;;  %2470 = vmatprep.subr.bf16.mxu1 %v4527_v16 }
 0x987   :  { %2459 = vmatprep.mubr.bf16.mxu0 %v5103_v9  ;;  %2500 = vmatprep.mubr.bf16.mxu1 %v5103_v9 }
 0x989   :  { %2430 = vmatpush1.bf16.msra.mxu0 %v4529_v20  ;;  %2471 = vmatpush1.bf16.msra.mxu1 %v4531_v21 }
 0x98a   :  { %2431 = vmatprep.subr.bf16.mxu0 %v4537_v24  ;;  %2472 = vmatprep.subr.bf16.mxu1 %v4539_v33 }
 0x98d   :  { %2432 = vmatpush1.bf16.msra.mxu0 %v4541_v34  ;;  %2473 = vmatpush1.bf16.msra.mxu1 %v4543_v26 }
 0x98e   :  { %2433 = vmatprep.subr.bf16.mxu0 %v4549_v7  ;;  %2474 = vmatprep.subr.bf16.mxu1 %v4551_v32 }
 0x991   :  { %2434 = vmatpush1.bf16.msra.mxu0 %v4553_v22  ;;  %2475 = vmatpush1.bf16.msra.mxu1 %v4555_v36 }
 0x992   :  { %2435 = vmatprep.subr.bf16.mxu0 %v4561_v28  ;;  %2476 = vmatprep.subr.bf16.mxu1 %v4563_v25 }
 0x995   :  { %2436 = vmatpush1.bf16.msra.mxu0 %v4565_v54  ;;  %2477 = vmatpush1.bf16.msra.mxu1 %v4567_v29 }
 0x996   :  { %2437 = vmatprep.subr.bf16.mxu0 %v4573_v51  ;;  %2478 = vmatprep.subr.bf16.mxu1 %v4575_v52 }
 0x999   :  { %2438 = vmatpush1.bf16.msra.mxu0 %v4579_v53  ;;  %2479 = vmatpush1.bf16.msra.mxu1 %v4581_v60 }
 0x99a   :  { %2439 = vmatprep.subr.bf16.mxu0 %v4585_v61  ;;  %2480 = vmatprep.subr.bf16.mxu1 %v4587_v62 }
 0x99d   :  { %2440 = vmatpush1.bf16.msra.mxu0 %v4589_v0  ;;  %2481 = vmatpush1.bf16.msra.mxu1 %v4591_v2 }
 0x99e   :  { %2441 = vmatprep.subr.bf16.mxu0 %v4597_v3  ;;  %2482 = vmatprep.subr.bf16.mxu1 %v4599_v4 }
 0x9a1   :  { %2442 = vmatpush1.bf16.msra.mxu0 %v4601_v5  ;;  %2483 = vmatpush1.bf16.msra.mxu1 %v4603_v6 }
 0x9a2   :  { %2536 = vmatprep.subr.bf16.mxu0 %v4513_v11  ;;  %2577 = vmatprep.subr.bf16.mxu1 %v4515_v38 }
 0xa57   :  { %v2352_v10 = vpop.f32.mrb[68].mxu0  ;;  %v2393_v42 = vpop.f32.mrb[68].mxu1 }
 0xa58   :  { %v2400_v14 = vadd.f32 %v2352_v10, %v1874_v17  ;;  %v2402_v43 = vadd.f32 %v2393_v42, %v1947_v18  ;;  %v2354_v44 = vpop.f32.mrb[69].mxu0  ;;  %v2395_v46 = vpop.f32.mrb[69].mxu1 }
 0xa59   :  { %v2401_v37 = vadd.f32 %v2354_v44, %v1876_v35  ;;  %v2403_v59 = vadd.f32 %v2395_v46, %v1949_v45  ;;  %v2356_v31 = vpop.f32.mrb[70].mxu0  ;;  %v2397_v23 = vpop.f32.mrb[70].mxu1 }
 0xa5a   :  { %v2404_v47 = vmul.f32 0.5, %v2400_v14  ;;  %v2357_v57 = vpop.f32.mrb[71].mxu0  ;;  %v2398_v50 = vpop.f32.mrb[71].mxu1  ;;  %v5156_v31 = vld [vmem:[#allocation19_spill] sm:$0xff] }
 0xa5b   :  { %v2408_v48 = vmul.f32 0.5, %v2401_v37  ;;  %v2413_v63 = vmul.f32 0.5, %v2403_v59  ;;  %v5155_v37 = vld [vmem:[#allocation18_spill] sm:$0xff]  ;;  %v1882_v23 = vadd.f32 %v5156_v31, %v4731_v49 }
 0xa5c   :  { %3550 = vtanh.f32 %v2404_v47  ;;  %v1953_v59 = vadd.f32 %v5155_v37, %v4723_v30  ;;  %v5157_v47 = vld [vmem:[#allocation20_spill] sm:$0xff] }
 0xa5d   :  { %3552 = vtanh.f32 %v2408_v48  ;;  %v1955_v57 = vadd.f32 %v5157_v47, %v4735_v15 }
 0xa5e   :  { %3554 = vtanh.f32 %v2402_v43 }
 0xa5f   :  { %3556 = vtanh.f32 %v2413_v63 }
 0xa66   :  { %v3551_v19 = vpop.eup %3550 }
 0xa67   :  { %v3553_v55 = vpop.eup %3552  ;;  %v2406_v8 = vmul.f32 0.5, %v3551_v19 }
 0xa68   :  { %v2410_v13 = vmul.f32 0.5, %v3553_v55  ;;  %v3555_v58 = vpop.eup %3554 }
 0xa69   :  { %v2407_v27 = vadd.f32 0.5, %v2406_v8  ;;  %v3557_v45 = vpop.eup %3556 }
 0xa6a   :  { %v2411_v1 = vadd.f32 0.5, %v2410_v13  ;;  %v2415_v10 = vmul.f32 0.5, %v3557_v45 }
 0xa6b   :  { %v2418_v17 = vmul.f32 %v3555_v58, %v2407_v27 }
 0xa6c   :  { %v2417_v18 = vmul.f32 %v2411_v1, %v4745_v56  ;;  %v2416_v42 = vadd.f32 0.5, %v2415_v10  ;;  %v5154_v56 = vld [vmem:[#allocation17_spill] sm:$0xff] }
 0xa6d   :  { %v1880_v46 = vadd.f32 %v5154_v56, %v4719_v12 }
 0xa6e   :  { %v4791_v35 = vadd.f32 %v2418_v17, %v2417_v18 }
 0xa70   :  { %3558 = vtanh.f32 %v4791_v35 }
 0xa7a   :  { %v3559_v14 = vpop.eup %3558 }
 0xa7b   :  { %v2421_v43 = vmul.f32 %v3559_v14, %v2416_v42 }
 0xa7d   :  { %v2426_v44 = vpack.c.bf16 %v2421_v43, %v2421_v43 }
 0xa7f   :  { %2460 = vmatmul.mubr.bf16.vlgmr.msra.gmra.mrb[72].mxu0 %v2426_v44  ;;  %2501 = vmatmul.mubr.bf16.vlgmr.msra.gmra.mrb[72].mxu1 %v2426_v44 }
 0xa80   :  { %2537 = vmatpush1.bf16.msra.mxu0 %v4517_v39  ;;  %2578 = vmatpush1.bf16.msra.mxu1 %v4519_v40 }
 0xa81   :  { %2538 = vmatprep.subr.bf16.mxu0 %v4525_v41  ;;  %2579 = vmatprep.subr.bf16.mxu1 %v4527_v16 }
 0xa82   :  { %2568 = vmatprep.mubr.bf16.mxu0 %v5103_v9  ;;  %2609 = vmatprep.mubr.bf16.mxu1 %v5103_v9 }
 0xa84   :  { %2539 = vmatpush1.bf16.msra.mxu0 %v4529_v20  ;;  %2580 = vmatpush1.bf16.msra.mxu1 %v4531_v21 }
 0xa85   :  { %2540 = vmatprep.subr.bf16.mxu0 %v4537_v24  ;;  %2581 = vmatprep.subr.bf16.mxu1 %v4539_v33 }
 0xa88   :  { %2541 = vmatpush1.bf16.msra.mxu0 %v4541_v34  ;;  %2582 = vmatpush1.bf16.msra.mxu1 %v4543_v26 }
 0xa89   :  { %2542 = vmatprep.subr.bf16.mxu0 %v4549_v7  ;;  %2583 = vmatprep.subr.bf16.mxu1 %v4551_v32 }
 0xa8c   :  { %2543 = vmatpush1.bf16.msra.mxu0 %v4553_v22  ;;  %2584 = vmatpush1.bf16.msra.mxu1 %v4555_v36 }
 0xa8d   :  { %2544 = vmatprep.subr.bf16.mxu0 %v4561_v28  ;;  %2585 = vmatprep.subr.bf16.mxu1 %v4563_v25 }
 0xa90   :  { %2545 = vmatpush1.bf16.msra.mxu0 %v4565_v54  ;;  %2586 = vmatpush1.bf16.msra.mxu1 %v4567_v29 }
 0xa91   :  { %2546 = vmatprep.subr.bf16.mxu0 %v4573_v51  ;;  %2587 = vmatprep.subr.bf16.mxu1 %v4575_v52 }
 0xa94   :  { %2547 = vmatpush1.bf16.msra.mxu0 %v4579_v53  ;;  %2588 = vmatpush1.bf16.msra.mxu1 %v4581_v60 }
 0xa95   :  { %2548 = vmatprep.subr.bf16.mxu0 %v4585_v61  ;;  %2589 = vmatprep.subr.bf16.mxu1 %v4587_v62 }
 0xa98   :  { %2549 = vmatpush1.bf16.msra.mxu0 %v4589_v0  ;;  %2590 = vmatpush1.bf16.msra.mxu1 %v4591_v2 }
 0xa99   :  { %2550 = vmatprep.subr.bf16.mxu0 %v4597_v3  ;;  %2591 = vmatprep.subr.bf16.mxu1 %v4599_v4 }
 0xa9c   :  { %2551 = vmatpush1.bf16.msra.mxu0 %v4601_v5  ;;  %2592 = vmatpush1.bf16.msra.mxu1 %v4603_v6 }
 0xa9d   :  { %2645 = vmatprep.subr.bf16.mxu0 %v4513_v11  ;;  %2686 = vmatprep.subr.bf16.mxu1 %v4515_v38 }
 0xb52   :  { %v2461_v50 = vpop.f32.mrb[72].mxu0  ;;  %v2502_v48 = vpop.f32.mrb[72].mxu1 }
 0xb53   :  { %v2509_v63 = vadd.f32 %v2461_v50, %v1880_v46  ;;  %v2511_v19 = vadd.f32 %v2502_v48, %v1953_v59  ;;  %v2463_v55 = vpop.f32.mrb[73].mxu0  ;;  %v2504_v8 = vpop.f32.mrb[73].mxu1 }
 0xb54   :  { %v2510_v13 = vadd.f32 %v2463_v55, %v1882_v23  ;;  %v2512_v27 = vadd.f32 %v2504_v8, %v1955_v57  ;;  %v2465_v58 = vpop.f32.mrb[74].mxu0  ;;  %v2506_v1 = vpop.f32.mrb[74].mxu1 }
 0xb55   :  { %v2513_v17 = vmul.f32 0.5, %v2509_v63  ;;  %v2466_v18 = vpop.f32.mrb[75].mxu0  ;;  %v2507_v45 = vpop.f32.mrb[75].mxu1  ;;  %v5160_v58 = vld [vmem:[#allocation23_spill] sm:$0xff] }
 0xb56   :  { %v2517_v10 = vmul.f32 0.5, %v2510_v13  ;;  %v2522_v42 = vmul.f32 0.5, %v2512_v27  ;;  %v5159_v13 = vld [vmem:[#allocation22_spill] sm:$0xff]  ;;  %v1886_v1 = vadd.f32 %v5160_v58, %v4731_v49 }
 0xb57   :  { %3560 = vtanh.f32 %v2513_v17  ;;  %v1957_v27 = vadd.f32 %v5159_v13, %v4723_v30  ;;  %v5161_v17 = vld [vmem:[#allocation24_spill] sm:$0xff] }
 0xb58   :  { %3562 = vtanh.f32 %v2517_v10  ;;  %v1959_v18 = vadd.f32 %v5161_v17, %v4735_v15 }
 0xb59   :  { %3564 = vtanh.f32 %v2511_v19 }
 0xb5a   :  { %3566 = vtanh.f32 %v2522_v42 }
 0xb61   :  { %v3561_v14 = vpop.eup %3560 }
 0xb62   :  { %v3563_v43 = vpop.eup %3562  ;;  %v2515_v44 = vmul.f32 0.5, %v3561_v14 }
 0xb63   :  { %v2519_v56 = vmul.f32 0.5, %v3563_v43  ;;  %v3565_v37 = vpop.eup %3564 }
 0xb64   :  { %v2516_v46 = vadd.f32 0.5, %v2515_v44  ;;  %v3567_v57 = vpop.eup %3566 }
 0xb65   :  { %v2520_v59 = vadd.f32 0.5, %v2519_v56  ;;  %v2524_v50 = vmul.f32 0.5, %v3567_v57 }
 0xb66   :  { %v2527_v31 = vmul.f32 %v3565_v37, %v2516_v46 }
 0xb67   :  { %v2526_v23 = vmul.f32 %v2520_v59, %v4791_v35  ;;  %v2525_v48 = vadd.f32 0.5, %v2524_v50  ;;  %v5158_v35 = vld [vmem:[#allocation21_spill] sm:$0xff] }
 0xb68   :  { %v1884_v8 = vadd.f32 %v5158_v35, %v4719_v12 }
 0xb69   :  { %v4837_v47 = vadd.f32 %v2527_v31, %v2526_v23 }
 0xb6b   :  { %3568 = vtanh.f32 %v4837_v47 }
 0xb75   :  { %v3569_v63 = vpop.eup %3568 }
 0xb76   :  { %v2530_v19 = vmul.f32 %v3569_v63, %v2525_v48 }
 0xb78   :  { %v2535_v55 = vpack.c.bf16 %v2530_v19, %v2530_v19 }
 0xb7a   :  { %2569 = vmatmul.mubr.bf16.vlgmr.msra.gmra.mrb[76].mxu0 %v2535_v55  ;;  %2610 = vmatmul.mubr.bf16.vlgmr.msra.gmra.mrb[76].mxu1 %v2535_v55 }
 0xb7b   :  { %2646 = vmatpush1.bf16.msra.mxu0 %v4517_v39  ;;  %2687 = vmatpush1.bf16.msra.mxu1 %v4519_v40 }
 0xb7c   :  { %2647 = vmatprep.subr.bf16.mxu0 %v4525_v41  ;;  %2688 = vmatprep.subr.bf16.mxu1 %v4527_v16 }
 0xb7d   :  { %2677 = vmatprep.mubr.bf16.mxu0 %v5103_v9  ;;  %2718 = vmatprep.mubr.bf16.mxu1 %v5103_v9 }
 0xb7f   :  { %2648 = vmatpush1.bf16.msra.mxu0 %v4529_v20  ;;  %2689 = vmatpush1.bf16.msra.mxu1 %v4531_v21 }
 0xb80   :  { %2649 = vmatprep.subr.bf16.mxu0 %v4537_v24  ;;  %2690 = vmatprep.subr.bf16.mxu1 %v4539_v33 }
 0xb83   :  { %2650 = vmatpush1.bf16.msra.mxu0 %v4541_v34  ;;  %2691 = vmatpush1.bf16.msra.mxu1 %v4543_v26 }
 0xb84   :  { %2651 = vmatprep.subr.bf16.mxu0 %v4549_v7  ;;  %2692 = vmatprep.subr.bf16.mxu1 %v4551_v32 }
 0xb87   :  { %2652 = vmatpush1.bf16.msra.mxu0 %v4553_v22  ;;  %2693 = vmatpush1.bf16.msra.mxu1 %v4555_v36 }
 0xb88   :  { %2653 = vmatprep.subr.bf16.mxu0 %v4561_v28  ;;  %2694 = vmatprep.subr.bf16.mxu1 %v4563_v25 }
 0xb8b   :  { %2654 = vmatpush1.bf16.msra.mxu0 %v4565_v54  ;;  %2695 = vmatpush1.bf16.msra.mxu1 %v4567_v29 }
 0xb8c   :  { %2655 = vmatprep.subr.bf16.mxu0 %v4573_v51  ;;  %2696 = vmatprep.subr.bf16.mxu1 %v4575_v52 }
 0xb8f   :  { %2656 = vmatpush1.bf16.msra.mxu0 %v4579_v53  ;;  %2697 = vmatpush1.bf16.msra.mxu1 %v4581_v60 }
 0xb90   :  { %2657 = vmatprep.subr.bf16.mxu0 %v4585_v61  ;;  %2698 = vmatprep.subr.bf16.mxu1 %v4587_v62 }
 0xb93   :  { %2658 = vmatpush1.bf16.msra.mxu0 %v4589_v0  ;;  %2699 = vmatpush1.bf16.msra.mxu1 %v4591_v2 }
 0xb94   :  { %2659 = vmatprep.subr.bf16.mxu0 %v4597_v3  ;;  %2700 = vmatprep.subr.bf16.mxu1 %v4599_v4 }
 0xb97   :  { %2660 = vmatpush1.bf16.msra.mxu0 %v4601_v5  ;;  %2701 = vmatpush1.bf16.msra.mxu1 %v4603_v6 }
 0xb98   :  { %2754 = vmatprep.subr.bf16.mxu0 %v4513_v11  ;;  %2795 = vmatprep.subr.bf16.mxu1 %v4515_v38 }
 0xc4d   :  { %v2570_v45 = vpop.f32.mrb[76].mxu0  ;;  %v2611_v10 = vpop.f32.mrb[76].mxu1 }
 0xc4e   :  { %v2618_v42 = vadd.f32 %v2570_v45, %v1884_v8  ;;  %v2620_v14 = vadd.f32 %v2611_v10, %v1957_v27  ;;  %v2572_v43 = vpop.f32.mrb[77].mxu0  ;;  %v2613_v44 = vpop.f32.mrb[77].mxu1 }
 0xc4f   :  { %v2619_v56 = vadd.f32 %v2572_v43, %v1886_v1  ;;  %v2621_v46 = vadd.f32 %v2613_v44, %v1959_v18  ;;  %v2574_v37 = vpop.f32.mrb[78].mxu0  ;;  %v2615_v59 = vpop.f32.mrb[78].mxu1 }
 0xc50   :  { %v2622_v31 = vmul.f32 0.5, %v2618_v42  ;;  %v2575_v23 = vpop.f32.mrb[79].mxu0  ;;  %v2616_v57 = vpop.f32.mrb[79].mxu1 }
 0xc51   :  { %v2626_v50 = vmul.f32 0.5, %v2619_v56  ;;  %v2631_v48 = vmul.f32 0.5, %v2621_v46 }
 0xc52   :  { %3570 = vtanh.f32 %v2622_v31 }
 0xc53   :  { %3572 = vtanh.f32 %v2626_v50 }
 0xc54   :  { %3574 = vtanh.f32 %v2620_v14 }
 0xc55   :  { %3576 = vtanh.f32 %v2631_v48 }
 0xc5c   :  { %v3571_v63 = vpop.eup %3570 }
 0xc5d   :  { %v3573_v19 = vpop.eup %3572  ;;  %v2624_v55 = vmul.f32 0.5, %v3571_v63 }
 0xc5e   :  { %v2628_v35 = vmul.f32 0.5, %v3573_v19  ;;  %v3575_v13 = vpop.eup %3574 }
 0xc5f   :  { %v2625_v8 = vadd.f32 0.5, %v2624_v55  ;;  %v3577_v18 = vpop.eup %3576 }
 0xc60   :  { %v2629_v27 = vadd.f32 0.5, %v2628_v35  ;;  %v2633_v45 = vmul.f32 0.5, %v3577_v18  ;;  %v4935_v18 = vld [vmem:[#allocation12 + $0x8] ss:$16 sps:$4 sm:$0xff]  }
 0xc61   :  { %v2636_v58 = vmul.f32 %v3575_v13, %v2625_v8 }
 0xc62   :  { %v2635_v1 = vmul.f32 %v2629_v27, %v4837_v47  ;;  %v2634_v10 = vadd.f32 0.5, %v2633_v45  ;;  %v4941_v45 = vld [vmem:[#allocation12 + $0x2c] ss:$16 sps:$4 sm:$0xff]  }
 0xc64   :  { %v4883_v17 = vadd.f32 %v2636_v58, %v2635_v1  ;;  %v4932_v1 = vld [vmem:[#allocation12] ss:$16 sps:$4 sm:$0xff]  }
 0xc66   :  { %3578 = vtanh.f32 %v4883_v17 }
 0xc70   :  { %v3579_v42 = vpop.eup %3578 }
 0xc71   :  { %v2639_v14 = vmul.f32 %v3579_v42, %v2634_v10  ;;  %v4946_v10 = vld [vmem:[#allocation12 + $0x20] ss:$16 sps:$4 sm:$0xff]   ;;  %v4949_v42 = vld [vmem:[#allocation12 + $0x28] ss:$16 sps:$4 sm:$0xff]  }
 0xc73   :  { %v2644_v43 = vpack.c.bf16 %v2639_v14, %v2639_v14  ;;  %v4952_v14 = vld [vmem:[#allocation12 + $0x44] ss:$16 sps:$4 sm:$0xff]  }
 0xc75   :  { %2678 = vmatmul.mubr.bf16.vlgmr.msra.gmra.mrb[80].mxu0 %v2644_v43  ;;  %2719 = vmatmul.mubr.bf16.vlgmr.msra.gmra.mrb[80].mxu1 %v2644_v43  ;;  %v4955_v43 = vld [vmem:[#allocation12 + $0x4c] ss:$16 sps:$4 sm:$0xff]  }
 0xc76   :  { %2755 = vmatpush1.bf16.msra.mxu0 %v4517_v39  ;;  %2796 = vmatpush1.bf16.msra.mxu1 %v4519_v40  ;;  %v5162_v39 = vld [vmem:[#allocation25_spill] sm:$0xff] }
 0xc77   :  { %2756 = vmatprep.subr.bf16.mxu0 %v4525_v41  ;;  %2797 = vmatprep.subr.bf16.mxu1 %v4527_v16  ;;  %v1890_v40 = vadd.f32 %v5162_v39, %v4719_v12  ;;  %v5163_v41 = vld [vmem:[#allocation26_spill] sm:$0xff] }
 0xc78   :  { %2786 = vmatprep.mubr.bf16.mxu0 %v5103_v9  ;;  %2827 = vmatprep.mubr.bf16.mxu1 %v5103_v9  ;;  %v1963_v16 = vadd.f32 %v5163_v41, %v4723_v30  ;;  %v4958_v39 = vld [vmem:[#allocation12 + $0x40] ss:$16 sps:$4 sm:$0xff]   ;;  %v4964_v41 = vld [vmem:[#allocation12 + $0x64] ss:$16 sps:$4 sm:$0xff]  }
 0xc7a   :  { %2757 = vmatpush1.bf16.msra.mxu0 %v4529_v20  ;;  %2798 = vmatpush1.bf16.msra.mxu1 %v4531_v21  ;;  %v5164_v20 = vld [vmem:[#allocation27_spill] sm:$0xff] }
 0xc7b   :  { %2758 = vmatprep.subr.bf16.mxu0 %v4537_v24  ;;  %2799 = vmatprep.subr.bf16.mxu1 %v4539_v33  ;;  %v1892_v21 = vadd.f32 %v5164_v20, %v4731_v49  ;;  %v5165_v24 = vld [vmem:[#allocation28_spill] sm:$0xff] }
 0xc7c   :  { %v1965_v33 = vadd.f32 %v5165_v24, %v4735_v15  ;;  %v4970_v20 = vld [vmem:[#allocation12 + $0x60] ss:$16 sps:$4 sm:$0xff]   ;;  %v4976_v24 = vld [vmem:[#allocation12 + $0x84] ss:$16 sps:$4 sm:$0xff]  }
 0xc7e   :  { %2759 = vmatpush1.bf16.msra.mxu0 %v4541_v34  ;;  %2800 = vmatpush1.bf16.msra.mxu1 %v4543_v26 }
 0xc7f   :  { %2760 = vmatprep.subr.bf16.mxu0 %v4549_v7  ;;  %2801 = vmatprep.subr.bf16.mxu1 %v4551_v32 }
 0xc82   :  { %2761 = vmatpush1.bf16.msra.mxu0 %v4553_v22  ;;  %2802 = vmatpush1.bf16.msra.mxu1 %v4555_v36 }
 0xc83   :  { %2762 = vmatprep.subr.bf16.mxu0 %v4561_v28  ;;  %2803 = vmatprep.subr.bf16.mxu1 %v4563_v25 }
 0xc86   :  { %2763 = vmatpush1.bf16.msra.mxu0 %v4565_v54  ;;  %2804 = vmatpush1.bf16.msra.mxu1 %v4567_v29 }
 0xc87   :  { %2764 = vmatprep.subr.bf16.mxu0 %v4573_v51  ;;  %2805 = vmatprep.subr.bf16.mxu1 %v4575_v52 }
 0xc8a   :  { %2765 = vmatpush1.bf16.msra.mxu0 %v4579_v53  ;;  %2806 = vmatpush1.bf16.msra.mxu1 %v4581_v60 }
 0xc8b   :  { %2766 = vmatprep.subr.bf16.mxu0 %v4585_v61  ;;  %2807 = vmatprep.subr.bf16.mxu1 %v4587_v62 }
 0xc8e   :  { %2767 = vmatpush1.bf16.msra.mxu0 %v4589_v0  ;;  %2808 = vmatpush1.bf16.msra.mxu1 %v4591_v2 }
 0xc8f   :  { %2768 = vmatprep.subr.bf16.mxu0 %v4597_v3  ;;  %2809 = vmatprep.subr.bf16.mxu1 %v4599_v4 }
 0xc92   :  { %2769 = vmatpush1.bf16.msra.mxu0 %v4601_v5  ;;  %2810 = vmatpush1.bf16.msra.mxu1 %v4603_v6 }
 0xc93   :  { %2863 = vmatprep.subr.bf16.mxu0 %v4513_v11  ;;  %2904 = vmatprep.subr.bf16.mxu1 %v4515_v38 }
 0xd48   :  { %v2679_v34 = vpop.f32.mrb[80].mxu0  ;;  %v2720_v26 = vpop.f32.mrb[80].mxu1 }
 0xd49   :  { %v2727_v7 = vadd.f32 %v2679_v34, %v1890_v40  ;;  %v2729_v32 = vadd.f32 %v2720_v26, %v1963_v16  ;;  %v2681_v22 = vpop.f32.mrb[81].mxu0  ;;  %v2722_v11 = vpop.f32.mrb[81].mxu1  ;;  %v4961_v40 = vld [vmem:[#allocation12 + $0x48] ss:$16 sps:$4 sm:$0xff]   ;;  %v4967_v16 = vld [vmem:[#allocation12 + $0x6c] ss:$16 sps:$4 sm:$0xff]  }
 0xd4a   :  { %v2728_v36 = vadd.f32 %v2681_v22, %v1892_v21  ;;  %v2730_v38 = vadd.f32 %v2722_v11, %v1965_v33  ;;  %v2683_v28 = vpop.f32.mrb[82].mxu0  ;;  %v2724_v25 = vpop.f32.mrb[82].mxu1  ;;  %v4973_v21 = vld [vmem:[#allocation12 + $0x68] ss:$16 sps:$4 sm:$0xff]   ;;  %v4979_v33 = vld [vmem:[#allocation12 + $0x8c] ss:$16 sps:$4 sm:$0xff]  }
 0xd4b   :  { %v2731_v54 = vmul.f32 0.5, %v2727_v7  ;;  %v2684_v29 = vpop.f32.mrb[83].mxu0  ;;  %v2725_v47 = vpop.f32.mrb[83].mxu1  ;;  %v4982_v34 = vld [vmem:[#allocation12 + $0x80] ss:$16 sps:$4 sm:$0xff]  }
 0xd4c   :  { %v2735_v44 = vmul.f32 0.5, %v2728_v36  ;;  %v2740_v56 = vmul.f32 0.5, %v2730_v38  ;;  %v4985_v26 = vld [vmem:[#allocation12 + $0x88] ss:$16 sps:$4 sm:$0xff]  }
 0xd4d   :  { %3580 = vtanh.f32 %v2731_v54 }
 0xd4e   :  { %3582 = vtanh.f32 %v2735_v44 }
 0xd4f   :  { %3584 = vtanh.f32 %v2729_v32 }
 0xd50   :  { %3586 = vtanh.f32 %v2740_v56 }
 0xd57   :  { %v3581_v46 = vpop.eup %3580 }
 0xd58   :  { %v3583_v37 = vpop.eup %3582  ;;  %v2733_v59 = vmul.f32 0.5, %v3581_v46 }
 0xd59   :  { %v2737_v31 = vmul.f32 0.5, %v3583_v37  ;;  %v3585_v57 = vpop.eup %3584 }
 0xd5a   :  { %v2734_v23 = vadd.f32 0.5, %v2733_v59  ;;  %v3587_v55 = vpop.eup %3586 }
 0xd5b   :  { %v2738_v50 = vadd.f32 0.5, %v2737_v31  ;;  %v2742_v35 = vmul.f32 0.5, %v3587_v55 }
 0xd5c   :  { %v2745_v48 = vmul.f32 %v3585_v57, %v2734_v23 }
 0xd5d   :  { %v2744_v63 = vmul.f32 %v2738_v50, %v4883_v17  ;;  %v2743_v8 = vadd.f32 0.5, %v2742_v35  ;;  %v4938_v17 = vld [vmem:[#allocation12 + $0x24] ss:$16 sps:$4 sm:$0xff]  }
 0xd5f   :  { %v4929_v19 = vadd.f32 %v2745_v48, %v2744_v63 }
 0xd61   :  { %3588 = vtanh.f32 %v4929_v19 }
 0xd6b   :  { %v3589_v13 = vpop.eup %3588 }
 0xd6c   :  { %v2748_v27 = vmul.f32 %v3589_v13, %v2743_v8 }
 0xd6e   :  { %v2753_v58 = vpack.c.bf16 %v2748_v27, %v2748_v27 }
 0xd70   :  { %2787 = vmatmul.mubr.bf16.vlgmr.msra.gmra.mrb[84].mxu0 %v2753_v58  ;;  %2828 = vmatmul.mubr.bf16.vlgmr.msra.gmra.mrb[84].mxu1 %v2753_v58 }
 0xd71   :  { %2864 = vmatpush1.bf16.msra.mxu0 %v4932_v1  ;;  %2905 = vmatpush1.bf16.msra.mxu1 %v4935_v18 }
 0xd72   :  { %2865 = vmatprep.subr.bf16.mxu0 %v4938_v17  ;;  %2906 = vmatprep.subr.bf16.mxu1 %v4941_v45 }
 0xd73   :  { %2895 = vmatprep.mubr.bf16.mxu0 %v5103_v9  ;;  %2936 = vmatprep.mubr.bf16.mxu1 %v5103_v9 }
 0xd75   :  { %2866 = vmatpush1.bf16.msra.mxu0 %v4946_v10  ;;  %2907 = vmatpush1.bf16.msra.mxu1 %v4949_v42 }
 0xd76   :  { %2867 = vmatprep.subr.bf16.mxu0 %v4952_v14  ;;  %2908 = vmatprep.subr.bf16.mxu1 %v4955_v43 }
 0xd79   :  { %2868 = vmatpush1.bf16.msra.mxu0 %v4958_v39  ;;  %2909 = vmatpush1.bf16.msra.mxu1 %v4961_v40 }
 0xd7a   :  { %2869 = vmatprep.subr.bf16.mxu0 %v4964_v41  ;;  %2910 = vmatprep.subr.bf16.mxu1 %v4967_v16 }
 0xd7d   :  { %2870 = vmatpush1.bf16.msra.mxu0 %v4970_v20  ;;  %2911 = vmatpush1.bf16.msra.mxu1 %v4973_v21 }
 0xd7e   :  { %2871 = vmatprep.subr.bf16.mxu0 %v4976_v24  ;;  %2912 = vmatprep.subr.bf16.mxu1 %v4979_v33 }
 0xd81   :  { %2872 = vmatpush1.bf16.msra.mxu0 %v4982_v34  ;;  %2913 = vmatpush1.bf16.msra.mxu1 %v4985_v26 }
 0xd82   :  { %2873 = vmatprep.subr.bf16.mxu0 %v4573_v51  ;;  %2914 = vmatprep.subr.bf16.mxu1 %v4575_v52  ;;  %v3670_v51 = vld [vmem:[#allocation12 + $0x4] ss:$16 sps:$4 sm:$0xff]   ;;  %v3671_v52 = vld [vmem:[#allocation12 + $0xc] ss:$16 sps:$4 sm:$0xff]  }
 0xd85   :  { %2874 = vmatpush1.bf16.msra.mxu0 %v4579_v53  ;;  %2915 = vmatpush1.bf16.msra.mxu1 %v4581_v60  ;;  %v5166_v53 = vld [vmem:[#allocation29_spill] sm:$0xff] }
 0xd86   :  { %2875 = vmatprep.subr.bf16.mxu0 %v4585_v61  ;;  %2916 = vmatprep.subr.bf16.mxu1 %v4587_v62  ;;  %v1894_v60 = vadd.f32 %v5166_v53, %v4719_v12  ;;  %v5167_v61 = vld [vmem:[#allocation30_spill] sm:$0xff] }
 0xd87   :  { %v1967_v62 = vadd.f32 %v5167_v61, %v4723_v30 }
 0xd89   :  { %2876 = vmatpush1.bf16.msra.mxu0 %v4589_v0  ;;  %2917 = vmatpush1.bf16.msra.mxu1 %v4591_v2  ;;  %v5168_v0 = vld [vmem:[#allocation31_spill] sm:$0xff] }
 0xd8a   :  { %2877 = vmatprep.subr.bf16.mxu0 %v4597_v3  ;;  %2918 = vmatprep.subr.bf16.mxu1 %v4599_v4  ;;  %v1896_v2 = vadd.f32 %v5168_v0, %v4731_v49  ;;  %v5169_v3 = vld [vmem:[#allocation32_spill] sm:$0xff] }
 0xd8b   :  { %v1969_v4 = vadd.f32 %v5169_v3, %v4735_v15 }
 0xd8d   :  { %2878 = vmatpush1.bf16.msra.mxu0 %v4601_v5  ;;  %2919 = vmatpush1.bf16.msra.mxu1 %v4603_v6 }
 0xd8e   :  { %2972 = vmatprep.subr.bf16.mxu0 %v3670_v51  ;;  %3013 = vmatprep.subr.bf16.mxu1 %v3671_v52 }
 0xe43   :  { %v2788_v7 = vpop.f32.mrb[84].mxu0  ;;  %v2829_v5 = vpop.f32.mrb[84].mxu1 }
 0xe44   :  { %v2836_v32 = vadd.f32 %v2788_v7, %v1894_v60  ;;  %v2838_v6 = vadd.f32 %v2829_v5, %v1967_v62  ;;  %v2790_v22 = vpop.f32.mrb[85].mxu0  ;;  %v2831_v11 = vpop.f32.mrb[85].mxu1 }
 0xe45   :  { %v2837_v36 = vadd.f32 %v2790_v22, %v1896_v2  ;;  %v2839_v38 = vadd.f32 %v2831_v11, %v1969_v4  ;;  %v2792_v28 = vpop.f32.mrb[86].mxu0  ;;  %v2833_v25 = vpop.f32.mrb[86].mxu1 }
 0xe46   :  { %v2840_v54 = vmul.f32 0.5, %v2836_v32  ;;  %v2793_v29 = vpop.f32.mrb[87].mxu0  ;;  %v2834_v47 = vpop.f32.mrb[87].mxu1 }
 0xe47   :  { %v2844_v44 = vmul.f32 0.5, %v2837_v36  ;;  %v2849_v56 = vmul.f32 0.5, %v2839_v38 }
 0xe48   :  { %3590 = vtanh.f32 %v2840_v54 }
 0xe49   :  { %3592 = vtanh.f32 %v2844_v44 }
 0xe4a   :  { %3594 = vtanh.f32 %v2838_v6 }
 0xe4b   :  { %3596 = vtanh.f32 %v2849_v56 }
 0xe52   :  { %v3591_v46 = vpop.eup %3590 }
 0xe53   :  { %v3593_v37 = vpop.eup %3592  ;;  %v2842_v59 = vmul.f32 0.5, %v3591_v46 }
 0xe54   :  { %v2846_v31 = vmul.f32 0.5, %v3593_v37  ;;  %v3595_v57 = vpop.eup %3594 }
 0xe55   :  { %v2843_v23 = vadd.f32 0.5, %v2842_v59  ;;  %v3597_v35 = vpop.eup %3596 }
 0xe56   :  { %v2847_v50 = vadd.f32 0.5, %v2846_v31  ;;  %v2851_v8 = vmul.f32 0.5, %v3597_v35  ;;  %v5175_v35 = vld [vmem:[#allocation38_spill] sm:$0xff] }
 0xe57   :  { %v2854_v48 = vmul.f32 %v3595_v57, %v2843_v23 }
 0xe58   :  { %v2853_v63 = vmul.f32 %v2847_v50, %v4929_v19  ;;  %v2852_v13 = vadd.f32 0.5, %v2851_v8  ;;  %v3673_v19 = vld [vmem:[#allocation12 + $0xac] ss:$16 sps:$4 sm:$0xff]   ;;  %v1977_v8 = vadd.f32 %v5175_v35, %v4723_v30 }
 0xe5a   :  { %v5009_v55 = vadd.f32 %v2854_v48, %v2853_v63  ;;  %v5174_v48 = vld [vmem:[#allocation37_spill] sm:$0xff] }
 0xe5b   :  { %v1904_v63 = vadd.f32 %v5174_v48, %v4719_v12 }
 0xe5c   :  { %3598 = vtanh.f32 %v5009_v55 }
 0xe66   :  { %v3599_v27 = vpop.eup %3598 }
 0xe67   :  { %v2857_v58 = vmul.f32 %v3599_v27, %v2852_v13  ;;  %v5176_v13 = vld [vmem:[#allocation16_spill] sm:$0xff] }
 0xe68   :  { %v1906_v27 = vadd.f32 %v5176_v13, %v4731_v49 }
 0xe69   :  { %v2862_v51 = vpack.c.bf16 %v2857_v58, %v2857_v58 }
 0xe6b   :  { %2896 = vmatmul.mubr.bf16.vlgmr.msra.gmra.mrb[88].mxu0 %v2862_v51  ;;  %2937 = vmatmul.mubr.bf16.vlgmr.msra.gmra.mrb[88].mxu1 %v2862_v51 }
 0xe6c   :  { %2973 = vmatpush1.bf16.msra.mxu0 %v4932_v1  ;;  %3014 = vmatpush1.bf16.msra.mxu1 %v4935_v18  ;;  %v3674_v1 = vld [vmem:[#allocation12 + $0xa0] ss:$16 sps:$4 sm:$0xff]   ;;  %v3675_v18 = vld [vmem:[#allocation12 + $0xa8] ss:$16 sps:$4 sm:$0xff]  }
 0xe6d   :  { %2974 = vmatprep.subr.bf16.mxu0 %v4938_v17  ;;  %3015 = vmatprep.subr.bf16.mxu1 %v4941_v45  ;;  %v3676_v17 = vld [vmem:[#allocation12 + $0xc4] ss:$16 sps:$4 sm:$0xff]   ;;  %v3677_v45 = vld [vmem:[#allocation12 + $0xcc] ss:$16 sps:$4 sm:$0xff]  }
 0xe6e   :  { %3004 = vmatprep.mubr.bf16.mxu0 %v5103_v9  ;;  %3045 = vmatprep.mubr.bf16.mxu1 %v5103_v9  ;;  %v3672_v9 = vld [vmem:[#allocation12 + $0xa4] ss:$16 sps:$4 sm:$0xff]  }
 0xe70   :  { %2975 = vmatpush1.bf16.msra.mxu0 %v4946_v10  ;;  %3016 = vmatpush1.bf16.msra.mxu1 %v4949_v42  ;;  %v3678_v10 = vld [vmem:[#allocation12 + $0xc0] ss:$16 sps:$4 sm:$0xff]   ;;  %v3679_v42 = vld [vmem:[#allocation12 + $0xc8] ss:$16 sps:$4 sm:$0xff]  }
 0xe71   :  { %2976 = vmatprep.subr.bf16.mxu0 %v4952_v14  ;;  %3017 = vmatprep.subr.bf16.mxu1 %v4955_v43  ;;  %v3680_v14 = vld [vmem:[#allocation12 + $0xe4] ss:$16 sps:$4 sm:$0xff]   ;;  %v3681_v43 = vld [vmem:[#allocation12 + $0xec] ss:$16 sps:$4 sm:$0xff]  }
 0xe74   :  { %2977 = vmatpush1.bf16.msra.mxu0 %v4958_v39  ;;  %3018 = vmatpush1.bf16.msra.mxu1 %v4961_v40  ;;  %v3682_v39 = vld [vmem:[#allocation12 + $0xe0] ss:$16 sps:$4 sm:$0xff]   ;;  %v3683_v40 = vld [vmem:[#allocation12 + $0xe8] ss:$16 sps:$4 sm:$0xff]  }
 0xe75   :  { %2978 = vmatprep.subr.bf16.mxu0 %v4964_v41  ;;  %3019 = vmatprep.subr.bf16.mxu1 %v4967_v16  ;;  %v5170_v41 = vld [vmem:[#allocation33_spill] sm:$0xff] }
 0xe76   :  { %v1900_v16 = vadd.f32 %v5170_v41, %v4719_v12 }
 0xe78   :  { %2979 = vmatpush1.bf16.msra.mxu0 %v4970_v20  ;;  %3020 = vmatpush1.bf16.msra.mxu1 %v4973_v21  ;;  %v5171_v20 = vld [vmem:[#allocation34_spill] sm:$0xff] }
 0xe79   :  { %2980 = vmatprep.subr.bf16.mxu0 %v4976_v24  ;;  %3021 = vmatprep.subr.bf16.mxu1 %v4979_v33  ;;  %v1973_v21 = vadd.f32 %v5171_v20, %v4723_v30  ;;  %v5172_v24 = vld [vmem:[#allocation35_spill] sm:$0xff] }
 0xe7a   :  { %v1902_v33 = vadd.f32 %v5172_v24, %v4731_v49 }
 0xe7c   :  { %2981 = vmatpush1.bf16.msra.mxu0 %v4982_v34  ;;  %3022 = vmatpush1.bf16.msra.mxu1 %v4985_v26  ;;  %v5173_v34 = vld [vmem:[#allocation36_spill] sm:$0xff] }
 0xe7d   :  { %2982 = vmatprep.subr.bf16.mxu0 %v3672_v9  ;;  %3023 = vmatprep.subr.bf16.mxu1 %v3673_v19  ;;  %v1975_v26 = vadd.f32 %v5173_v34, %v4735_v15 }
 0xe80   :  { %2983 = vmatpush1.bf16.msra.mxu0 %v3674_v1  ;;  %3024 = vmatpush1.bf16.msra.mxu1 %v3675_v18 }
 0xe81   :  { %2984 = vmatprep.subr.bf16.mxu0 %v3676_v17  ;;  %3025 = vmatprep.subr.bf16.mxu1 %v3677_v45 }
 0xe84   :  { %2985 = vmatpush1.bf16.msra.mxu0 %v3678_v10  ;;  %3026 = vmatpush1.bf16.msra.mxu1 %v3679_v42 }
 0xe85   :  { %2986 = vmatprep.subr.bf16.mxu0 %v3680_v14  ;;  %3027 = vmatprep.subr.bf16.mxu1 %v3681_v43 }
 0xe88   :  { %2987 = vmatpush1.bf16.msra.mxu0 %v3682_v39  ;;  %3028 = vmatpush1.bf16.msra.mxu1 %v3683_v40 }
 0xf3e   :  { %v2897_v52 = vpop.f32.mrb[88].mxu0  ;;  %v2938_v53 = vpop.f32.mrb[88].mxu1 }
 0xf3f   :  { %v2945_v60 = vadd.f32 %v2897_v52, %v1900_v16  ;;  %v2947_v61 = vadd.f32 %v2938_v53, %v1973_v21  ;;  %v2899_v62 = vpop.f32.mrb[89].mxu0  ;;  %v2940_v0 = vpop.f32.mrb[89].mxu1 }
 0xf40   :  { %v2946_v2 = vadd.f32 %v2899_v62, %v1902_v33  ;;  %v2948_v3 = vadd.f32 %v2940_v0, %v1975_v26  ;;  %v2901_v4 = vpop.f32.mrb[90].mxu0  ;;  %v2942_v7 = vpop.f32.mrb[90].mxu1  ;;  %v3251_v62 = vld [vmem:[%s5069_s8] ss:$0 sm:$0xff] }
 0xf41   :  { %v2949_v5 = vmul.f32 0.5, %v2945_v60  ;;  %v2902_v32 = vpop.f32.mrb[91].mxu0  ;;  %v2943_v6 = vpop.f32.mrb[91].mxu1  ;;  %v3088_v0 = vld [vmem:[%s5062_s1] sm:$0x3] }
 0xf42   :  { %v2953_v22 = vmul.f32 0.5, %v2946_v2  ;;  %v2958_v11 = vmul.f32 0.5, %v2948_v3  ;;  %v3252_v2 = vld [vmem:[%s5070_s9] ss:$0 sm:$0xff] }
 0xf43   :  { %3600 = vtanh.f32 %v2949_v5  ;;  %v3096_v7 = vmul.f32 %v3252_v2, %v3088_v0 }
 0xf44   :  { %3602 = vtanh.f32 %v2953_v22  ;;  %v3253_v22 = vld [vmem:[#allocation4] ss:$0 sm:$0xff] }
 0xf45   :  { %3604 = vtanh.f32 %v2947_v61  ;;  %v3098_v32 = vsel %vm3097_vm1, %v3096_v7, 0.0 }
 0xf46   :  { %3606 = vtanh.f32 %v2958_v11 }
 0xf4d   :  { %v3601_v36 = vpop.eup %3600 }
 0xf4e   :  { %v3603_v38 = vpop.eup %3602  ;;  %v2951_v28 = vmul.f32 0.5, %v3601_v36 }
 0xf4f   :  { %v2955_v25 = vmul.f32 0.5, %v3603_v38  ;;  %v3605_v29 = vpop.eup %3604 }
 0xf50   :  { %v2952_v54 = vadd.f32 0.5, %v2951_v28  ;;  %v3607_v37 = vpop.eup %3606 }
 0xf51   :  { %v2956_v47 = vadd.f32 0.5, %v2955_v25  ;;  %v2960_v59 = vmul.f32 0.5, %v3607_v37 }
 0xf52   :  { %v2963_v44 = vmul.f32 %v3605_v29, %v2952_v54 }
 0xf53   :  { %v2962_v56 = vmul.f32 %v2956_v47, %v5009_v55  ;;  %v2961_v31 = vadd.f32 0.5, %v2960_v59  ;;  %v5177_v55 = vld [vmem:[#allocation39_spill] sm:$0xff] }
 0xf54   :  { %v1979_v58 = vadd.f32 %v5177_v55, %v4735_v15 }
 0xf55   :  { %v2964_v46 = vadd.f32 %v2963_v44, %v2962_v56 }
 0xf57   :  { %3608 = vtanh.f32 %v2964_v46 }
 0xf61   :  { %v3609_v23 = vpop.eup %3608 }
 0xf62   :  { %v2966_v57 = vmul.f32 %v3609_v23, %v2961_v31 }
 0xf64   :  { %v2971_v50 = vpack.c.bf16 %v2966_v57, %v2966_v57 }
 0xf66   :  { %3005 = vmatmul.mubr.bf16.vlgmr.msra.gmra.mrb[92].mxu0 %v2971_v50  ;;  %3046 = vmatmul.mubr.bf16.vlgmr.msra.gmra.mrb[92].mxu1 %v2971_v50 }
0x1039   :  { %v3006_v51 = vpop.f32.mrb[92].mxu0  ;;  %v3047_v9 = vpop.f32.mrb[92].mxu1 }
0x103a   :  { %v3054_v19 = vadd.f32 %v3006_v51, %v1904_v63  ;;  %v3056_v1 = vadd.f32 %v3047_v9, %v1977_v8  ;;  %v3008_v18 = vpop.f32.mrb[93].mxu0  ;;  %v3049_v17 = vpop.f32.mrb[93].mxu1 }
0x103b   :  { %v3055_v45 = vadd.f32 %v3008_v18, %v1906_v27  ;;  %v3057_v10 = vadd.f32 %v3049_v17, %v1979_v58  ;;  %v3010_v42 = vpop.f32.mrb[94].mxu0  ;;  %v3051_v14 = vpop.f32.mrb[94].mxu1 }
0x103c   :  { %v3058_v12 = vmul.f32 0.5, %v3054_v19  ;;  %v3011_v43 = vpop.f32.mrb[95].mxu0  ;;  %v3052_v39 = vpop.f32.mrb[95].mxu1 }
0x103d   :  { %v3062_v30 = vmul.f32 0.5, %v3055_v45  ;;  %v3067_v49 = vmul.f32 0.5, %v3057_v10 }
0x103e   :  { %3610 = vtanh.f32 %v3058_v12 }
0x103f   :  { %3612 = vtanh.f32 %v3062_v30 }
0x1040   :  { %3614 = vtanh.f32 %v3056_v1 }
0x1041   :  { %3616 = vtanh.f32 %v3067_v49 }
0x1048   :  { %v3611_v40 = vpop.eup %3610 }
0x1049   :  { %v3613_v15 = vpop.eup %3612  ;;  %v3060_v41 = vmul.f32 0.5, %v3611_v40 }
0x104a   :  { %v3064_v16 = vmul.f32 0.5, %v3613_v15  ;;  %v3615_v21 = vpop.eup %3614 }
0x104b   :  { %v3061_v20 = vadd.f32 0.5, %v3060_v41  ;;  %v3617_v52 = vpop.eup %3616 }
0x104c   :  { %v3065_v24 = vadd.f32 0.5, %v3064_v16  ;;  %v3069_v53 = vmul.f32 0.5, %v3617_v52 }
0x104d   :  { %v3072_v33 = vmul.f32 %v3615_v21, %v3061_v20 }
0x104e   :  { %v3071_v34 = vmul.f32 %v3065_v24, %v2964_v46  ;;  %v3070_v60 = vadd.f32 0.5, %v3069_v53 }
0x1050   :  { %v3073_v26 = vadd.f32 %v3072_v33, %v3071_v34 }
0x1052   :  { %3618 = vtanh.f32 %v3073_v26 }
0x105c   :  { %v3619_v61 = vpop.eup %3618 }
0x105d   :  { %v3075_v3 = vmul.f32 %v3619_v61, %v3070_v60 }
0x105f   :  { %v3083_v4 = vmul.f32 %v3251_v62, %v3075_v3 }
0x1061   :  { %v3085_v5 = vsel %vm3084_vm0, %v3083_v4, 0.0 }
0x1062   :  { %3086 = vadd.xlane.f32.xlu0 %v3085_v5 }
0x1066   :  { %3099 = vadd.xlane.f32.xlu0 %v3098_v32 }
0x10ef   :  { %v3087_v6 = vpop.xlane.xlu0 %3086 }
0x10f3   :  { %v3100_v11 = vpop.xlane.xlu0 %3099 }
0x10f4   :  { %v3101_v36 = vadd.f32 %v3100_v11, %v3087_v6 }
0x10f6   :  { %v3109_v38 = vadd.f32 %v3253_v22, %v3101_v36 }
0x10f8   :  { %3111 = vst.msk [vmem:[%s5072_s11] sm:$0x3] %vm3110_vm2, %v3109_v38 }
0x10f9   :  { %3116 = vsyncpa [#allocation6], 1 }
0x10fa   :  { %3117 = vsyncpa [#allocation8], 1 }
0x10fb   :  { %3118 = vsyncpa [#allocation11], 1 }

</bundles_post_ra>
